<compile_context>
chip_gen: v7x
topology: tpu7x:2x2x1
jax: 0.10.0
libtpu: 0.0.40
codegen_flags: <defaults>
</compile_context>

<pallas_src>
import functools

import jax
import jax.numpy as jnp
from jax.experimental import pallas as pl
from jax.experimental.pallas import tpu as pltpu

BATCH = 2
DIM = 16        # channels; must be divisible by 8 (attention hidden = C // 8)
KSIZE = 3
BLOCKS = 2
HSIZE = 16
WSIZE = 16

_STACK_PARAMS = ("w1", "b1", "a1", "w2", "b2",
                 "ga_w1", "ga_b1", "ga_a", "ga_w2", "ga_b2",
                 "fa_w1", "fa_b1", "fa_a", "fa_w2", "fa_b2")


# --------------------------- fused Group kernel ---------------------------

def group_kernel(x_ref, masks_ref, convw_ref, convb_ref,
                 cpack_ref, hpack_ref, rpack_ref, o_ref,
                 *, height, width, n_fold, blocks):
    hw = height * width
    c = x_ref.shape[1]
    lanes = x_ref.shape[2]          # n_fold * hw
    c8 = hpack_ref.shape[1]         # padded attention hidden dim (8)
    kk = masks_ref.shape[0]
    k = int(round(kk ** 0.5))
    r = k // 2
    # Tap offsets (dy-major, dx-minor) -- same order as masks and wide weights.
    offs = [dy * width + dx
            for dy in range(-r, r + 1) for dx in range(-r, r + 1)]

    def prelu(v, a):
        return jnp.where(v >= 0, v, a * v)

    def sigmoid(v):
        return 1.0 / (1.0 + jnp.exp(-v))

    def conv_kxk(act, idx):
        # kxk conv (padding=k//2) as ONE wide-K MXU matmul:
        #   (C, kk*C) @ (kk*C, lanes), bf16 operands, f32 accumulation.
        # Each tap's window is a lane-roll of the activation; the per-tap mask
        # zeroes taps that would cross an image border (== zero padding) and,
        # with folded batches, any cross-image wrap of the roll.
        cols = []
        for t, off in enumerate(offs):
            if off == 0:
                win = act
            else:
                win = pltpu.roll(act, shift=(-off) % lanes, axis=1) * masks_ref[t]
            cols.append(win.astype(jnp.bfloat16))
        stacked = jnp.concatenate(cols, axis=0)             # (kk*C, lanes) bf16
        return (jnp.dot(convw_ref[idx], stacked,
                        preferred_element_type=jnp.float32)
                + convb_ref[idx])

    x0 = x_ref[0]                                           # (C, lanes) group input
    cur = x0
    # TODO(synk): if BLOCKS grows beyond ~4, switch this static unroll to a
    # lax.fori_loop with dynamic stack indexing to bound vreg live ranges.
    for s in range(blocks):
        cp = cpack_ref[s]                                   # (C, 2 + C8)
        hp = hpack_ref[s]                                   # (C8, 2C + 4)
        rp = rpack_ref[s]                                   # (1, C8 + 1)
        a1, ga_b2 = cp[:, 0:1], cp[:, 1:2]
        ga_w2 = cp[:, 2:2 + c8]                             # (C, C8)
        ga_w1 = hp[:, 0:c]                                  # (C8, C)
        ga_b1, ga_a = hp[:, c:c + 1], hp[:, c + 1:c + 2]
        fa_w1 = hp[:, c + 2:2 * c + 2]                      # (C8, C)
        fa_b1, fa_a = hp[:, 2 * c + 2:2 * c + 3], hp[:, 2 * c + 3:2 * c + 4]
        fa_w2, fa_b2 = rp[:, 0:c8], rp[:, c8:c8 + 1]        # (1, C8), (1, 1)

        # ---- res = PReLU(conv1(x)) + x ----
        t1 = prelu(conv_kxk(cur, 2 * s), a1) + cur
        # ---- res = conv2(res) ----
        r2 = conv_kxk(t1, 2 * s + 1)

        # ---- GABlock: per-image avg pool -> (C,1) gate, lane-broadcast apply
        r3_parts = []
        for i in range(n_fold):
            seg = r2 if n_fold == 1 else r2[:, i * hw:(i + 1) * hw]
            pooled = jnp.mean(seg, axis=1, keepdims=True)               # (C, 1)
            h1 = prelu(jnp.dot(ga_w1, pooled,
                               preferred_element_type=jnp.float32) + ga_b1,
                       ga_a)                                            # (C8, 1)
            g = sigmoid(jnp.dot(ga_w2, h1,
                                preferred_element_type=jnp.float32) + ga_b2)
            r3_parts.append(seg * g)                                    # (C, hw)
        r3 = r3_parts[0] if n_fold == 1 else jnp.concatenate(r3_parts, axis=1)

        # ---- FABlock: per-pixel gate (second 1x1 conv as a (1,C8)@(C8,L) dot)
        h2 = prelu(jnp.dot(fa_w1, r3,
                           preferred_element_type=jnp.float32) + fa_b1, fa_a)
        f = sigmoid(jnp.dot(fa_w2, h2,
                            preferred_element_type=jnp.float32) + fa_b2)  # (1,L)
        r4 = r3 * f

        # ---- Stack residuals: res = res + x ; res += x  (x = stack input) ----
        cur = r4 + 2.0 * cur

    # ---- Group tail: final conv + group residual (res += group input) ----
    o_ref[0] = conv_kxk(cur, 2 * blocks) + x0


# ----------------------------- JAX wrapper -----------------------------

def _tap_masks(h, w, k):
    """(k*k, h*w) f32 border-validity masks for the shifted conv windows."""
    r = k // 2
    hh, ww = jnp.meshgrid(jnp.arange(h), jnp.arange(w), indexing="ij")
    hh = hh.reshape(1, h * w)
    ww = ww.reshape(1, h * w)
    ms = []
    for dy in range(-r, r + 1):
        for dx in range(-r, r + 1):
            ok = ((hh + dy >= 0) & (hh + dy < h) &
                  (ww + dx >= 0) & (ww + dx < w))
            ms.append(ok.astype(jnp.float32))
    return jnp.concatenate(ms, axis=0)


def _num_programs(batch):
    """v7x has 2 TensorCores -> keep 2 parallel programs; v5e/v6e have 1 TC ->
    collapse the serial grid and fold the batch into the lane axis."""
    kind = jax.devices()[0].device_kind.lower()
    two_core = ("v7" in kind) or ("7x" in kind)
    return 2 if (two_core and batch % 2 == 0) else 1


def group_forward(x_nchw, params):
    n, c, h, w = x_nchw.shape
    hw = h * w
    blocks = params["w1"].shape[0]
    kk = params["wf"].shape[0]
    k = int(round(kk ** 0.5))
    c8 = params["ga_w1"].shape[1]

    n_prog = _num_programs(n)
    n_fold = n // n_prog
    lanes = n_fold * hw

    # Lane-dense channels-first layout, images folded along lanes per program.
    x2 = (x_nchw.astype(jnp.float32)
          .reshape(n_prog, n_fold, c, hw)
          .transpose(0, 2, 1, 3)
          .reshape(n_prog, c, lanes))

    # Pre-broadcast masks to (kk, C, lanes): no in-kernel re-broadcasts, and
    # per-image tiling makes them also kill cross-image roll wrap when folding.
    m = _tap_masks(h, w, k)                                   # (kk, hw)
    masks = jnp.broadcast_to(jnp.tile(m, (1, n_fold))[:, None, :],
                             (kk, c, lanes))

    # Wide-K conv weights (C, kk*C) bf16 + biases, packed [w1_0,w2_0,...,wf].
    def widen(w_taps):                                        # (kk,C,C)->(C,kk*C)
        return jnp.transpose(w_taps, (1, 0, 2)).reshape(c, kk * c)

    wide, cb = [], []
    for s in range(blocks):
        wide += [widen(params["w1"][s]), widen(params["w2"][s])]
        cb += [params["b1"][s], params["b2"][s]]
    wide.append(widen(params["wf"]))
    cb.append(params["bf"])
    convw = jnp.stack(wide).astype(jnp.bfloat16)              # (2B+1, C, kk*C)
    convb = jnp.stack(cb)                                     # (2B+1, C, 1)

    # Pack the remaining small per-stack params into 3 arrays.
    cpack = jnp.concatenate([params["a1"], params["ga_b2"], params["ga_w2"]],
                            axis=2)                           # (B, C, 2+c8)
    hpack = jnp.concatenate([params["ga_w1"], params["ga_b1"], params["ga_a"],
                             params["fa_w1"], params["fa_b1"], params["fa_a"]],
                            axis=2)                           # (B, c8, 2C+4)
    rpack = jnp.concatenate([jnp.transpose(params["fa_w2"], (0, 2, 1)),
                             params["fa_b2"]], axis=2)        # (B, 1, c8+1)

    def _full(a):
        nd = a.ndim
        return pl.BlockSpec(a.shape, lambda b, nd=nd: (0,) * nd)

    nconv = 2 * blocks + 1
    flops = int(2 * n * nconv * c * (kk * c) * hw
                + 2 * n * blocks * 2 * c8 * c * hw)
    transcend = int(n * blocks * (hw + c + c8))
    bytes_acc = int(2 * x2.size * 4 + masks.size * 4 + convw.size * 2
                    + convb.size * 4 + cpack.size * 4 + hpack.size * 4
                    + rpack.size * 4)

    kern = functools.partial(group_kernel, height=h, width=w,
                             n_fold=n_fold, blocks=blocks)
    out2 = pl.pallas_call(
        kern,
        out_shape=jax.ShapeDtypeStruct((n_prog, c, lanes), jnp.float32),
        grid=(n_prog,),
        in_specs=[pl.BlockSpec((1, c, lanes), lambda b: (b, 0, 0)),
                  _full(masks), _full(convw), _full(convb),
                  _full(cpack), _full(hpack), _full(rpack)],
        out_specs=pl.BlockSpec((1, c, lanes), lambda b: (b, 0, 0)),
        compiler_params=pltpu.CompilerParams(
            dimension_semantics=("parallel",)),
        cost_estimate=pl.CostEstimate(flops=flops,
                                      transcendentals=transcend,
                                      bytes_accessed=bytes_acc),
    )(x2, masks, convw, convb, cpack, hpack, rpack)

    return (out2.reshape(n_prog, c, n_fold, hw)
                .transpose(0, 2, 1, 3)
                .reshape(n, c, h, w))


# ----------------------- deterministic parameter init -----------------------

def init_params(key, c, k, blocks):
    """Parameters in kernel-friendly layouts.

    Conv weights are generated in PyTorch OIHW (C_out, C_in, k, k) and
    repacked tap-major to (k*k, C_out, C_in).  Attention 1x1 convs use a
    hidden dim of c//8 zero-padded to the next multiple of 8 (padding rows /
    cols are zero -> identical function).  nn.PReLU()'s single slope (0.25)
    is stored per-channel with equal values -> same forward.
    """
    assert c % 8 == 0
    c8_true = c // 8
    c8 = ((c8_true + 7) // 8) * 8
    keys = iter(jax.random.split(key, blocks * 12 + 2))

    def nrm(shape, scale=0.05):
        return scale * jax.random.normal(next(keys), shape, dtype=jnp.float32)

    def conv_taps():
        w_oihw = nrm((c, c, k, k))
        return jnp.transpose(w_oihw, (2, 3, 0, 1)).reshape(k * k, c, c)

    def padr(a):
        return jnp.pad(a, ((0, c8 - a.shape[0]), (0, 0)))

    def padc(a):
        return jnp.pad(a, ((0, 0), (0, c8 - a.shape[1])))

    stacks = []
    for _ in range(blocks):
        stacks.append(dict(
            w1=conv_taps(), b1=nrm((c, 1)),
            a1=jnp.full((c, 1), 0.25, jnp.float32),
            w2=conv_taps(), b2=nrm((c, 1)),
            ga_w1=padr(nrm((c8_true, c))), ga_b1=padr(nrm((c8_true, 1))),
            ga_a=jnp.full((c8, 1), 0.25, jnp.float32),
            ga_w2=padc(nrm((c, c8_true))), ga_b2=nrm((c, 1)),
            fa_w1=padr(nrm((c8_true, c))), fa_b1=padr(nrm((c8_true, 1))),
            fa_a=jnp.full((c8, 1), 0.25, jnp.float32),
            fa_w2=padr(nrm((c8_true, 1))), fa_b2=nrm((1, 1)),
        ))
    params = {name: jnp.stack([st[name] for st in stacks])
              for name in _STACK_PARAMS}
    params["wf"] = conv_taps()
    params["bf"] = nrm((c, 1))
    return params


if __name__ == "__main__":
    key = jax.random.PRNGKey(0)
    kx, kp = jax.random.split(key)
    # PyTorch-style NCHW input: (batch, channels, H, W)
    x = jax.random.normal(kx, (BATCH, DIM, HSIZE, WSIZE), dtype=jnp.float32)
    params = init_params(kp, DIM, KSIZE, BLOCKS)

    out = jax.jit(group_forward)(x, params)
    jax.block_until_ready(out)
    assert out.shape == (BATCH, DIM, HSIZE, WSIZE)
    assert out.dtype == jnp.float32
    assert bool(jnp.all(jnp.isfinite(out)))
    print("KERNEL_OK")
</pallas_src>

<mosaic_0001>
module attributes {stable_mosaic.version = 11 : i64} {
  func.func @group_kernel(%arg0: i32, %arg1: memref<1x16x512xf32, #tpu.memory_space<vmem>>, %arg2: memref<9x16x512xf32, #tpu.memory_space<vmem>>, %arg3: memref<5x16x144xbf16, #tpu.memory_space<vmem>>, %arg4: memref<5x16x1xf32, #tpu.memory_space<vmem>>, %arg5: memref<2x16x10xf32, #tpu.memory_space<vmem>>, %arg6: memref<2x8x36xf32, #tpu.memory_space<vmem>>, %arg7: memref<2x1x9xf32, #tpu.memory_space<vmem>>, %arg8: memref<1x16x512xf32, #tpu.memory_space<vmem>>) attributes {dimension_semantics = [#tpu.dimension_semantics<parallel>], iteration_bounds = array<i64: 1>, scalar_prefetch = 0 : i64, scratch_operands = 0 : i64, tpu.core_type = #tpu.core_type<tc>, window_params = [{transform_indices = @transform_0, window_bounds = array<i64: 1, 16, 512>}, {pipeline_mode = #tpu.pipeline_mode<synchronous>, transform_indices = @transform_1, window_bounds = array<i64: 9, 16, 512>}, {pipeline_mode = #tpu.pipeline_mode<synchronous>, transform_indices = @transform_2, window_bounds = array<i64: 5, 16, 144>}, {pipeline_mode = #tpu.pipeline_mode<synchronous>, transform_indices = @transform_3, window_bounds = array<i64: 5, 16, 1>}, {pipeline_mode = #tpu.pipeline_mode<synchronous>, transform_indices = @transform_4, window_bounds = array<i64: 2, 16, 10>}, {pipeline_mode = #tpu.pipeline_mode<synchronous>, transform_indices = @transform_5, window_bounds = array<i64: 2, 8, 36>}, {pipeline_mode = #tpu.pipeline_mode<synchronous>, transform_indices = @transform_6, window_bounds = array<i64: 2, 1, 9>}, {transform_indices = @transform_7, window_bounds = array<i64: 1, 16, 512>}]} {
    %c0 = arith.constant 0 : index
    %c0_0 = arith.constant 0 : index
    %c0_1 = arith.constant 0 : index
    %0 = vector.load %arg1[%c0, %c0_0, %c0_1] : memref<1x16x512xf32, #tpu.memory_space<vmem>>, vector<1x16x512xf32>
    %1 = vector.shape_cast %0 : vector<1x16x512xf32> to vector<16x512xf32>
    %c0_2 = arith.constant 0 : index
    %c0_3 = arith.constant 0 : index
    %c0_4 = arith.constant 0 : index
    %2 = vector.load %arg5[%c0_2, %c0_3, %c0_4] : memref<2x16x10xf32, #tpu.memory_space<vmem>>, vector<1x16x10xf32>
    %3 = vector.shape_cast %2 : vector<1x16x10xf32> to vector<16x10xf32>
    %c0_5 = arith.constant 0 : index
    %c0_6 = arith.constant 0 : index
    %c0_7 = arith.constant 0 : index
    %4 = vector.load %arg6[%c0_5, %c0_6, %c0_7] : memref<2x8x36xf32, #tpu.memory_space<vmem>>, vector<1x8x36xf32>
    %5 = vector.shape_cast %4 : vector<1x8x36xf32> to vector<8x36xf32>
    %c0_8 = arith.constant 0 : index
    %c0_9 = arith.constant 0 : index
    %c0_10 = arith.constant 0 : index
    %6 = vector.load %arg7[%c0_8, %c0_9, %c0_10] : memref<2x1x9xf32, #tpu.memory_space<vmem>>, vector<1x1x9xf32>
    %7 = vector.shape_cast %6 : vector<1x1x9xf32> to vector<1x9xf32>
    %8 = vector.extract_strided_slice %3 {offsets = [0, 0], sizes = [16, 1], strides = [1, 1]} : vector<16x10xf32> to vector<16x1xf32>
    %9 = vector.extract_strided_slice %3 {offsets = [0, 1], sizes = [16, 1], strides = [1, 1]} : vector<16x10xf32> to vector<16x1xf32>
    %10 = vector.extract_strided_slice %3 {offsets = [0, 2], sizes = [16, 8], strides = [1, 1]} : vector<16x10xf32> to vector<16x8xf32>
    %11 = vector.extract_strided_slice %5 {offsets = [0, 0], sizes = [8, 16], strides = [1, 1]} : vector<8x36xf32> to vector<8x16xf32>
    %12 = vector.extract_strided_slice %5 {offsets = [0, 16], sizes = [8, 1], strides = [1, 1]} : vector<8x36xf32> to vector<8x1xf32>
    %13 = vector.extract_strided_slice %5 {offsets = [0, 17], sizes = [8, 1], strides = [1, 1]} : vector<8x36xf32> to vector<8x1xf32>
    %14 = vector.extract_strided_slice %5 {offsets = [0, 18], sizes = [8, 16], strides = [1, 1]} : vector<8x36xf32> to vector<8x16xf32>
    %15 = vector.extract_strided_slice %5 {offsets = [0, 34], sizes = [8, 1], strides = [1, 1]} : vector<8x36xf32> to vector<8x1xf32>
    %16 = vector.extract_strided_slice %5 {offsets = [0, 35], sizes = [8, 1], strides = [1, 1]} : vector<8x36xf32> to vector<8x1xf32>
    %17 = vector.extract_strided_slice %7 {offsets = [0, 0], sizes = [1, 8], strides = [1, 1]} : vector<1x9xf32> to vector<1x8xf32>
    %18 = vector.extract_strided_slice %7 {offsets = [0, 8], sizes = [1, 1], strides = [1, 1]} : vector<1x9xf32> to vector<1x1xf32>
    %c17_i32 = arith.constant 17 : i32
    %19 = tpu.dynamic_rotate %1 by %c17_i32 dim 1 : vector<16x512xf32>, i32 -> vector<16x512xf32>
    %c0_11 = arith.constant 0 : index
    %c0_12 = arith.constant 0 : index
    %c0_13 = arith.constant 0 : index
    %20 = vector.load %arg2[%c0_11, %c0_12, %c0_13] : memref<9x16x512xf32, #tpu.memory_space<vmem>>, vector<1x16x512xf32>
    %21 = vector.shape_cast %20 : vector<1x16x512xf32> to vector<16x512xf32>
    %22 = arith.mulf %19, %21 : vector<16x512xf32>
    %23 = arith.truncf %22 : vector<16x512xf32> to vector<16x512xbf16>
    %c16_i32 = arith.constant 16 : i32
    %24 = tpu.dynamic_rotate %1 by %c16_i32 dim 1 : vector<16x512xf32>, i32 -> vector<16x512xf32>
    %c1 = arith.constant 1 : index
    %c0_14 = arith.constant 0 : index
    %c0_15 = arith.constant 0 : index
    %25 = vector.load %arg2[%c1, %c0_14, %c0_15] : memref<9x16x512xf32, #tpu.memory_space<vmem>>, vector<1x16x512xf32>
    %26 = vector.shape_cast %25 : vector<1x16x512xf32> to vector<16x512xf32>
    %27 = arith.mulf %24, %26 : vector<16x512xf32>
    %28 = arith.truncf %27 : vector<16x512xf32> to vector<16x512xbf16>
    %c15_i32 = arith.constant 15 : i32
    %29 = tpu.dynamic_rotate %1 by %c15_i32 dim 1 : vector<16x512xf32>, i32 -> vector<16x512xf32>
    %c2 = arith.constant 2 : index
    %c0_16 = arith.constant 0 : index
    %c0_17 = arith.constant 0 : index
    %30 = vector.load %arg2[%c2, %c0_16, %c0_17] : memref<9x16x512xf32, #tpu.memory_space<vmem>>, vector<1x16x512xf32>
    %31 = vector.shape_cast %30 : vector<1x16x512xf32> to vector<16x512xf32>
    %32 = arith.mulf %29, %31 : vector<16x512xf32>
    %33 = arith.truncf %32 : vector<16x512xf32> to vector<16x512xbf16>
    %c1_i32 = arith.constant 1 : i32
    %34 = tpu.dynamic_rotate %1 by %c1_i32 dim 1 : vector<16x512xf32>, i32 -> vector<16x512xf32>
    %c3 = arith.constant 3 : index
    %c0_18 = arith.constant 0 : index
    %c0_19 = arith.constant 0 : index
    %35 = vector.load %arg2[%c3, %c0_18, %c0_19] : memref<9x16x512xf32, #tpu.memory_space<vmem>>, vector<1x16x512xf32>
    %36 = vector.shape_cast %35 : vector<1x16x512xf32> to vector<16x512xf32>
    %37 = arith.mulf %34, %36 : vector<16x512xf32>
    %38 = arith.truncf %37 : vector<16x512xf32> to vector<16x512xbf16>
    %39 = arith.truncf %1 : vector<16x512xf32> to vector<16x512xbf16>
    %c511_i32 = arith.constant 511 : i32
    %40 = tpu.dynamic_rotate %1 by %c511_i32 dim 1 : vector<16x512xf32>, i32 -> vector<16x512xf32>
    %c5 = arith.constant 5 : index
    %c0_20 = arith.constant 0 : index
    %c0_21 = arith.constant 0 : index
    %41 = vector.load %arg2[%c5, %c0_20, %c0_21] : memref<9x16x512xf32, #tpu.memory_space<vmem>>, vector<1x16x512xf32>
    %42 = vector.shape_cast %41 : vector<1x16x512xf32> to vector<16x512xf32>
    %43 = arith.mulf %40, %42 : vector<16x512xf32>
    %44 = arith.truncf %43 : vector<16x512xf32> to vector<16x512xbf16>
    %c497_i32 = arith.constant 497 : i32
    %45 = tpu.dynamic_rotate %1 by %c497_i32 dim 1 : vector<16x512xf32>, i32 -> vector<16x512xf32>
    %c6 = arith.constant 6 : index
    %c0_22 = arith.constant 0 : index
    %c0_23 = arith.constant 0 : index
    %46 = vector.load %arg2[%c6, %c0_22, %c0_23] : memref<9x16x512xf32, #tpu.memory_space<vmem>>, vector<1x16x512xf32>
    %47 = vector.shape_cast %46 : vector<1x16x512xf32> to vector<16x512xf32>
    %48 = arith.mulf %45, %47 : vector<16x512xf32>
    %49 = arith.truncf %48 : vector<16x512xf32> to vector<16x512xbf16>
    %c496_i32 = arith.constant 496 : i32
    %50 = tpu.dynamic_rotate %1 by %c496_i32 dim 1 : vector<16x512xf32>, i32 -> vector<16x512xf32>
    %c7 = arith.constant 7 : index
    %c0_24 = arith.constant 0 : index
    %c0_25 = arith.constant 0 : index
    %51 = vector.load %arg2[%c7, %c0_24, %c0_25] : memref<9x16x512xf32, #tpu.memory_space<vmem>>, vector<1x16x512xf32>
    %52 = vector.shape_cast %51 : vector<1x16x512xf32> to vector<16x512xf32>
    %53 = arith.mulf %50, %52 : vector<16x512xf32>
    %54 = arith.truncf %53 : vector<16x512xf32> to vector<16x512xbf16>
    %c495_i32 = arith.constant 495 : i32
    %55 = tpu.dynamic_rotate %1 by %c495_i32 dim 1 : vector<16x512xf32>, i32 -> vector<16x512xf32>
    %c8 = arith.constant 8 : index
    %c0_26 = arith.constant 0 : index
    %c0_27 = arith.constant 0 : index
    %56 = vector.load %arg2[%c8, %c0_26, %c0_27] : memref<9x16x512xf32, #tpu.memory_space<vmem>>, vector<1x16x512xf32>
    %57 = vector.shape_cast %56 : vector<1x16x512xf32> to vector<16x512xf32>
    %58 = arith.mulf %55, %57 : vector<16x512xf32>
    %59 = arith.truncf %58 : vector<16x512xf32> to vector<16x512xbf16>
    %60 = tpu.concatenate %23, %28, %33, %38, %39, %44, %49, %54, %59 in 0 : vector<16x512xbf16>, vector<16x512xbf16>, vector<16x512xbf16>, vector<16x512xbf16>, vector<16x512xbf16>, vector<16x512xbf16>, vector<16x512xbf16>, vector<16x512xbf16>, vector<16x512xbf16> -> vector<144x512xbf16>
    %c0_28 = arith.constant 0 : index
    %c0_29 = arith.constant 0 : index
    %c0_30 = arith.constant 0 : index
    %61 = vector.load %arg3[%c0_28, %c0_29, %c0_30] : memref<5x16x144xbf16, #tpu.memory_space<vmem>>, vector<1x16x144xbf16>
    %62 = vector.shape_cast %61 : vector<1x16x144xbf16> to vector<16x144xbf16>
    %cst = arith.constant dense<0.000000e+00> : vector<16x512xf32>
    %63 = tpu.matmul %62, %60, %cst {dimension_numbers = #tpu.dot_dimension_numbers<[1], [0], [0], [1], [0, 0, 1, 1], [], []>} : vector<16x144xbf16>, vector<144x512xbf16>, vector<16x512xf32> -> vector<16x512xf32>
    %c0_31 = arith.constant 0 : index
    %c0_32 = arith.constant 0 : index
    %c0_33 = arith.constant 0 : index
    %64 = vector.load %arg4[%c0_31, %c0_32, %c0_33] : memref<5x16x1xf32, #tpu.memory_space<vmem>>, vector<1x16x1xf32>
    %65 = vector.shape_cast %64 : vector<1x16x1xf32> to vector<16x1xf32>
    %66 = vector.broadcast %65 : vector<16x1xf32> to vector<16x512xf32>
    %67 = arith.addf %63, %66 : vector<16x512xf32>
    %cst_34 = arith.constant 0.000000e+00 : f32
    %68 = vector.broadcast %cst_34 : f32 to vector<16x512xf32>
    %69 = arith.cmpf oge, %67, %68 : vector<16x512xf32>
    %70 = vector.broadcast %8 : vector<16x1xf32> to vector<16x512xf32>
    %71 = arith.mulf %70, %67 : vector<16x512xf32>
    %72 = arith.select %69, %67, %71 : vector<16x512xi1>, vector<16x512xf32>
    %73 = arith.addf %72, %1 : vector<16x512xf32>
    %c17_i32_35 = arith.constant 17 : i32
    %74 = tpu.dynamic_rotate %73 by %c17_i32_35 dim 1 : vector<16x512xf32>, i32 -> vector<16x512xf32>
    %c0_36 = arith.constant 0 : index
    %c0_37 = arith.constant 0 : index
    %c0_38 = arith.constant 0 : index
    %75 = vector.load %arg2[%c0_36, %c0_37, %c0_38] : memref<9x16x512xf32, #tpu.memory_space<vmem>>, vector<1x16x512xf32>
    %76 = vector.shape_cast %75 : vector<1x16x512xf32> to vector<16x512xf32>
    %77 = arith.mulf %74, %76 : vector<16x512xf32>
    %78 = arith.truncf %77 : vector<16x512xf32> to vector<16x512xbf16>
    %c16_i32_39 = arith.constant 16 : i32
    %79 = tpu.dynamic_rotate %73 by %c16_i32_39 dim 1 : vector<16x512xf32>, i32 -> vector<16x512xf32>
    %c1_40 = arith.constant 1 : index
    %c0_41 = arith.constant 0 : index
    %c0_42 = arith.constant 0 : index
    %80 = vector.load %arg2[%c1_40, %c0_41, %c0_42] : memref<9x16x512xf32, #tpu.memory_space<vmem>>, vector<1x16x512xf32>
    %81 = vector.shape_cast %80 : vector<1x16x512xf32> to vector<16x512xf32>
    %82 = arith.mulf %79, %81 : vector<16x512xf32>
    %83 = arith.truncf %82 : vector<16x512xf32> to vector<16x512xbf16>
    %c15_i32_43 = arith.constant 15 : i32
    %84 = tpu.dynamic_rotate %73 by %c15_i32_43 dim 1 : vector<16x512xf32>, i32 -> vector<16x512xf32>
    %c2_44 = arith.constant 2 : index
    %c0_45 = arith.constant 0 : index
    %c0_46 = arith.constant 0 : index
    %85 = vector.load %arg2[%c2_44, %c0_45, %c0_46] : memref<9x16x512xf32, #tpu.memory_space<vmem>>, vector<1x16x512xf32>
    %86 = vector.shape_cast %85 : vector<1x16x512xf32> to vector<16x512xf32>
    %87 = arith.mulf %84, %86 : vector<16x512xf32>
    %88 = arith.truncf %87 : vector<16x512xf32> to vector<16x512xbf16>
    %c1_i32_47 = arith.constant 1 : i32
    %89 = tpu.dynamic_rotate %73 by %c1_i32_47 dim 1 : vector<16x512xf32>, i32 -> vector<16x512xf32>
    %c3_48 = arith.constant 3 : index
    %c0_49 = arith.constant 0 : index
    %c0_50 = arith.constant 0 : index
    %90 = vector.load %arg2[%c3_48, %c0_49, %c0_50] : memref<9x16x512xf32, #tpu.memory_space<vmem>>, vector<1x16x512xf32>
    %91 = vector.shape_cast %90 : vector<1x16x512xf32> to vector<16x512xf32>
    %92 = arith.mulf %89, %91 : vector<16x512xf32>
    %93 = arith.truncf %92 : vector<16x512xf32> to vector<16x512xbf16>
    %94 = arith.truncf %73 : vector<16x512xf32> to vector<16x512xbf16>
    %c511_i32_51 = arith.constant 511 : i32
    %95 = tpu.dynamic_rotate %73 by %c511_i32_51 dim 1 : vector<16x512xf32>, i32 -> vector<16x512xf32>
    %c5_52 = arith.constant 5 : index
    %c0_53 = arith.constant 0 : index
    %c0_54 = arith.constant 0 : index
    %96 = vector.load %arg2[%c5_52, %c0_53, %c0_54] : memref<9x16x512xf32, #tpu.memory_space<vmem>>, vector<1x16x512xf32>
    %97 = vector.shape_cast %96 : vector<1x16x512xf32> to vector<16x512xf32>
    %98 = arith.mulf %95, %97 : vector<16x512xf32>
    %99 = arith.truncf %98 : vector<16x512xf32> to vector<16x512xbf16>
    %c497_i32_55 = arith.constant 497 : i32
    %100 = tpu.dynamic_rotate %73 by %c497_i32_55 dim 1 : vector<16x512xf32>, i32 -> vector<16x512xf32>
    %c6_56 = arith.constant 6 : index
    %c0_57 = arith.constant 0 : index
    %c0_58 = arith.constant 0 : index
    %101 = vector.load %arg2[%c6_56, %c0_57, %c0_58] : memref<9x16x512xf32, #tpu.memory_space<vmem>>, vector<1x16x512xf32>
    %102 = vector.shape_cast %101 : vector<1x16x512xf32> to vector<16x512xf32>
    %103 = arith.mulf %100, %102 : vector<16x512xf32>
    %104 = arith.truncf %103 : vector<16x512xf32> to vector<16x512xbf16>
    %c496_i32_59 = arith.constant 496 : i32
    %105 = tpu.dynamic_rotate %73 by %c496_i32_59 dim 1 : vector<16x512xf32>, i32 -> vector<16x512xf32>
    %c7_60 = arith.constant 7 : index
    %c0_61 = arith.constant 0 : index
    %c0_62 = arith.constant 0 : index
    %106 = vector.load %arg2[%c7_60, %c0_61, %c0_62] : memref<9x16x512xf32, #tpu.memory_space<vmem>>, vector<1x16x512xf32>
    %107 = vector.shape_cast %106 : vector<1x16x512xf32> to vector<16x512xf32>
    %108 = arith.mulf %105, %107 : vector<16x512xf32>
    %109 = arith.truncf %108 : vector<16x512xf32> to vector<16x512xbf16>
    %c495_i32_63 = arith.constant 495 : i32
    %110 = tpu.dynamic_rotate %73 by %c495_i32_63 dim 1 : vector<16x512xf32>, i32 -> vector<16x512xf32>
    %c8_64 = arith.constant 8 : index
    %c0_65 = arith.constant 0 : index
    %c0_66 = arith.constant 0 : index
    %111 = vector.load %arg2[%c8_64, %c0_65, %c0_66] : memref<9x16x512xf32, #tpu.memory_space<vmem>>, vector<1x16x512xf32>
    %112 = vector.shape_cast %111 : vector<1x16x512xf32> to vector<16x512xf32>
    %113 = arith.mulf %110, %112 : vector<16x512xf32>
    %114 = arith.truncf %113 : vector<16x512xf32> to vector<16x512xbf16>
    %115 = tpu.concatenate %78, %83, %88, %93, %94, %99, %104, %109, %114 in 0 : vector<16x512xbf16>, vector<16x512xbf16>, vector<16x512xbf16>, vector<16x512xbf16>, vector<16x512xbf16>, vector<16x512xbf16>, vector<16x512xbf16>, vector<16x512xbf16>, vector<16x512xbf16> -> vector<144x512xbf16>
    %c1_67 = arith.constant 1 : index
    %c0_68 = arith.constant 0 : index
    %c0_69 = arith.constant 0 : index
    %116 = vector.load %arg3[%c1_67, %c0_68, %c0_69] : memref<5x16x144xbf16, #tpu.memory_space<vmem>>, vector<1x16x144xbf16>
    %117 = vector.shape_cast %116 : vector<1x16x144xbf16> to vector<16x144xbf16>
    %cst_70 = arith.constant dense<0.000000e+00> : vector<16x512xf32>
    %118 = tpu.matmul %117, %115, %cst_70 {dimension_numbers = #tpu.dot_dimension_numbers<[1], [0], [0], [1], [0, 0, 1, 1], [], []>} : vector<16x144xbf16>, vector<144x512xbf16>, vector<16x512xf32> -> vector<16x512xf32>
    %c1_71 = arith.constant 1 : index
    %c0_72 = arith.constant 0 : index
    %c0_73 = arith.constant 0 : index
    %119 = vector.load %arg4[%c1_71, %c0_72, %c0_73] : memref<5x16x1xf32, #tpu.memory_space<vmem>>, vector<1x16x1xf32>
    %120 = vector.shape_cast %119 : vector<1x16x1xf32> to vector<16x1xf32>
    %121 = vector.broadcast %120 : vector<16x1xf32> to vector<16x512xf32>
    %122 = arith.addf %118, %121 : vector<16x512xf32>
    %123 = vector.extract_strided_slice %122 {offsets = [0, 0], sizes = [16, 256], strides = [1, 1]} : vector<16x512xf32> to vector<16x256xf32>
    %cst_74 = arith.constant dense<0.000000e+00> : vector<16xf32>
    %124 = vector.multi_reduction <add>, %123, %cst_74 [1] : vector<16x256xf32> to vector<16xf32>
    %125 = vector.shape_cast %124 : vector<16xf32> to vector<16x1xf32>
    %cst_75 = arith.constant 2.560000e+02 : f32
    %126 = vector.broadcast %cst_75 : f32 to vector<16x1xf32>
    %127 = arith.divf %125, %126 : vector<16x1xf32>
    %cst_76 = arith.constant dense<0.000000e+00> : vector<8x1xf32>
    %128 = tpu.matmul %11, %127, %cst_76 {dimension_numbers = #tpu.dot_dimension_numbers<[1], [0], [0], [1], [0, 0, 1, 1], [], []>} : vector<8x16xf32>, vector<16x1xf32>, vector<8x1xf32> -> vector<8x1xf32>
    %129 = arith.addf %128, %12 : vector<8x1xf32>
    %cst_77 = arith.constant 0.000000e+00 : f32
    %130 = vector.broadcast %cst_77 : f32 to vector<8x1xf32>
    %131 = arith.cmpf oge, %129, %130 : vector<8x1xf32>
    %132 = arith.mulf %13, %129 : vector<8x1xf32>
    %133 = arith.select %131, %129, %132 : vector<8x1xi1>, vector<8x1xf32>
    %cst_78 = arith.constant dense<0.000000e+00> : vector<16x1xf32>
    %134 = tpu.matmul %10, %133, %cst_78 {dimension_numbers = #tpu.dot_dimension_numbers<[1], [0], [0], [1], [0, 0, 1, 1], [], []>} : vector<16x8xf32>, vector<8x1xf32>, vector<16x1xf32> -> vector<16x1xf32>
    %135 = arith.addf %134, %9 : vector<16x1xf32>
    %cst_79 = arith.constant 0.000000e+00 : f32
    %136 = vector.broadcast %cst_79 : f32 to vector<16x1xf32>
    %137 = arith.subf %136, %135 : vector<16x1xf32>
    %138 = math.exp %137 : vector<16x1xf32>
    %cst_80 = arith.constant 1.000000e+00 : f32
    %139 = vector.broadcast %cst_80 : f32 to vector<16x1xf32>
    %140 = arith.addf %139, %138 : vector<16x1xf32>
    %cst_81 = arith.constant 1.000000e+00 : f32
    %141 = vector.broadcast %cst_81 : f32 to vector<16x1xf32>
    %142 = arith.divf %141, %140 : vector<16x1xf32>
    %143 = vector.broadcast %142 : vector<16x1xf32> to vector<16x256xf32>
    %144 = arith.mulf %123, %143 : vector<16x256xf32>
    %145 = vector.extract_strided_slice %122 {offsets = [0, 256], sizes = [16, 256], strides = [1, 1]} : vector<16x512xf32> to vector<16x256xf32>
    %cst_82 = arith.constant dense<0.000000e+00> : vector<16xf32>
    %146 = vector.multi_reduction <add>, %145, %cst_82 [1] : vector<16x256xf32> to vector<16xf32>
    %147 = vector.shape_cast %146 : vector<16xf32> to vector<16x1xf32>
    %cst_83 = arith.constant 2.560000e+02 : f32
    %148 = vector.broadcast %cst_83 : f32 to vector<16x1xf32>
    %149 = arith.divf %147, %148 : vector<16x1xf32>
    %cst_84 = arith.constant dense<0.000000e+00> : vector<8x1xf32>
    %150 = tpu.matmul %11, %149, %cst_84 {dimension_numbers = #tpu.dot_dimension_numbers<[1], [0], [0], [1], [0, 0, 1, 1], [], []>} : vector<8x16xf32>, vector<16x1xf32>, vector<8x1xf32> -> vector<8x1xf32>
    %151 = arith.addf %150, %12 : vector<8x1xf32>
    %cst_85 = arith.constant 0.000000e+00 : f32
    %152 = vector.broadcast %cst_85 : f32 to vector<8x1xf32>
    %153 = arith.cmpf oge, %151, %152 : vector<8x1xf32>
    %154 = arith.mulf %13, %151 : vector<8x1xf32>
    %155 = arith.select %153, %151, %154 : vector<8x1xi1>, vector<8x1xf32>
    %cst_86 = arith.constant dense<0.000000e+00> : vector<16x1xf32>
    %156 = tpu.matmul %10, %155, %cst_86 {dimension_numbers = #tpu.dot_dimension_numbers<[1], [0], [0], [1], [0, 0, 1, 1], [], []>} : vector<16x8xf32>, vector<8x1xf32>, vector<16x1xf32> -> vector<16x1xf32>
    %157 = arith.addf %156, %9 : vector<16x1xf32>
    %cst_87 = arith.constant 0.000000e+00 : f32
    %158 = vector.broadcast %cst_87 : f32 to vector<16x1xf32>
    %159 = arith.subf %158, %157 : vector<16x1xf32>
    %160 = math.exp %159 : vector<16x1xf32>
    %cst_88 = arith.constant 1.000000e+00 : f32
    %161 = vector.broadcast %cst_88 : f32 to vector<16x1xf32>
    %162 = arith.addf %161, %160 : vector<16x1xf32>
    %cst_89 = arith.constant 1.000000e+00 : f32
    %163 = vector.broadcast %cst_89 : f32 to vector<16x1xf32>
    %164 = arith.divf %163, %162 : vector<16x1xf32>
    %165 = vector.broadcast %164 : vector<16x1xf32> to vector<16x256xf32>
    %166 = arith.mulf %145, %165 : vector<16x256xf32>
    %167 = tpu.concatenate %144, %166 in 1 : vector<16x256xf32>, vector<16x256xf32> -> vector<16x512xf32>
    %cst_90 = arith.constant dense<0.000000e+00> : vector<8x512xf32>
    %168 = tpu.matmul %14, %167, %cst_90 {dimension_numbers = #tpu.dot_dimension_numbers<[1], [0], [0], [1], [0, 0, 1, 1], [], []>} : vector<8x16xf32>, vector<16x512xf32>, vector<8x512xf32> -> vector<8x512xf32>
    %169 = vector.broadcast %15 : vector<8x1xf32> to vector<8x512xf32>
    %170 = arith.addf %168, %169 : vector<8x512xf32>
    %cst_91 = arith.constant 0.000000e+00 : f32
    %171 = vector.broadcast %cst_91 : f32 to vector<8x512xf32>
    %172 = arith.cmpf oge, %170, %171 : vector<8x512xf32>
    %173 = vector.broadcast %16 : vector<8x1xf32> to vector<8x512xf32>
    %174 = arith.mulf %173, %170 : vector<8x512xf32>
    %175 = arith.select %172, %170, %174 : vector<8x512xi1>, vector<8x512xf32>
    %cst_92 = arith.constant dense<0.000000e+00> : vector<1x512xf32>
    %176 = tpu.matmul %17, %175, %cst_92 {dimension_numbers = #tpu.dot_dimension_numbers<[1], [0], [0], [1], [0, 0, 1, 1], [], []>} : vector<1x8xf32>, vector<8x512xf32>, vector<1x512xf32> -> vector<1x512xf32>
    %177 = vector.broadcast %18 : vector<1x1xf32> to vector<1x512xf32>
    %178 = arith.addf %176, %177 : vector<1x512xf32>
    %cst_93 = arith.constant 0.000000e+00 : f32
    %179 = vector.broadcast %cst_93 : f32 to vector<1x512xf32>
    %180 = arith.subf %179, %178 : vector<1x512xf32>
    %181 = math.exp %180 : vector<1x512xf32>
    %cst_94 = arith.constant 1.000000e+00 : f32
    %182 = vector.broadcast %cst_94 : f32 to vector<1x512xf32>
    %183 = arith.addf %182, %181 : vector<1x512xf32>
    %cst_95 = arith.constant 1.000000e+00 : f32
    %184 = vector.broadcast %cst_95 : f32 to vector<1x512xf32>
    %185 = arith.divf %184, %183 : vector<1x512xf32>
    %186 = vector.broadcast %185 : vector<1x512xf32> to vector<16x512xf32>
    %187 = arith.mulf %167, %186 : vector<16x512xf32>
    %cst_96 = arith.constant 2.000000e+00 : f32
    %188 = vector.broadcast %cst_96 : f32 to vector<16x512xf32>
    %189 = arith.mulf %188, %1 : vector<16x512xf32>
    %190 = arith.addf %187, %189 : vector<16x512xf32>
    %c1_97 = arith.constant 1 : index
    %c0_98 = arith.constant 0 : index
    %c0_99 = arith.constant 0 : index
    %191 = vector.load %arg5[%c1_97, %c0_98, %c0_99] : memref<2x16x10xf32, #tpu.memory_space<vmem>>, vector<1x16x10xf32>
    %192 = vector.shape_cast %191 : vector<1x16x10xf32> to vector<16x10xf32>
    %c1_100 = arith.constant 1 : index
    %c0_101 = arith.constant 0 : index
    %c0_102 = arith.constant 0 : index
    %193 = vector.load %arg6[%c1_100, %c0_101, %c0_102] : memref<2x8x36xf32, #tpu.memory_space<vmem>>, vector<1x8x36xf32>
    %194 = vector.shape_cast %193 : vector<1x8x36xf32> to vector<8x36xf32>
    %c1_103 = arith.constant 1 : index
    %c0_104 = arith.constant 0 : index
    %c0_105 = arith.constant 0 : index
    %195 = vector.load %arg7[%c1_103, %c0_104, %c0_105] : memref<2x1x9xf32, #tpu.memory_space<vmem>>, vector<1x1x9xf32>
    %196 = vector.shape_cast %195 : vector<1x1x9xf32> to vector<1x9xf32>
    %197 = vector.extract_strided_slice %192 {offsets = [0, 0], sizes = [16, 1], strides = [1, 1]} : vector<16x10xf32> to vector<16x1xf32>
    %198 = vector.extract_strided_slice %192 {offsets = [0, 1], sizes = [16, 1], strides = [1, 1]} : vector<16x10xf32> to vector<16x1xf32>
    %199 = vector.extract_strided_slice %192 {offsets = [0, 2], sizes = [16, 8], strides = [1, 1]} : vector<16x10xf32> to vector<16x8xf32>
    %200 = vector.extract_strided_slice %194 {offsets = [0, 0], sizes = [8, 16], strides = [1, 1]} : vector<8x36xf32> to vector<8x16xf32>
    %201 = vector.extract_strided_slice %194 {offsets = [0, 16], sizes = [8, 1], strides = [1, 1]} : vector<8x36xf32> to vector<8x1xf32>
    %202 = vector.extract_strided_slice %194 {offsets = [0, 17], sizes = [8, 1], strides = [1, 1]} : vector<8x36xf32> to vector<8x1xf32>
    %203 = vector.extract_strided_slice %194 {offsets = [0, 18], sizes = [8, 16], strides = [1, 1]} : vector<8x36xf32> to vector<8x16xf32>
    %204 = vector.extract_strided_slice %194 {offsets = [0, 34], sizes = [8, 1], strides = [1, 1]} : vector<8x36xf32> to vector<8x1xf32>
    %205 = vector.extract_strided_slice %194 {offsets = [0, 35], sizes = [8, 1], strides = [1, 1]} : vector<8x36xf32> to vector<8x1xf32>
    %206 = vector.extract_strided_slice %196 {offsets = [0, 0], sizes = [1, 8], strides = [1, 1]} : vector<1x9xf32> to vector<1x8xf32>
    %207 = vector.extract_strided_slice %196 {offsets = [0, 8], sizes = [1, 1], strides = [1, 1]} : vector<1x9xf32> to vector<1x1xf32>
    %c17_i32_106 = arith.constant 17 : i32
    %208 = tpu.dynamic_rotate %190 by %c17_i32_106 dim 1 : vector<16x512xf32>, i32 -> vector<16x512xf32>
    %c0_107 = arith.constant 0 : index
    %c0_108 = arith.constant 0 : index
    %c0_109 = arith.constant 0 : index
    %209 = vector.load %arg2[%c0_107, %c0_108, %c0_109] : memref<9x16x512xf32, #tpu.memory_space<vmem>>, vector<1x16x512xf32>
    %210 = vector.shape_cast %209 : vector<1x16x512xf32> to vector<16x512xf32>
    %211 = arith.mulf %208, %210 : vector<16x512xf32>
    %212 = arith.truncf %211 : vector<16x512xf32> to vector<16x512xbf16>
    %c16_i32_110 = arith.constant 16 : i32
    %213 = tpu.dynamic_rotate %190 by %c16_i32_110 dim 1 : vector<16x512xf32>, i32 -> vector<16x512xf32>
    %c1_111 = arith.constant 1 : index
    %c0_112 = arith.constant 0 : index
    %c0_113 = arith.constant 0 : index
    %214 = vector.load %arg2[%c1_111, %c0_112, %c0_113] : memref<9x16x512xf32, #tpu.memory_space<vmem>>, vector<1x16x512xf32>
    %215 = vector.shape_cast %214 : vector<1x16x512xf32> to vector<16x512xf32>
    %216 = arith.mulf %213, %215 : vector<16x512xf32>
    %217 = arith.truncf %216 : vector<16x512xf32> to vector<16x512xbf16>
    %c15_i32_114 = arith.constant 15 : i32
    %218 = tpu.dynamic_rotate %190 by %c15_i32_114 dim 1 : vector<16x512xf32>, i32 -> vector<16x512xf32>
    %c2_115 = arith.constant 2 : index
    %c0_116 = arith.constant 0 : index
    %c0_117 = arith.constant 0 : index
    %219 = vector.load %arg2[%c2_115, %c0_116, %c0_117] : memref<9x16x512xf32, #tpu.memory_space<vmem>>, vector<1x16x512xf32>
    %220 = vector.shape_cast %219 : vector<1x16x512xf32> to vector<16x512xf32>
    %221 = arith.mulf %218, %220 : vector<16x512xf32>
    %222 = arith.truncf %221 : vector<16x512xf32> to vector<16x512xbf16>
    %c1_i32_118 = arith.constant 1 : i32
    %223 = tpu.dynamic_rotate %190 by %c1_i32_118 dim 1 : vector<16x512xf32>, i32 -> vector<16x512xf32>
    %c3_119 = arith.constant 3 : index
    %c0_120 = arith.constant 0 : index
    %c0_121 = arith.constant 0 : index
    %224 = vector.load %arg2[%c3_119, %c0_120, %c0_121] : memref<9x16x512xf32, #tpu.memory_space<vmem>>, vector<1x16x512xf32>
    %225 = vector.shape_cast %224 : vector<1x16x512xf32> to vector<16x512xf32>
    %226 = arith.mulf %223, %225 : vector<16x512xf32>
    %227 = arith.truncf %226 : vector<16x512xf32> to vector<16x512xbf16>
    %228 = arith.truncf %190 : vector<16x512xf32> to vector<16x512xbf16>
    %c511_i32_122 = arith.constant 511 : i32
    %229 = tpu.dynamic_rotate %190 by %c511_i32_122 dim 1 : vector<16x512xf32>, i32 -> vector<16x512xf32>
    %c5_123 = arith.constant 5 : index
    %c0_124 = arith.constant 0 : index
    %c0_125 = arith.constant 0 : index
    %230 = vector.load %arg2[%c5_123, %c0_124, %c0_125] : memref<9x16x512xf32, #tpu.memory_space<vmem>>, vector<1x16x512xf32>
    %231 = vector.shape_cast %230 : vector<1x16x512xf32> to vector<16x512xf32>
    %232 = arith.mulf %229, %231 : vector<16x512xf32>
    %233 = arith.truncf %232 : vector<16x512xf32> to vector<16x512xbf16>
    %c497_i32_126 = arith.constant 497 : i32
    %234 = tpu.dynamic_rotate %190 by %c497_i32_126 dim 1 : vector<16x512xf32>, i32 -> vector<16x512xf32>
    %c6_127 = arith.constant 6 : index
    %c0_128 = arith.constant 0 : index
    %c0_129 = arith.constant 0 : index
    %235 = vector.load %arg2[%c6_127, %c0_128, %c0_129] : memref<9x16x512xf32, #tpu.memory_space<vmem>>, vector<1x16x512xf32>
    %236 = vector.shape_cast %235 : vector<1x16x512xf32> to vector<16x512xf32>
    %237 = arith.mulf %234, %236 : vector<16x512xf32>
    %238 = arith.truncf %237 : vector<16x512xf32> to vector<16x512xbf16>
    %c496_i32_130 = arith.constant 496 : i32
    %239 = tpu.dynamic_rotate %190 by %c496_i32_130 dim 1 : vector<16x512xf32>, i32 -> vector<16x512xf32>
    %c7_131 = arith.constant 7 : index
    %c0_132 = arith.constant 0 : index
    %c0_133 = arith.constant 0 : index
    %240 = vector.load %arg2[%c7_131, %c0_132, %c0_133] : memref<9x16x512xf32, #tpu.memory_space<vmem>>, vector<1x16x512xf32>
    %241 = vector.shape_cast %240 : vector<1x16x512xf32> to vector<16x512xf32>
    %242 = arith.mulf %239, %241 : vector<16x512xf32>
    %243 = arith.truncf %242 : vector<16x512xf32> to vector<16x512xbf16>
    %c495_i32_134 = arith.constant 495 : i32
    %244 = tpu.dynamic_rotate %190 by %c495_i32_134 dim 1 : vector<16x512xf32>, i32 -> vector<16x512xf32>
    %c8_135 = arith.constant 8 : index
    %c0_136 = arith.constant 0 : index
    %c0_137 = arith.constant 0 : index
    %245 = vector.load %arg2[%c8_135, %c0_136, %c0_137] : memref<9x16x512xf32, #tpu.memory_space<vmem>>, vector<1x16x512xf32>
    %246 = vector.shape_cast %245 : vector<1x16x512xf32> to vector<16x512xf32>
    %247 = arith.mulf %244, %246 : vector<16x512xf32>
    %248 = arith.truncf %247 : vector<16x512xf32> to vector<16x512xbf16>
    %249 = tpu.concatenate %212, %217, %222, %227, %228, %233, %238, %243, %248 in 0 : vector<16x512xbf16>, vector<16x512xbf16>, vector<16x512xbf16>, vector<16x512xbf16>, vector<16x512xbf16>, vector<16x512xbf16>, vector<16x512xbf16>, vector<16x512xbf16>, vector<16x512xbf16> -> vector<144x512xbf16>
    %c2_138 = arith.constant 2 : index
    %c0_139 = arith.constant 0 : index
    %c0_140 = arith.constant 0 : index
    %250 = vector.load %arg3[%c2_138, %c0_139, %c0_140] : memref<5x16x144xbf16, #tpu.memory_space<vmem>>, vector<1x16x144xbf16>
    %251 = vector.shape_cast %250 : vector<1x16x144xbf16> to vector<16x144xbf16>
    %cst_141 = arith.constant dense<0.000000e+00> : vector<16x512xf32>
    %252 = tpu.matmul %251, %249, %cst_141 {dimension_numbers = #tpu.dot_dimension_numbers<[1], [0], [0], [1], [0, 0, 1, 1], [], []>} : vector<16x144xbf16>, vector<144x512xbf16>, vector<16x512xf32> -> vector<16x512xf32>
    %c2_142 = arith.constant 2 : index
    %c0_143 = arith.constant 0 : index
    %c0_144 = arith.constant 0 : index
    %253 = vector.load %arg4[%c2_142, %c0_143, %c0_144] : memref<5x16x1xf32, #tpu.memory_space<vmem>>, vector<1x16x1xf32>
    %254 = vector.shape_cast %253 : vector<1x16x1xf32> to vector<16x1xf32>
    %255 = vector.broadcast %254 : vector<16x1xf32> to vector<16x512xf32>
    %256 = arith.addf %252, %255 : vector<16x512xf32>
    %cst_145 = arith.constant 0.000000e+00 : f32
    %257 = vector.broadcast %cst_145 : f32 to vector<16x512xf32>
    %258 = arith.cmpf oge, %256, %257 : vector<16x512xf32>
    %259 = vector.broadcast %197 : vector<16x1xf32> to vector<16x512xf32>
    %260 = arith.mulf %259, %256 : vector<16x512xf32>
    %261 = arith.select %258, %256, %260 : vector<16x512xi1>, vector<16x512xf32>
    %262 = arith.addf %261, %190 : vector<16x512xf32>
    %c17_i32_146 = arith.constant 17 : i32
    %263 = tpu.dynamic_rotate %262 by %c17_i32_146 dim 1 : vector<16x512xf32>, i32 -> vector<16x512xf32>
    %c0_147 = arith.constant 0 : index
    %c0_148 = arith.constant 0 : index
    %c0_149 = arith.constant 0 : index
    %264 = vector.load %arg2[%c0_147, %c0_148, %c0_149] : memref<9x16x512xf32, #tpu.memory_space<vmem>>, vector<1x16x512xf32>
    %265 = vector.shape_cast %264 : vector<1x16x512xf32> to vector<16x512xf32>
    %266 = arith.mulf %263, %265 : vector<16x512xf32>
    %267 = arith.truncf %266 : vector<16x512xf32> to vector<16x512xbf16>
    %c16_i32_150 = arith.constant 16 : i32
    %268 = tpu.dynamic_rotate %262 by %c16_i32_150 dim 1 : vector<16x512xf32>, i32 -> vector<16x512xf32>
    %c1_151 = arith.constant 1 : index
    %c0_152 = arith.constant 0 : index
    %c0_153 = arith.constant 0 : index
    %269 = vector.load %arg2[%c1_151, %c0_152, %c0_153] : memref<9x16x512xf32, #tpu.memory_space<vmem>>, vector<1x16x512xf32>
    %270 = vector.shape_cast %269 : vector<1x16x512xf32> to vector<16x512xf32>
    %271 = arith.mulf %268, %270 : vector<16x512xf32>
    %272 = arith.truncf %271 : vector<16x512xf32> to vector<16x512xbf16>
    %c15_i32_154 = arith.constant 15 : i32
    %273 = tpu.dynamic_rotate %262 by %c15_i32_154 dim 1 : vector<16x512xf32>, i32 -> vector<16x512xf32>
    %c2_155 = arith.constant 2 : index
    %c0_156 = arith.constant 0 : index
    %c0_157 = arith.constant 0 : index
    %274 = vector.load %arg2[%c2_155, %c0_156, %c0_157] : memref<9x16x512xf32, #tpu.memory_space<vmem>>, vector<1x16x512xf32>
    %275 = vector.shape_cast %274 : vector<1x16x512xf32> to vector<16x512xf32>
    %276 = arith.mulf %273, %275 : vector<16x512xf32>
    %277 = arith.truncf %276 : vector<16x512xf32> to vector<16x512xbf16>
    %c1_i32_158 = arith.constant 1 : i32
    %278 = tpu.dynamic_rotate %262 by %c1_i32_158 dim 1 : vector<16x512xf32>, i32 -> vector<16x512xf32>
    %c3_159 = arith.constant 3 : index
    %c0_160 = arith.constant 0 : index
    %c0_161 = arith.constant 0 : index
    %279 = vector.load %arg2[%c3_159, %c0_160, %c0_161] : memref<9x16x512xf32, #tpu.memory_space<vmem>>, vector<1x16x512xf32>
    %280 = vector.shape_cast %279 : vector<1x16x512xf32> to vector<16x512xf32>
    %281 = arith.mulf %278, %280 : vector<16x512xf32>
    %282 = arith.truncf %281 : vector<16x512xf32> to vector<16x512xbf16>
    %283 = arith.truncf %262 : vector<16x512xf32> to vector<16x512xbf16>
    %c511_i32_162 = arith.constant 511 : i32
    %284 = tpu.dynamic_rotate %262 by %c511_i32_162 dim 1 : vector<16x512xf32>, i32 -> vector<16x512xf32>
    %c5_163 = arith.constant 5 : index
    %c0_164 = arith.constant 0 : index
    %c0_165 = arith.constant 0 : index
    %285 = vector.load %arg2[%c5_163, %c0_164, %c0_165] : memref<9x16x512xf32, #tpu.memory_space<vmem>>, vector<1x16x512xf32>
    %286 = vector.shape_cast %285 : vector<1x16x512xf32> to vector<16x512xf32>
    %287 = arith.mulf %284, %286 : vector<16x512xf32>
    %288 = arith.truncf %287 : vector<16x512xf32> to vector<16x512xbf16>
    %c497_i32_166 = arith.constant 497 : i32
    %289 = tpu.dynamic_rotate %262 by %c497_i32_166 dim 1 : vector<16x512xf32>, i32 -> vector<16x512xf32>
    %c6_167 = arith.constant 6 : index
    %c0_168 = arith.constant 0 : index
    %c0_169 = arith.constant 0 : index
    %290 = vector.load %arg2[%c6_167, %c0_168, %c0_169] : memref<9x16x512xf32, #tpu.memory_space<vmem>>, vector<1x16x512xf32>
    %291 = vector.shape_cast %290 : vector<1x16x512xf32> to vector<16x512xf32>
    %292 = arith.mulf %289, %291 : vector<16x512xf32>
    %293 = arith.truncf %292 : vector<16x512xf32> to vector<16x512xbf16>
    %c496_i32_170 = arith.constant 496 : i32
    %294 = tpu.dynamic_rotate %262 by %c496_i32_170 dim 1 : vector<16x512xf32>, i32 -> vector<16x512xf32>
    %c7_171 = arith.constant 7 : index
    %c0_172 = arith.constant 0 : index
    %c0_173 = arith.constant 0 : index
    %295 = vector.load %arg2[%c7_171, %c0_172, %c0_173] : memref<9x16x512xf32, #tpu.memory_space<vmem>>, vector<1x16x512xf32>
    %296 = vector.shape_cast %295 : vector<1x16x512xf32> to vector<16x512xf32>
    %297 = arith.mulf %294, %296 : vector<16x512xf32>
    %298 = arith.truncf %297 : vector<16x512xf32> to vector<16x512xbf16>
    %c495_i32_174 = arith.constant 495 : i32
    %299 = tpu.dynamic_rotate %262 by %c495_i32_174 dim 1 : vector<16x512xf32>, i32 -> vector<16x512xf32>
    %c8_175 = arith.constant 8 : index
    %c0_176 = arith.constant 0 : index
    %c0_177 = arith.constant 0 : index
    %300 = vector.load %arg2[%c8_175, %c0_176, %c0_177] : memref<9x16x512xf32, #tpu.memory_space<vmem>>, vector<1x16x512xf32>
    %301 = vector.shape_cast %300 : vector<1x16x512xf32> to vector<16x512xf32>
    %302 = arith.mulf %299, %301 : vector<16x512xf32>
    %303 = arith.truncf %302 : vector<16x512xf32> to vector<16x512xbf16>
    %304 = tpu.concatenate %267, %272, %277, %282, %283, %288, %293, %298, %303 in 0 : vector<16x512xbf16>, vector<16x512xbf16>, vector<16x512xbf16>, vector<16x512xbf16>, vector<16x512xbf16>, vector<16x512xbf16>, vector<16x512xbf16>, vector<16x512xbf16>, vector<16x512xbf16> -> vector<144x512xbf16>
    %c3_178 = arith.constant 3 : index
    %c0_179 = arith.constant 0 : index
    %c0_180 = arith.constant 0 : index
    %305 = vector.load %arg3[%c3_178, %c0_179, %c0_180] : memref<5x16x144xbf16, #tpu.memory_space<vmem>>, vector<1x16x144xbf16>
    %306 = vector.shape_cast %305 : vector<1x16x144xbf16> to vector<16x144xbf16>
    %cst_181 = arith.constant dense<0.000000e+00> : vector<16x512xf32>
    %307 = tpu.matmul %306, %304, %cst_181 {dimension_numbers = #tpu.dot_dimension_numbers<[1], [0], [0], [1], [0, 0, 1, 1], [], []>} : vector<16x144xbf16>, vector<144x512xbf16>, vector<16x512xf32> -> vector<16x512xf32>
    %c3_182 = arith.constant 3 : index
    %c0_183 = arith.constant 0 : index
    %c0_184 = arith.constant 0 : index
    %308 = vector.load %arg4[%c3_182, %c0_183, %c0_184] : memref<5x16x1xf32, #tpu.memory_space<vmem>>, vector<1x16x1xf32>
    %309 = vector.shape_cast %308 : vector<1x16x1xf32> to vector<16x1xf32>
    %310 = vector.broadcast %309 : vector<16x1xf32> to vector<16x512xf32>
    %311 = arith.addf %307, %310 : vector<16x512xf32>
    %312 = vector.extract_strided_slice %311 {offsets = [0, 0], sizes = [16, 256], strides = [1, 1]} : vector<16x512xf32> to vector<16x256xf32>
    %cst_185 = arith.constant dense<0.000000e+00> : vector<16xf32>
    %313 = vector.multi_reduction <add>, %312, %cst_185 [1] : vector<16x256xf32> to vector<16xf32>
    %314 = vector.shape_cast %313 : vector<16xf32> to vector<16x1xf32>
    %cst_186 = arith.constant 2.560000e+02 : f32
    %315 = vector.broadcast %cst_186 : f32 to vector<16x1xf32>
    %316 = arith.divf %314, %315 : vector<16x1xf32>
    %cst_187 = arith.constant dense<0.000000e+00> : vector<8x1xf32>
    %317 = tpu.matmul %200, %316, %cst_187 {dimension_numbers = #tpu.dot_dimension_numbers<[1], [0], [0], [1], [0, 0, 1, 1], [], []>} : vector<8x16xf32>, vector<16x1xf32>, vector<8x1xf32> -> vector<8x1xf32>
    %318 = arith.addf %317, %201 : vector<8x1xf32>
    %cst_188 = arith.constant 0.000000e+00 : f32
    %319 = vector.broadcast %cst_188 : f32 to vector<8x1xf32>
    %320 = arith.cmpf oge, %318, %319 : vector<8x1xf32>
    %321 = arith.mulf %202, %318 : vector<8x1xf32>
    %322 = arith.select %320, %318, %321 : vector<8x1xi1>, vector<8x1xf32>
    %cst_189 = arith.constant dense<0.000000e+00> : vector<16x1xf32>
    %323 = tpu.matmul %199, %322, %cst_189 {dimension_numbers = #tpu.dot_dimension_numbers<[1], [0], [0], [1], [0, 0, 1, 1], [], []>} : vector<16x8xf32>, vector<8x1xf32>, vector<16x1xf32> -> vector<16x1xf32>
    %324 = arith.addf %323, %198 : vector<16x1xf32>
    %cst_190 = arith.constant 0.000000e+00 : f32
    %325 = vector.broadcast %cst_190 : f32 to vector<16x1xf32>
    %326 = arith.subf %325, %324 : vector<16x1xf32>
    %327 = math.exp %326 : vector<16x1xf32>
    %cst_191 = arith.constant 1.000000e+00 : f32
    %328 = vector.broadcast %cst_191 : f32 to vector<16x1xf32>
    %329 = arith.addf %328, %327 : vector<16x1xf32>
    %cst_192 = arith.constant 1.000000e+00 : f32
    %330 = vector.broadcast %cst_192 : f32 to vector<16x1xf32>
    %331 = arith.divf %330, %329 : vector<16x1xf32>
    %332 = vector.broadcast %331 : vector<16x1xf32> to vector<16x256xf32>
    %333 = arith.mulf %312, %332 : vector<16x256xf32>
    %334 = vector.extract_strided_slice %311 {offsets = [0, 256], sizes = [16, 256], strides = [1, 1]} : vector<16x512xf32> to vector<16x256xf32>
    %cst_193 = arith.constant dense<0.000000e+00> : vector<16xf32>
    %335 = vector.multi_reduction <add>, %334, %cst_193 [1] : vector<16x256xf32> to vector<16xf32>
    %336 = vector.shape_cast %335 : vector<16xf32> to vector<16x1xf32>
    %cst_194 = arith.constant 2.560000e+02 : f32
    %337 = vector.broadcast %cst_194 : f32 to vector<16x1xf32>
    %338 = arith.divf %336, %337 : vector<16x1xf32>
    %cst_195 = arith.constant dense<0.000000e+00> : vector<8x1xf32>
    %339 = tpu.matmul %200, %338, %cst_195 {dimension_numbers = #tpu.dot_dimension_numbers<[1], [0], [0], [1], [0, 0, 1, 1], [], []>} : vector<8x16xf32>, vector<16x1xf32>, vector<8x1xf32> -> vector<8x1xf32>
    %340 = arith.addf %339, %201 : vector<8x1xf32>
    %cst_196 = arith.constant 0.000000e+00 : f32
    %341 = vector.broadcast %cst_196 : f32 to vector<8x1xf32>
    %342 = arith.cmpf oge, %340, %341 : vector<8x1xf32>
    %343 = arith.mulf %202, %340 : vector<8x1xf32>
    %344 = arith.select %342, %340, %343 : vector<8x1xi1>, vector<8x1xf32>
    %cst_197 = arith.constant dense<0.000000e+00> : vector<16x1xf32>
    %345 = tpu.matmul %199, %344, %cst_197 {dimension_numbers = #tpu.dot_dimension_numbers<[1], [0], [0], [1], [0, 0, 1, 1], [], []>} : vector<16x8xf32>, vector<8x1xf32>, vector<16x1xf32> -> vector<16x1xf32>
    %346 = arith.addf %345, %198 : vector<16x1xf32>
    %cst_198 = arith.constant 0.000000e+00 : f32
    %347 = vector.broadcast %cst_198 : f32 to vector<16x1xf32>
    %348 = arith.subf %347, %346 : vector<16x1xf32>
    %349 = math.exp %348 : vector<16x1xf32>
    %cst_199 = arith.constant 1.000000e+00 : f32
    %350 = vector.broadcast %cst_199 : f32 to vector<16x1xf32>
    %351 = arith.addf %350, %349 : vector<16x1xf32>
    %cst_200 = arith.constant 1.000000e+00 : f32
    %352 = vector.broadcast %cst_200 : f32 to vector<16x1xf32>
    %353 = arith.divf %352, %351 : vector<16x1xf32>
    %354 = vector.broadcast %353 : vector<16x1xf32> to vector<16x256xf32>
    %355 = arith.mulf %334, %354 : vector<16x256xf32>
    %356 = tpu.concatenate %333, %355 in 1 : vector<16x256xf32>, vector<16x256xf32> -> vector<16x512xf32>
    %cst_201 = arith.constant dense<0.000000e+00> : vector<8x512xf32>
    %357 = tpu.matmul %203, %356, %cst_201 {dimension_numbers = #tpu.dot_dimension_numbers<[1], [0], [0], [1], [0, 0, 1, 1], [], []>} : vector<8x16xf32>, vector<16x512xf32>, vector<8x512xf32> -> vector<8x512xf32>
    %358 = vector.broadcast %204 : vector<8x1xf32> to vector<8x512xf32>
    %359 = arith.addf %357, %358 : vector<8x512xf32>
    %cst_202 = arith.constant 0.000000e+00 : f32
    %360 = vector.broadcast %cst_202 : f32 to vector<8x512xf32>
    %361 = arith.cmpf oge, %359, %360 : vector<8x512xf32>
    %362 = vector.broadcast %205 : vector<8x1xf32> to vector<8x512xf32>
    %363 = arith.mulf %362, %359 : vector<8x512xf32>
    %364 = arith.select %361, %359, %363 : vector<8x512xi1>, vector<8x512xf32>
    %cst_203 = arith.constant dense<0.000000e+00> : vector<1x512xf32>
    %365 = tpu.matmul %206, %364, %cst_203 {dimension_numbers = #tpu.dot_dimension_numbers<[1], [0], [0], [1], [0, 0, 1, 1], [], []>} : vector<1x8xf32>, vector<8x512xf32>, vector<1x512xf32> -> vector<1x512xf32>
    %366 = vector.broadcast %207 : vector<1x1xf32> to vector<1x512xf32>
    %367 = arith.addf %365, %366 : vector<1x512xf32>
    %cst_204 = arith.constant 0.000000e+00 : f32
    %368 = vector.broadcast %cst_204 : f32 to vector<1x512xf32>
    %369 = arith.subf %368, %367 : vector<1x512xf32>
    %370 = math.exp %369 : vector<1x512xf32>
    %cst_205 = arith.constant 1.000000e+00 : f32
    %371 = vector.broadcast %cst_205 : f32 to vector<1x512xf32>
    %372 = arith.addf %371, %370 : vector<1x512xf32>
    %cst_206 = arith.constant 1.000000e+00 : f32
    %373 = vector.broadcast %cst_206 : f32 to vector<1x512xf32>
    %374 = arith.divf %373, %372 : vector<1x512xf32>
    %375 = vector.broadcast %374 : vector<1x512xf32> to vector<16x512xf32>
    %376 = arith.mulf %356, %375 : vector<16x512xf32>
    %cst_207 = arith.constant 2.000000e+00 : f32
    %377 = vector.broadcast %cst_207 : f32 to vector<16x512xf32>
    %378 = arith.mulf %377, %190 : vector<16x512xf32>
    %379 = arith.addf %376, %378 : vector<16x512xf32>
    %c17_i32_208 = arith.constant 17 : i32
    %380 = tpu.dynamic_rotate %379 by %c17_i32_208 dim 1 : vector<16x512xf32>, i32 -> vector<16x512xf32>
    %c0_209 = arith.constant 0 : index
    %c0_210 = arith.constant 0 : index
    %c0_211 = arith.constant 0 : index
    %381 = vector.load %arg2[%c0_209, %c0_210, %c0_211] : memref<9x16x512xf32, #tpu.memory_space<vmem>>, vector<1x16x512xf32>
    %382 = vector.shape_cast %381 : vector<1x16x512xf32> to vector<16x512xf32>
    %383 = arith.mulf %380, %382 : vector<16x512xf32>
    %384 = arith.truncf %383 : vector<16x512xf32> to vector<16x512xbf16>
    %c16_i32_212 = arith.constant 16 : i32
    %385 = tpu.dynamic_rotate %379 by %c16_i32_212 dim 1 : vector<16x512xf32>, i32 -> vector<16x512xf32>
    %c1_213 = arith.constant 1 : index
    %c0_214 = arith.constant 0 : index
    %c0_215 = arith.constant 0 : index
    %386 = vector.load %arg2[%c1_213, %c0_214, %c0_215] : memref<9x16x512xf32, #tpu.memory_space<vmem>>, vector<1x16x512xf32>
    %387 = vector.shape_cast %386 : vector<1x16x512xf32> to vector<16x512xf32>
    %388 = arith.mulf %385, %387 : vector<16x512xf32>
    %389 = arith.truncf %388 : vector<16x512xf32> to vector<16x512xbf16>
    %c15_i32_216 = arith.constant 15 : i32
    %390 = tpu.dynamic_rotate %379 by %c15_i32_216 dim 1 : vector<16x512xf32>, i32 -> vector<16x512xf32>
    %c2_217 = arith.constant 2 : index
    %c0_218 = arith.constant 0 : index
    %c0_219 = arith.constant 0 : index
    %391 = vector.load %arg2[%c2_217, %c0_218, %c0_219] : memref<9x16x512xf32, #tpu.memory_space<vmem>>, vector<1x16x512xf32>
    %392 = vector.shape_cast %391 : vector<1x16x512xf32> to vector<16x512xf32>
    %393 = arith.mulf %390, %392 : vector<16x512xf32>
    %394 = arith.truncf %393 : vector<16x512xf32> to vector<16x512xbf16>
    %c1_i32_220 = arith.constant 1 : i32
    %395 = tpu.dynamic_rotate %379 by %c1_i32_220 dim 1 : vector<16x512xf32>, i32 -> vector<16x512xf32>
    %c3_221 = arith.constant 3 : index
    %c0_222 = arith.constant 0 : index
    %c0_223 = arith.constant 0 : index
    %396 = vector.load %arg2[%c3_221, %c0_222, %c0_223] : memref<9x16x512xf32, #tpu.memory_space<vmem>>, vector<1x16x512xf32>
    %397 = vector.shape_cast %396 : vector<1x16x512xf32> to vector<16x512xf32>
    %398 = arith.mulf %395, %397 : vector<16x512xf32>
    %399 = arith.truncf %398 : vector<16x512xf32> to vector<16x512xbf16>
    %400 = arith.truncf %379 : vector<16x512xf32> to vector<16x512xbf16>
    %c511_i32_224 = arith.constant 511 : i32
    %401 = tpu.dynamic_rotate %379 by %c511_i32_224 dim 1 : vector<16x512xf32>, i32 -> vector<16x512xf32>
    %c5_225 = arith.constant 5 : index
    %c0_226 = arith.constant 0 : index
    %c0_227 = arith.constant 0 : index
    %402 = vector.load %arg2[%c5_225, %c0_226, %c0_227] : memref<9x16x512xf32, #tpu.memory_space<vmem>>, vector<1x16x512xf32>
    %403 = vector.shape_cast %402 : vector<1x16x512xf32> to vector<16x512xf32>
    %404 = arith.mulf %401, %403 : vector<16x512xf32>
    %405 = arith.truncf %404 : vector<16x512xf32> to vector<16x512xbf16>
    %c497_i32_228 = arith.constant 497 : i32
    %406 = tpu.dynamic_rotate %379 by %c497_i32_228 dim 1 : vector<16x512xf32>, i32 -> vector<16x512xf32>
    %c6_229 = arith.constant 6 : index
    %c0_230 = arith.constant 0 : index
    %c0_231 = arith.constant 0 : index
    %407 = vector.load %arg2[%c6_229, %c0_230, %c0_231] : memref<9x16x512xf32, #tpu.memory_space<vmem>>, vector<1x16x512xf32>
    %408 = vector.shape_cast %407 : vector<1x16x512xf32> to vector<16x512xf32>
    %409 = arith.mulf %406, %408 : vector<16x512xf32>
    %410 = arith.truncf %409 : vector<16x512xf32> to vector<16x512xbf16>
    %c496_i32_232 = arith.constant 496 : i32
    %411 = tpu.dynamic_rotate %379 by %c496_i32_232 dim 1 : vector<16x512xf32>, i32 -> vector<16x512xf32>
    %c7_233 = arith.constant 7 : index
    %c0_234 = arith.constant 0 : index
    %c0_235 = arith.constant 0 : index
    %412 = vector.load %arg2[%c7_233, %c0_234, %c0_235] : memref<9x16x512xf32, #tpu.memory_space<vmem>>, vector<1x16x512xf32>
    %413 = vector.shape_cast %412 : vector<1x16x512xf32> to vector<16x512xf32>
    %414 = arith.mulf %411, %413 : vector<16x512xf32>
    %415 = arith.truncf %414 : vector<16x512xf32> to vector<16x512xbf16>
    %c495_i32_236 = arith.constant 495 : i32
    %416 = tpu.dynamic_rotate %379 by %c495_i32_236 dim 1 : vector<16x512xf32>, i32 -> vector<16x512xf32>
    %c8_237 = arith.constant 8 : index
    %c0_238 = arith.constant 0 : index
    %c0_239 = arith.constant 0 : index
    %417 = vector.load %arg2[%c8_237, %c0_238, %c0_239] : memref<9x16x512xf32, #tpu.memory_space<vmem>>, vector<1x16x512xf32>
    %418 = vector.shape_cast %417 : vector<1x16x512xf32> to vector<16x512xf32>
    %419 = arith.mulf %416, %418 : vector<16x512xf32>
    %420 = arith.truncf %419 : vector<16x512xf32> to vector<16x512xbf16>
    %421 = tpu.concatenate %384, %389, %394, %399, %400, %405, %410, %415, %420 in 0 : vector<16x512xbf16>, vector<16x512xbf16>, vector<16x512xbf16>, vector<16x512xbf16>, vector<16x512xbf16>, vector<16x512xbf16>, vector<16x512xbf16>, vector<16x512xbf16>, vector<16x512xbf16> -> vector<144x512xbf16>
    %c4 = arith.constant 4 : index
    %c0_240 = arith.constant 0 : index
    %c0_241 = arith.constant 0 : index
    %422 = vector.load %arg3[%c4, %c0_240, %c0_241] : memref<5x16x144xbf16, #tpu.memory_space<vmem>>, vector<1x16x144xbf16>
    %423 = vector.shape_cast %422 : vector<1x16x144xbf16> to vector<16x144xbf16>
    %cst_242 = arith.constant dense<0.000000e+00> : vector<16x512xf32>
    %424 = tpu.matmul %423, %421, %cst_242 {dimension_numbers = #tpu.dot_dimension_numbers<[1], [0], [0], [1], [0, 0, 1, 1], [], []>} : vector<16x144xbf16>, vector<144x512xbf16>, vector<16x512xf32> -> vector<16x512xf32>
    %c4_243 = arith.constant 4 : index
    %c0_244 = arith.constant 0 : index
    %c0_245 = arith.constant 0 : index
    %425 = vector.load %arg4[%c4_243, %c0_244, %c0_245] : memref<5x16x1xf32, #tpu.memory_space<vmem>>, vector<1x16x1xf32>
    %426 = vector.shape_cast %425 : vector<1x16x1xf32> to vector<16x1xf32>
    %427 = vector.broadcast %426 : vector<16x1xf32> to vector<16x512xf32>
    %428 = arith.addf %424, %427 : vector<16x512xf32>
    %429 = arith.addf %428, %1 : vector<16x512xf32>
    %c0_246 = arith.constant 0 : index
    %c0_247 = arith.constant 0 : index
    %c0_248 = arith.constant 0 : index
    %430 = vector.load %arg8[%c0_246, %c0_247, %c0_248] : memref<1x16x512xf32, #tpu.memory_space<vmem>>, vector<1x16x512xf32>
    %431 = vector.shape_cast %430 : vector<1x16x512xf32> to vector<16x512xf32>
    %432 = vector.shape_cast %429 : vector<16x512xf32> to vector<1x16x512xf32>
    tpu.vector_store %arg8[%c0_246, %c0_247, %c0_248], %432 {strides = array<i32>} : memref<1x16x512xf32, #tpu.memory_space<vmem>>, vector<1x16x512xf32>,
    return
  }
  func.func @transform_0(%arg0: i32) -> (i32, i32, i32) {
    %c0_i32 = arith.constant 0 : i32
    %c0_i32_0 = arith.constant 0 : i32
    %c0_i32_1 = arith.constant 0 : i32
    return %arg0, %c0_i32, %c0_i32_0 : i32, i32, i32
  }
  func.func @transform_1(%arg0: i32) -> (i32, i32, i32) {
    %c0_i32 = arith.constant 0 : i32
    %c0_i32_0 = arith.constant 0 : i32
    %c0_i32_1 = arith.constant 0 : i32
    %c0_i32_2 = arith.constant 0 : i32
    return %c0_i32, %c0_i32_0, %c0_i32_1 : i32, i32, i32
  }
  func.func @transform_2(%arg0: i32) -> (i32, i32, i32) {
    %c0_i32 = arith.constant 0 : i32
    %c0_i32_0 = arith.constant 0 : i32
    %c0_i32_1 = arith.constant 0 : i32
    %c0_i32_2 = arith.constant 0 : i32
    return %c0_i32, %c0_i32_0, %c0_i32_1 : i32, i32, i32
  }
  func.func @transform_3(%arg0: i32) -> (i32, i32, i32) {
    %c0_i32 = arith.constant 0 : i32
    %c0_i32_0 = arith.constant 0 : i32
    %c0_i32_1 = arith.constant 0 : i32
    %c0_i32_2 = arith.constant 0 : i32
    return %c0_i32, %c0_i32_0, %c0_i32_1 : i32, i32, i32
  }
  func.func @transform_4(%arg0: i32) -> (i32, i32, i32) {
    %c0_i32 = arith.constant 0 : i32
    %c0_i32_0 = arith.constant 0 : i32
    %c0_i32_1 = arith.constant 0 : i32
    %c0_i32_2 = arith.constant 0 : i32
    return %c0_i32, %c0_i32_0, %c0_i32_1 : i32, i32, i32
  }
  func.func @transform_5(%arg0: i32) -> (i32, i32, i32) {
    %c0_i32 = arith.constant 0 : i32
    %c0_i32_0 = arith.constant 0 : i32
    %c0_i32_1 = arith.constant 0 : i32
    %c0_i32_2 = arith.constant 0 : i32
    return %c0_i32, %c0_i32_0, %c0_i32_1 : i32, i32, i32
  }
  func.func @transform_6(%arg0: i32) -> (i32, i32, i32) {
    %c0_i32 = arith.constant 0 : i32
    %c0_i32_0 = arith.constant 0 : i32
    %c0_i32_1 = arith.constant 0 : i32
    %c0_i32_2 = arith.constant 0 : i32
    return %c0_i32, %c0_i32_0, %c0_i32_1 : i32, i32, i32
  }
  func.func @transform_7(%arg0: i32) -> (i32, i32, i32) {
    %c0_i32 = arith.constant 0 : i32
    %c0_i32_0 = arith.constant 0 : i32
    %c0_i32_1 = arith.constant 0 : i32
    return %arg0, %c0_i32, %c0_i32_0 : i32, i32, i32
  }
}

</mosaic_0001>

<bundles_post_ra>
// kernel: group_forward.1
= control target key start
LH: loop header
LB: loop body
LE: loop exit
PB: predicated region body
PF: predicated region fallthrough
CT: control target
= control target key end

     0   :  { %s4307_s28 = smov 17   ;;  %s4308_s18 = smov 16   ;;  %v8139_v8 = vlaneseq  ;;  %vm435_vm1 = vcmask 130048   ;;  %v8140_v21 = vmov 0   ;;  %s8131_s0 = inlined_call_operand.vmem [shape: f32[1,16,512], index: 0, kind: input, shape index: {}]   ;;  %s8132_s2 = inlined_call_operand.vmem [shape: bf16[5,16,144], index: 2, kind: input, shape index: {}]   ;;  %s8133_s1 = inlined_call_operand.vmem [shape: f32[9,16,512], index: 1, kind: input, shape index: {}]   ;;  %s8134_s3 = inlined_call_operand.vmem [shape: f32[5,16,1], index: 3, kind: input, shape index: {}]   ;;  %s8135_s4 = inlined_call_operand.vmem [shape: f32[2,16,10], index: 4, kind: input, shape index: {}]   ;;  %s8136_s5 = inlined_call_operand.vmem [shape: f32[2,8,36], index: 5, kind: input, shape index: {}]   ;;  %s8137_s6 = inlined_call_operand.vmem [shape: f32[2,1,9], index: 6, kind: input, shape index: {}]   ;;  %s8138_s7 = inlined_call_operand.vmem [shape: f32[1,16,512], index: 7, kind: output, shape index: {}]  }
   0x1   :  { %v4367_v0 = vld [vmem:[%s8131_s0 + $0x8] sm:$0xff]  ;;  %v4372_v1 = vld [vmem:[%s8131_s0] sm:$0xff]  ;;  %v4395_v4 = vld [vmem:[%s8131_s0 + $0x30] sm:$0xff]  ;;  %s4309_s19 = smov 15   ;;  %s4310_s20 = smov 1   ;;  %4062 = vset.pattern.permute.xlu1 %v8140_v21  ;;  %4061 = vset.pattern.permute.xlu0 %v8140_v21 }
   0x2   :  { %43 = vrot.lane.b32.xlu1 %v4367_v0, %s4307_s28  ;;  %39 = vrot.lane.b32.xlu0 %v4372_v1, %s4307_s28  ;;  %v4381_v2 = vld [vmem:[%s8131_s0 + $0x28] sm:$0xff]  ;;  %v4386_v3 = vld [vmem:[%s8131_s0 + $0x20] sm:$0xff]  ;;  %s4311_s21 = smov 127   ;;  %s4312_s22 = smov 113   ;;  %v4517_v9 = vand.u32 127, %v8139_v8 }
   0x3   :  { %v4400_v5 = vld [vmem:[%s8131_s0 + $0x10] sm:$0xff]  ;;  %v4409_v6 = vld [vmem:[%s8131_s0 + $0x38] sm:$0xff]  ;;  %s4313_s23 = smov 112   ;;  %s4314_s24 = smov 111   ;;  %v4075_v12 = vld [vmem:[%s8132_s2 + $0x4] ss:$8 sps:$4 sm:$0xff]  }
   0x4   :  { %v4414_v7 = vld [vmem:[%s8131_s0 + $0x18] sm:$0xff]  ;;  %vm57_vm0 = vcmp.lt.s32.totalorder %v4517_v9, 17  ;;  %v67_v14 = vld [vmem:[%s8133_s1 + $0x8] sm:$0xff]  ;;  %3886 = vmatprep.mubr.msk.bf16.mxu0 %vm435_vm1, %v4075_v12  ;;  %3887 = vmatprep.mubr.msk.bf16.mxu1 %vm435_vm1, %v4075_v12  ;;  %v68_v27 = vld [vmem:[%s8133_s1 + $0x10] sm:$0xff]  ;;  %vm102_vm2 = vcmp.lt.s32.totalorder %v4517_v9, 16  ;;  %vm148_vm3 = vcmp.lt.s32.totalorder %v4517_v9, 15 }
   0x5   :  { %v71_v15 = vld [vmem:[%s8133_s1 + $0x28] sm:$0xff]  ;;  %v4559_v28 = vld [vmem:[%s8133_s1 + $0x30] sm:$0xff]  ;;  %v4568_v29 = vld [vmem:[%s8133_s1] sm:$0xff]  ;;  %vm194_vm4 = vcmp.lt.s32.totalorder %v4517_v9, 1  ;;  %vm244_vm5 = vcmp.lt.s32.totalorder %v4517_v9, 127  ;;  %vm290_vm6 = vcmp.lt.s32.totalorder %v4517_v9, 113 }
   0x6   :  { %45 = vrot.lane.b32.xlu1 %v4381_v2, %s4307_s28  ;;  %41 = vrot.lane.b32.xlu0 %v4386_v3, %s4307_s28  ;;  %v4573_v30 = vld [vmem:[%s8133_s1 + $0x20] sm:$0xff]  ;;  %v4578_v31 = vld [vmem:[%s8133_s1 + $0x18] sm:$0xff]  ;;  %vm336_vm7 = vcmp.lt.s32.totalorder %v4517_v9, 112  ;;  %vm382_vm8 = vcmp.lt.s32.totalorder %v4517_v9, 111  ;;  %s4319_s26 = smov 126   ;;  %s4320_s30 = smov 110  }
   0x7   :  { %v4583_v32 = vld [vmem:[%s8133_s1 + $0x38] sm:$0xff]  ;;  %v415_v33 = vld [vmem:[%s8134_s3 + $0x8] sm:$0xff]  ;;  %v414_v38 = vld [vmem:[%s8134_s3] sm:$0xff] }
   0x8   :  { %v35_v51 = vld [vmem:[%s8135_s4] sm:$0xff]  ;;  %v36_v53 = vld [vmem:[%s8135_s4 + $0x8] sm:$0xff]  ;;  %v4298_v9 = vld [vmem:[%s8133_s1 + $0x218] sm:$0xff] }
   0x9   :  { %v4614_v54 = vld [vmem:[%s8133_s1 + $0x68] sm:$0xff] }
   0xa   :  { %49 = vrot.lane.b32.xlu1 %v4395_v4, %s4307_s28  ;;  %47 = vrot.lane.b32.xlu0 %v4400_v5, %s4307_s28  ;;  %v4619_v55 = vld [vmem:[%s8133_s1 + $0x48] sm:$0xff] }
   0xe   :  { %53 = vrot.lane.b32.xlu1 %v4409_v6, %s4307_s28  ;;  %51 = vrot.lane.b32.xlu0 %v4414_v7, %s4307_s28 }
  0x12   :  { %88 = vrot.lane.b32.xlu1 %v4386_v3, %s4308_s18  ;;  %86 = vrot.lane.b32.xlu0 %v4372_v1, %s4308_s18 }
  0x16   :  { %92 = vrot.lane.b32.xlu1 %v4381_v2, %s4308_s18  ;;  %90 = vrot.lane.b32.xlu0 %v4367_v0, %s4308_s18 }
  0x1a   :  { %96 = vrot.lane.b32.xlu1 %v4395_v4, %s4308_s18  ;;  %94 = vrot.lane.b32.xlu0 %v4400_v5, %s4308_s18 }
  0x1e   :  { %100 = vrot.lane.b32.xlu1 %v4409_v6, %s4308_s18  ;;  %98 = vrot.lane.b32.xlu0 %v4414_v7, %s4308_s18 }
  0x22   :  { %134 = vrot.lane.b32.xlu1 %v4386_v3, %s4309_s19  ;;  %132 = vrot.lane.b32.xlu0 %v4372_v1, %s4309_s19 }
  0x26   :  { %138 = vrot.lane.b32.xlu1 %v4381_v2, %s4309_s19  ;;  %136 = vrot.lane.b32.xlu0 %v4367_v0, %s4309_s19 }
  0x2a   :  { %142 = vrot.lane.b32.xlu1 %v4395_v4, %s4309_s19  ;;  %140 = vrot.lane.b32.xlu0 %v4400_v5, %s4309_s19 }
  0x2e   :  { %146 = vrot.lane.b32.xlu1 %v4409_v6, %s4309_s19  ;;  %144 = vrot.lane.b32.xlu0 %v4414_v7, %s4309_s19 }
  0x32   :  { %180 = vrot.lane.b32.xlu1 %v4386_v3, %s4310_s20  ;;  %178 = vrot.lane.b32.xlu0 %v4372_v1, %s4310_s20 }
  0x36   :  { %184 = vrot.lane.b32.xlu1 %v4381_v2, %s4310_s20  ;;  %182 = vrot.lane.b32.xlu0 %v4367_v0, %s4310_s20 }
  0x3a   :  { %188 = vrot.lane.b32.xlu1 %v4395_v4, %s4310_s20  ;;  %186 = vrot.lane.b32.xlu0 %v4400_v5, %s4310_s20 }
  0x3e   :  { %192 = vrot.lane.b32.xlu1 %v4409_v6, %s4310_s20  ;;  %190 = vrot.lane.b32.xlu0 %v4414_v7, %s4310_s20 }
  0x42   :  { %234 = vrot.lane.b32.xlu1 %v4381_v2, %s4311_s21  ;;  %232 = vrot.lane.b32.xlu0 %v4367_v0, %s4311_s21 }
  0x46   :  { %238 = vrot.lane.b32.xlu1 %v4395_v4, %s4311_s21  ;;  %236 = vrot.lane.b32.xlu0 %v4400_v5, %s4311_s21 }
  0x4a   :  { %230 = vrot.lane.b32.xlu1 %v4386_v3, %s4311_s21  ;;  %228 = vrot.lane.b32.xlu0 %v4372_v1, %s4311_s21 }
  0x4e   :  { %242 = vrot.lane.b32.xlu1 %v4409_v6, %s4311_s21  ;;  %240 = vrot.lane.b32.xlu0 %v4414_v7, %s4311_s21 }
  0x52   :  { %280 = vrot.lane.b32.xlu1 %v4381_v2, %s4312_s22  ;;  %278 = vrot.lane.b32.xlu0 %v4367_v0, %s4312_s22 }
  0x56   :  { %284 = vrot.lane.b32.xlu1 %v4395_v4, %s4312_s22  ;;  %282 = vrot.lane.b32.xlu0 %v4400_v5, %s4312_s22 }
  0x5a   :  { %276 = vrot.lane.b32.xlu1 %v4386_v3, %s4312_s22  ;;  %274 = vrot.lane.b32.xlu0 %v4372_v1, %s4312_s22 }
  0x5e   :  { %288 = vrot.lane.b32.xlu1 %v4409_v6, %s4312_s22  ;;  %286 = vrot.lane.b32.xlu0 %v4414_v7, %s4312_s22 }
  0x62   :  { %326 = vrot.lane.b32.xlu1 %v4381_v2, %s4313_s23  ;;  %324 = vrot.lane.b32.xlu0 %v4367_v0, %s4313_s23 }
  0x66   :  { %330 = vrot.lane.b32.xlu1 %v4395_v4, %s4313_s23  ;;  %328 = vrot.lane.b32.xlu0 %v4400_v5, %s4313_s23 }
  0x6a   :  { %322 = vrot.lane.b32.xlu1 %v4386_v3, %s4313_s23  ;;  %320 = vrot.lane.b32.xlu0 %v4372_v1, %s4313_s23 }
  0x6e   :  { %334 = vrot.lane.b32.xlu1 %v4409_v6, %s4313_s23  ;;  %332 = vrot.lane.b32.xlu0 %v4414_v7, %s4313_s23 }
  0x72   :  { %372 = vrot.lane.b32.xlu1 %v4381_v2, %s4314_s24  ;;  %370 = vrot.lane.b32.xlu0 %v4367_v0, %s4314_s24 }
  0x74   :  { %v44_v10 = vpop.permute.xlu1 %43  ;;  %v40_v11 = vpop.permute.xlu0 %39 }
  0x75   :  { %v62_v13 = vsel %vm57_vm0, %v40_v11, %v44_v10 }
  0x76   :  { %376 = vrot.lane.b32.xlu1 %v4395_v4, %s4314_s24  ;;  %374 = vrot.lane.b32.xlu0 %v4400_v5, %s4314_s24  ;;  %v75_v19 = vmul.f32 %v67_v14, %v62_v13  ;;  %v4637_v13 = vld [vmem:[%s8133_s1 + $0x50] sm:$0xff] }
  0x78   :  { %v46_v16 = vpop.permute.xlu1 %45  ;;  %v42_v17 = vpop.permute.xlu0 %41 }
  0x79   :  { %v63_v18 = vsel %vm57_vm0, %v42_v17, %v46_v16 }
  0x7a   :  { %368 = vrot.lane.b32.xlu1 %v4386_v3, %s4314_s24  ;;  %366 = vrot.lane.b32.xlu0 %v4372_v1, %s4314_s24  ;;  %v79_v20 = vmul.f32 %v71_v15, %v63_v18  ;;  %v4644_v15 = vld [vmem:[%s8133_s1 + $0x60] sm:$0xff]  ;;  %v4659_v18 = vld [vmem:[%s8133_s1 + $0x58] sm:$0xff] }
  0x7c   :  { %v50_v22 = vpop.permute.xlu1 %49  ;;  %v48_v23 = vpop.permute.xlu0 %47  ;;  %v83_v24 = vpack.c.bf16 %v79_v20, %v75_v19 }
  0x7d   :  { %v61_v25 = vsel %vm57_vm0, %v46_v16, %v50_v22  ;;  %v60_v26 = vsel %vm57_vm0, %v44_v10, %v48_v23  ;;  %v4649_v16 = vld [vmem:[%s8133_s1 + $0x78] sm:$0xff] }
  0x7e   :  { %380 = vrot.lane.b32.xlu1 %v4409_v6, %s4314_s24  ;;  %378 = vrot.lane.b32.xlu0 %v4414_v7, %s4314_s24  ;;  %v76_v36 = vmul.f32 %v68_v27, %v60_v26  ;;  %v80_v37 = vmul.f32 %v4559_v28, %v61_v25 }
  0x7f   :  { %439 = vmatprep.subr.bf16.mxu0 %v83_v24 }
  0x80   :  { %v54_v34 = vpop.permute.xlu1 %53  ;;  %v52_v35 = vpop.permute.xlu0 %51  ;;  %v84_v52 = vpack.c.bf16 %v80_v37, %v76_v36 }
  0x81   :  { %v65_v39 = vsel %vm57_vm0, %v54_v34, %v42_v17  ;;  %v64_v40 = vsel %vm57_vm0, %v52_v35, %v40_v11  ;;  %v58_v41 = vsel %vm57_vm0, %v48_v23, %v52_v35  ;;  %v59_v42 = vsel %vm57_vm0, %v50_v22, %v54_v34  ;;  %v4630_v11 = vld [vmem:[%s8133_s1 + $0x70] sm:$0xff]  ;;  %v4654_v17 = vld [vmem:[%s8133_s1 + $0x40] sm:$0xff] }
  0x82   :  { %v74_v43 = vmul.f32 %v4568_v29, %v64_v40  ;;  %v78_v44 = vmul.f32 %v4573_v30, %v65_v39  ;;  %v77_v45 = vmul.f32 %v4578_v31, %v58_v41  ;;  %v81_v46 = vmul.f32 %v4583_v32, %v59_v42  ;;  %423 = vperm.xlu1 %4062, %v415_v33   ;;  %v4679_v42 = vld [vmem:[%s8133_s1 + $0xa8] sm:$0xff] }
  0x83   :  { %418 = vperm.xlu0 %4061, %v414_v38  }
  0x84   :  { %v89_v47 = vpop.permute.xlu1 %88  ;;  %v87_v48 = vpop.permute.xlu0 %86  ;;  %v82_v49 = vpack.c.bf16 %v78_v44, %v74_v43  ;;  %v85_v50 = vpack.c.bf16 %v81_v46, %v77_v45  ;;  %v4684_v43 = vld [vmem:[%s8133_s1 + $0x88] sm:$0xff] }
  0x86   :  { %440 = vmatpush1.bf16.msra.mxu0 %v82_v49  ;;  %482 = vmatprep.subr.bf16.mxu1 %v85_v50 }
  0x87   :  { %483 = vmatpush1.bf16.msra.mxu1 %v84_v52  ;;  %535 = vperm.xlu1 %4062, %v35_v51  }
  0x88   :  { %v93_v56 = vpop.permute.xlu1 %92  ;;  %v91_v57 = vpop.permute.xlu0 %90  ;;  %540 = vperm.xlu0 %4061, %v36_v53   ;;  %v4695_v53 = vld [vmem:[%s8133_s1 + $0xb0] sm:$0xff] }
  0x89   :  { %v108_v58 = vsel %vm102_vm2, %v89_v47, %v93_v56  ;;  %v107_v59 = vsel %vm102_vm2, %v87_v48, %v91_v57 }
  0x8a   :  { %v125_v60 = vmul.f32 %v4614_v54, %v108_v58  ;;  %v121_v61 = vmul.f32 %v4619_v55, %v107_v59  ;;  %v4709_v59 = vld [vmem:[%s8133_s1 + $0xa0] sm:$0xff] }
  0x8c   :  { %v97_v62 = vpop.permute.xlu1 %96  ;;  %v95_v63 = vpop.permute.xlu0 %94  ;;  %v129_v10 = vpack.c.bf16 %v125_v60, %v121_v61  ;;  %v4714_v60 = vld [vmem:[%s8133_s1 + $0xb8] sm:$0xff]  ;;  %v4719_v61 = vld [vmem:[%s8133_s1 + $0x80] sm:$0xff] }
  0x8d   :  { %v106_v12 = vsel %vm102_vm2, %v93_v56, %v97_v62  ;;  %v105_v14 = vsel %vm102_vm2, %v91_v57, %v95_v63  ;;  %v4702_v57 = vld [vmem:[%s8133_s1 + $0x90] sm:$0xff] }
  0x8e   :  { %441 = vmatprep.subr.bf16.mxu0 %v129_v10  ;;  %v126_v19 = vmul.f32 %v4630_v11, %v106_v12  ;;  %v122_v20 = vmul.f32 %v4637_v13, %v105_v14 }
  0x90   :  { %v101_v22 = vpop.permute.xlu1 %100  ;;  %v99_v23 = vpop.permute.xlu0 %98  ;;  %v130_v41 = vpack.c.bf16 %v126_v19, %v122_v20 }
  0x91   :  { %v104_v24 = vsel %vm102_vm2, %v97_v62, %v101_v22  ;;  %v110_v25 = vsel %vm102_vm2, %v101_v22, %v89_v47  ;;  %v103_v26 = vsel %vm102_vm2, %v95_v63, %v99_v23  ;;  %v109_v27 = vsel %vm102_vm2, %v99_v23, %v87_v48  ;;  %v4724_v62 = vld [vmem:[%s8133_s1 + $0x98] sm:$0xff] }
  0x92   :  { %v124_v33 = vmul.f32 %v4644_v15, %v110_v25  ;;  %v127_v34 = vmul.f32 %v4649_v16, %v104_v24  ;;  %v120_v35 = vmul.f32 %v4654_v17, %v109_v27  ;;  %v123_v36 = vmul.f32 %v4659_v18, %v103_v26 }
  0x94   :  { %v135_v37 = vpop.permute.xlu1 %134  ;;  %v133_v38 = vpop.permute.xlu0 %132  ;;  %v128_v39 = vpack.c.bf16 %v124_v33, %v120_v35  ;;  %v131_v40 = vpack.c.bf16 %v127_v34, %v123_v36 }
  0x96   :  { %442 = vmatpush1.bf16.msra.mxu0 %v128_v39  ;;  %484 = vmatprep.subr.bf16.mxu1 %v131_v40 }
  0x97   :  { %485 = vmatpush1.bf16.msra.mxu1 %v130_v41 }
  0x98   :  { %v139_v44 = vpop.permute.xlu1 %138  ;;  %v137_v45 = vpop.permute.xlu0 %136 }
  0x99   :  { %v154_v46 = vsel %vm148_vm3, %v135_v37, %v139_v44  ;;  %v153_v47 = vsel %vm148_vm3, %v133_v38, %v137_v45 }
  0x9a   :  { %v171_v48 = vmul.f32 %v4679_v42, %v154_v46  ;;  %v167_v49 = vmul.f32 %v4684_v43, %v153_v47 }
  0x9c   :  { %v143_v50 = vpop.permute.xlu1 %142  ;;  %v141_v51 = vpop.permute.xlu0 %140  ;;  %v175_v52 = vpack.c.bf16 %v171_v48, %v167_v49 }
  0x9d   :  { %v152_v56 = vsel %vm148_vm3, %v139_v44, %v143_v50  ;;  %v151_v58 = vsel %vm148_vm3, %v137_v45, %v141_v51 }
  0x9e   :  { %443 = vmatprep.subr.bf16.mxu0 %v175_v52  ;;  %v172_v63 = vmul.f32 %v4695_v53, %v152_v56  ;;  %v168_v10 = vmul.f32 %v4702_v57, %v151_v58  ;;  %v4767_v56 = vld [vmem:[%s8133_s1 + $0xd0] sm:$0xff] }
  0xa0   :  { %v147_v12 = vpop.permute.xlu1 %146  ;;  %v145_v14 = vpop.permute.xlu0 %144  ;;  %v176_v39 = vpack.c.bf16 %v172_v63, %v168_v10  ;;  %v4774_v63 = vld [vmem:[%s8133_s1 + $0xe0] sm:$0xff]  ;;  %v4779_v10 = vld [vmem:[%s8133_s1 + $0xf8] sm:$0xff] }
  0xa1   :  { %v150_v19 = vsel %vm148_vm3, %v143_v50, %v147_v12  ;;  %v156_v20 = vsel %vm148_vm3, %v147_v12, %v135_v37  ;;  %v149_v22 = vsel %vm148_vm3, %v141_v51, %v145_v14  ;;  %v155_v23 = vsel %vm148_vm3, %v145_v14, %v133_v38  ;;  %v4744_v37 = vld [vmem:[%s8133_s1 + $0xe8] sm:$0xff]  ;;  %v4760_v51 = vld [vmem:[%s8133_s1 + $0xf0] sm:$0xff]  ;;  %v4784_v12 = vld [vmem:[%s8133_s1 + $0xc0] sm:$0xff] }
  0xa2   :  { %v170_v24 = vmul.f32 %v4709_v59, %v156_v20  ;;  %v173_v25 = vmul.f32 %v4714_v60, %v150_v19  ;;  %v166_v26 = vmul.f32 %v4719_v61, %v155_v23  ;;  %v169_v27 = vmul.f32 %v4724_v62, %v149_v22  ;;  %v4749_v38 = vld [vmem:[%s8133_s1 + $0xc8] sm:$0xff]  ;;  %v4789_v14 = vld [vmem:[%s8133_s1 + $0xd8] sm:$0xff] }
  0xa4   :  { %v181_v33 = vpop.permute.xlu1 %180  ;;  %v179_v34 = vpop.permute.xlu0 %178  ;;  %v174_v35 = vpack.c.bf16 %v170_v24, %v166_v26  ;;  %v177_v36 = vpack.c.bf16 %v173_v25, %v169_v27 }
  0xa6   :  { %444 = vmatpush1.bf16.msra.mxu0 %v174_v35  ;;  %486 = vmatprep.subr.bf16.mxu1 %v177_v36 }
  0xa7   :  { %487 = vmatpush1.bf16.msra.mxu1 %v176_v39 }
  0xa8   :  { %v185_v40 = vpop.permute.xlu1 %184  ;;  %v183_v41 = vpop.permute.xlu0 %182 }
  0xa9   :  { %v200_v44 = vsel %vm194_vm4, %v181_v33, %v185_v40  ;;  %v199_v45 = vsel %vm194_vm4, %v179_v34, %v183_v41 }
  0xaa   :  { %v217_v46 = vmul.f32 %v4744_v37, %v200_v44  ;;  %v213_v47 = vmul.f32 %v4749_v38, %v199_v45 }
  0xac   :  { %v189_v48 = vpop.permute.xlu1 %188  ;;  %v187_v49 = vpop.permute.xlu0 %186  ;;  %v221_v50 = vpack.c.bf16 %v217_v46, %v213_v47  ;;  %v227_v47 = vpack.c.bf16 %v4409_v6, %v4414_v7  ;;  %v226_v6 = vpack.c.bf16 %v4395_v4, %v4400_v5 }
  0xad   :  { %v198_v52 = vsel %vm194_vm4, %v185_v40, %v189_v48  ;;  %v197_v58 = vsel %vm194_vm4, %v183_v41, %v187_v49  ;;  %v225_v41 = vpack.c.bf16 %v4381_v2, %v4367_v0  ;;  %v4815_v0 = vld [vmem:[%s8133_s1 + $0x168] sm:$0xff] }
  0xae   :  { %445 = vmatprep.subr.bf16.mxu0 %v221_v50  ;;  %v218_v19 = vmul.f32 %v4760_v51, %v198_v52  ;;  %v214_v20 = vmul.f32 %v4767_v56, %v197_v58  ;;  %8306 = vst [vmem:[#allocation2_spill] sm:$0xff] %v4815_v0  ;;  %v4820_v2 = vld [vmem:[%s8133_s1 + $0x148] sm:$0xff] }
  0xaf   :  { %8307 = vst [vmem:[#allocation3_spill] sm:$0xff] %v4820_v2 }
  0xb0   :  { %v193_v22 = vpop.permute.xlu1 %192  ;;  %v191_v23 = vpop.permute.xlu0 %190 }
  0xb1   :  { %v196_v24 = vsel %vm194_vm4, %v189_v48, %v193_v22  ;;  %v202_v25 = vsel %vm194_vm4, %v193_v22, %v181_v33  ;;  %v195_v26 = vsel %vm194_vm4, %v187_v49, %v191_v23  ;;  %v201_v27 = vsel %vm194_vm4, %v191_v23, %v179_v34  ;;  %v4838_v22 = vld [vmem:[%s8133_s1 + $0x140] sm:$0xff] }
  0xb2   :  { %v216_v35 = vmul.f32 %v4774_v63, %v202_v25  ;;  %v219_v36 = vmul.f32 %v4779_v10, %v196_v24  ;;  %v212_v39 = vmul.f32 %v4784_v12, %v201_v27  ;;  %v215_v40 = vmul.f32 %v4789_v14, %v195_v26  ;;  %8309 = vst [vmem:[#allocation5_spill] sm:$0xff] %v4838_v22 }
  0xb3   :  { %v222_v48 = vpack.c.bf16 %v218_v19, %v214_v20  ;;  %v224_v34 = vpack.c.bf16 %v4386_v3, %v4372_v1  ;;  %v4833_v20 = vld [vmem:[%s8133_s1 + $0x160] sm:$0xff] }
  0xb4   :  { %v235_v44 = vpop.permute.xlu1 %234  ;;  %v233_v45 = vpop.permute.xlu0 %232  ;;  %v220_v33 = vpack.c.bf16 %v216_v35, %v212_v39  ;;  %v223_v46 = vpack.c.bf16 %v219_v36, %v215_v40  ;;  %8308 = vst [vmem:[#allocation4_spill] sm:$0xff] %v4833_v20  ;;  %v4849_v39 = vld [vmem:[%s8133_s1 + $0x170] sm:$0xff]  ;;  %v4854_v40 = vld [vmem:[%s8133_s1 + $0x178] sm:$0xff] }
  0xb5   :  { %8310 = vst [vmem:[#allocation6_spill] sm:$0xff] %v4849_v39  ;;  %8311 = vst [vmem:[#allocation7_spill] sm:$0xff] %v4854_v40 }
  0xb6   :  { %446 = vmatpush1.bf16.msra.mxu0 %v220_v33  ;;  %488 = vmatprep.subr.bf16.mxu1 %v223_v46 }
  0xb7   :  { %489 = vmatpush1.bf16.msra.mxu1 %v222_v48  ;;  %447 = vmatprep.subr.bf16.mxu0 %v225_v41  ;;  %v4859_v41 = vld [vmem:[%s8133_s1 + $0x150] sm:$0xff] }
  0xb8   :  { %v239_v7 = vpop.permute.xlu1 %238  ;;  %v237_v49 = vpop.permute.xlu0 %236  ;;  %490 = vmatprep.subr.bf16.mxu1 %v227_v47  ;;  %8312 = vst [vmem:[#allocation8_spill] sm:$0xff] %v4859_v41 }
  0xb9   :  { %v248_v50 = vsel %vm244_vm5, %v235_v44, %v239_v7  ;;  %v247_v52 = vsel %vm244_vm5, %v233_v45, %v237_v49 }
  0xba   :  { %v267_v58 = vmul.f32 %v4815_v0, %v248_v50  ;;  %v263_v19 = vmul.f32 %v4820_v2, %v247_v52  ;;  %448 = vmatpush1.bf16.msra.mxu0 %v224_v34 }
  0xbb   :  { %491 = vmatpush1.bf16.msra.mxu1 %v226_v6 }
  0xbc   :  { %v231_v23 = vpop.permute.xlu1 %230  ;;  %v229_v24 = vpop.permute.xlu0 %228  ;;  %v271_v25 = vpack.c.bf16 %v267_v58, %v263_v19 }
  0xbd   :  { %v250_v26 = vsel %vm244_vm5, %v231_v23, %v235_v44  ;;  %v249_v27 = vsel %vm244_vm5, %v229_v24, %v233_v45  ;;  %v4864_v44 = vld [vmem:[%s8133_s1 + $0x158] sm:$0xff] }
  0xbe   :  { %v266_v35 = vmul.f32 %v4833_v20, %v250_v26  ;;  %v262_v36 = vmul.f32 %v4838_v22, %v249_v27  ;;  %449 = vmatprep.subr.bf16.mxu0 %v271_v25  ;;  %8313 = vst [vmem:[#allocation9_spill] sm:$0xff] %v4864_v44 }
  0xc0   :  { %v243_v45 = vpop.permute.xlu1 %242  ;;  %v241_v33 = vpop.permute.xlu0 %240  ;;  %v270_v46 = vpack.c.bf16 %v266_v35, %v262_v36 }
  0xc1   :  { %v246_v47 = vsel %vm244_vm5, %v239_v7, %v243_v45  ;;  %v252_v48 = vsel %vm244_vm5, %v243_v45, %v231_v23  ;;  %v245_v34 = vsel %vm244_vm5, %v237_v49, %v241_v33  ;;  %v251_v6 = vsel %vm244_vm5, %v241_v33, %v229_v24  ;;  %v4882_v49 = vld [vmem:[%s8133_s1 + $0x1a8] sm:$0xff] }
  0xc2   :  { %v268_v50 = vmul.f32 %v4849_v39, %v246_v47  ;;  %v269_v52 = vmul.f32 %v4854_v40, %v252_v48  ;;  %v264_v58 = vmul.f32 %v4859_v41, %v245_v34  ;;  %v265_v19 = vmul.f32 %v4864_v44, %v251_v6  ;;  %450 = vmatpush1.bf16.msra.mxu0 %v270_v46  ;;  %v4887_v23 = vld [vmem:[%s8133_s1 + $0x188] sm:$0xff]  ;;  %v4898_v47 = vld [vmem:[%s8133_s1 + $0x1a0] sm:$0xff] }
  0xc3   :  { %8314 = vst [vmem:[#allocation10_spill] sm:$0xff] %v4882_v49  ;;  %8315 = vst [vmem:[#allocation11_spill] sm:$0xff] %v4887_v23  ;;  %v4903_v48 = vld [vmem:[%s8133_s1 + $0x180] sm:$0xff] }
  0xc4   :  { %v281_v25 = vpop.permute.xlu1 %280  ;;  %v279_v7 = vpop.permute.xlu0 %278  ;;  %v273_v26 = vpack.c.bf16 %v269_v52, %v265_v19  ;;  %v272_v27 = vpack.c.bf16 %v268_v50, %v264_v58  ;;  %8316 = vst [vmem:[#allocation12_spill] sm:$0xff] %v4898_v47  ;;  %8317 = vst [vmem:[#allocation13_spill] sm:$0xff] %v4903_v48 }
  0xc6   :  { %492 = vmatprep.subr.bf16.mxu1 %v273_v26 }
  0xc7   :  { %493 = vmatpush1.bf16.msra.mxu1 %v272_v27  ;;  %v4914_v27 = vld [vmem:[%s8133_s1 + $0x1b0] sm:$0xff] }
  0xc8   :  { %v285_v24 = vpop.permute.xlu1 %284  ;;  %v283_v35 = vpop.permute.xlu0 %282  ;;  %8318 = vst [vmem:[#allocation14_spill] sm:$0xff] %v4914_v27 }
  0xc9   :  { %v294_v36 = vsel %vm290_vm6, %v281_v25, %v285_v24  ;;  %v293_v45 = vsel %vm290_vm6, %v279_v7, %v283_v35 }
  0xca   :  { %v313_v33 = vmul.f32 %v4882_v49, %v294_v36  ;;  %v309_v46 = vmul.f32 %v4887_v23, %v293_v45  ;;  %v4919_v36 = vld [vmem:[%s8133_s1 + $0x1b8] sm:$0xff] }
  0xcb   :  { %8319 = vst [vmem:[#allocation15_spill] sm:$0xff] %v4919_v36 }
  0xcc   :  { %v277_v34 = vpop.permute.xlu1 %276  ;;  %v275_v6 = vpop.permute.xlu0 %274  ;;  %v317_v50 = vpack.c.bf16 %v313_v33, %v309_v46 }
  0xcd   :  { %v296_v52 = vsel %vm290_vm6, %v277_v34, %v281_v25  ;;  %v295_v58 = vsel %vm290_vm6, %v275_v6, %v279_v7  ;;  %v4924_v25 = vld [vmem:[%s8133_s1 + $0x190] sm:$0xff]  ;;  %v4929_v7 = vld [vmem:[%s8133_s1 + $0x198] sm:$0xff] }
  0xce   :  { %v312_v19 = vmul.f32 %v4898_v47, %v296_v52  ;;  %v308_v26 = vmul.f32 %v4903_v48, %v295_v58  ;;  %451 = vmatprep.subr.bf16.mxu0 %v317_v50  ;;  %8320 = vst [vmem:[#allocation16_spill] sm:$0xff] %v4924_v25  ;;  %8321 = vst [vmem:[#allocation17_spill] sm:$0xff] %v4929_v7 }
  0xd0   :  { %v289_v45 = vpop.permute.xlu1 %288  ;;  %v287_v33 = vpop.permute.xlu0 %286  ;;  %v316_v46 = vpack.c.bf16 %v312_v19, %v308_v26 }
  0xd1   :  { %v292_v50 = vsel %vm290_vm6, %v285_v24, %v289_v45  ;;  %v298_v52 = vsel %vm290_vm6, %v289_v45, %v277_v34  ;;  %v291_v58 = vsel %vm290_vm6, %v283_v35, %v287_v33  ;;  %v297_v8 = vsel %vm290_vm6, %v287_v33, %v275_v6  ;;  %v4947_v35 = vld [vmem:[%s8133_s1 + $0x1e8] sm:$0xff]  ;;  %v4968_v45 = vld [vmem:[%s8133_s1 + $0x1c0] sm:$0xff] }
  0xd2   :  { %v314_v21 = vmul.f32 %v4914_v27, %v292_v50  ;;  %v315_v49 = vmul.f32 %v4919_v36, %v298_v52  ;;  %v310_v47 = vmul.f32 %v4924_v25, %v291_v58  ;;  %v311_v19 = vmul.f32 %v4929_v7, %v297_v8  ;;  %452 = vmatpush1.bf16.msra.mxu0 %v316_v46  ;;  %v4952_v34 = vld [vmem:[%s8133_s1 + $0x1c8] sm:$0xff] }
  0xd3   :  { %8322 = vst [vmem:[#allocation18_spill] sm:$0xff] %v4947_v35  ;;  %8323 = vst [vmem:[#allocation19_spill] sm:$0xff] %v4952_v34 }
  0xd4   :  { %v327_v26 = vpop.permute.xlu1 %326  ;;  %v325_v24 = vpop.permute.xlu0 %324  ;;  %v319_v23 = vpack.c.bf16 %v315_v49, %v311_v19  ;;  %v318_v48 = vpack.c.bf16 %v314_v21, %v310_v47  ;;  %8325 = vst [vmem:[#allocation21_spill] sm:$0xff] %v4968_v45 }
  0xd6   :  { %494 = vmatprep.subr.bf16.mxu1 %v319_v23 }
  0xd7   :  { %495 = vmatpush1.bf16.msra.mxu1 %v318_v48  ;;  %v4963_v48 = vld [vmem:[%s8133_s1 + $0x1e0] sm:$0xff] }
  0xd8   :  { %v331_v8 = vpop.permute.xlu1 %330  ;;  %v329_v6 = vpop.permute.xlu0 %328  ;;  %8324 = vst [vmem:[#allocation20_spill] sm:$0xff] %v4963_v48 }
  0xd9   :  { %v340_v49 = vsel %vm336_vm7, %v327_v26, %v331_v8  ;;  %v339_v21 = vsel %vm336_vm7, %v325_v24, %v329_v6 }
  0xda   :  { %v359_v23 = vmul.f32 %v4947_v35, %v340_v49  ;;  %v355_v47 = vmul.f32 %v4952_v34, %v339_v21  ;;  %v4979_v21 = vld [vmem:[%s8133_s1 + $0x1f0] sm:$0xff] }
  0xdb   :  { %8326 = vst [vmem:[#allocation22_spill] sm:$0xff] %v4979_v21 }
  0xdc   :  { %v323_v33 = vpop.permute.xlu1 %322  ;;  %v321_v46 = vpop.permute.xlu0 %320  ;;  %v363_v50 = vpack.c.bf16 %v359_v23, %v355_v47  ;;  %v4984_v23 = vld [vmem:[%s8133_s1 + $0x1f8] sm:$0xff] }
  0xdd   :  { %v342_v52 = vsel %vm336_vm7, %v323_v33, %v327_v26  ;;  %v341_v58 = vsel %vm336_vm7, %v321_v46, %v325_v24  ;;  %8327 = vst [vmem:[#allocation23_spill] sm:$0xff] %v4984_v23  ;;  %v4989_v26 = vld [vmem:[%s8133_s1 + $0x1d0] sm:$0xff]  ;;  %v4994_v24 = vld [vmem:[%s8133_s1 + $0x1d8] sm:$0xff] }
  0xde   :  { %v358_v19 = vmul.f32 %v4963_v48, %v342_v52  ;;  %v354_v49 = vmul.f32 %v4968_v45, %v341_v58  ;;  %453 = vmatprep.subr.bf16.mxu0 %v363_v50  ;;  %8328 = vst [vmem:[#allocation24_spill] sm:$0xff] %v4989_v26  ;;  %8329 = vst [vmem:[#allocation25_spill] sm:$0xff] %v4994_v24 }
  0xe0   :  { %v335_v47 = vpop.permute.xlu1 %334  ;;  %v333_v50 = vpop.permute.xlu0 %332  ;;  %v362_v52 = vpack.c.bf16 %v358_v19, %v354_v49 }
  0xe1   :  { %v338_v58 = vsel %vm336_vm7, %v331_v8, %v335_v47  ;;  %v344_v35 = vsel %vm336_vm7, %v335_v47, %v323_v33  ;;  %v337_v48 = vsel %vm336_vm7, %v329_v6, %v333_v50  ;;  %v343_v34 = vsel %vm336_vm7, %v333_v50, %v321_v46  ;;  %v5012_v6 = vld [vmem:[%s8133_s1 + $0x228] sm:$0xff]  ;;  %v5033_v33 = vld [vmem:[%s8133_s1 + $0x200] sm:$0xff] }
  0xe2   :  { %v360_v45 = vmul.f32 %v4979_v21, %v338_v58  ;;  %v361_v36 = vmul.f32 %v4984_v23, %v344_v35  ;;  %v356_v27 = vmul.f32 %v4989_v26, %v337_v48  ;;  %v357_v19 = vmul.f32 %v4994_v24, %v343_v34  ;;  %454 = vmatpush1.bf16.msra.mxu0 %v362_v52  ;;  %v5017_v35 = vld [vmem:[%s8133_s1 + $0x208] sm:$0xff] }
  0xe3   :  { %8330 = vst [vmem:[#allocation26_spill] sm:$0xff] %v5012_v6  ;;  %8331 = vst [vmem:[#allocation27_spill] sm:$0xff] %v5017_v35 }
  0xe4   :  { %v373_v49 = vpop.permute.xlu1 %372  ;;  %v371_v8 = vpop.permute.xlu0 %370  ;;  %v365_v7 = vpack.c.bf16 %v361_v36, %v357_v19  ;;  %v364_v25 = vpack.c.bf16 %v360_v45, %v356_v27  ;;  %v5028_v45 = vld [vmem:[%s8133_s1 + $0x220] sm:$0xff]  ;;  %8333 = vst [vmem:[#allocation29_spill] sm:$0xff] %v5033_v33 }
  0xe5   :  { %8332 = vst [vmem:[#allocation28_spill] sm:$0xff] %v5028_v45 }
  0xe6   :  { %496 = vmatprep.subr.bf16.mxu1 %v365_v7 }
  0xe7   :  { %497 = vmatpush1.bf16.msra.mxu1 %v364_v25 }
  0xe8   :  { %v377_v34 = vpop.permute.xlu1 %376  ;;  %v375_v48 = vpop.permute.xlu0 %374 }
  0xe9   :  { %v386_v36 = vsel %vm382_vm8, %v373_v49, %v377_v34  ;;  %v385_v27 = vsel %vm382_vm8, %v371_v8, %v375_v48 }
  0xea   :  { %v405_v25 = vmul.f32 %v5012_v6, %v386_v36  ;;  %v401_v7 = vmul.f32 %v5017_v35, %v385_v27  ;;  %v5044_v27 = vld [vmem:[%s8133_s1 + $0x230] sm:$0xff] }
  0xeb   :  { %8334 = vst [vmem:[#allocation30_spill] sm:$0xff] %v5044_v27 }
  0xec   :  { %v369_v46 = vpop.permute.xlu1 %368  ;;  %v367_v47 = vpop.permute.xlu0 %366  ;;  %v409_v50 = vpack.c.bf16 %v405_v25, %v401_v7  ;;  %v5049_v25 = vld [vmem:[%s8133_s1 + $0x238] sm:$0xff] }
  0xed   :  { %v388_v52 = vsel %vm382_vm8, %v369_v46, %v373_v49  ;;  %v387_v58 = vsel %vm382_vm8, %v367_v47, %v371_v8  ;;  %8335 = vst [vmem:[#allocation31_spill] sm:$0xff] %v5049_v25  ;;  %v5054_v49 = vld [vmem:[%s8133_s1 + $0x210] sm:$0xff]  ;;  %v5059_v8 = vld [vmem:[%s8133_s1 + $0x218] sm:$0xff] }
  0xee   :  { %v404_v19 = vmul.f32 %v5028_v45, %v388_v52  ;;  %v400_v36 = vmul.f32 %v5033_v33, %v387_v58  ;;  %455 = vmatprep.subr.bf16.mxu0 %v409_v50  ;;  %8336 = vst [vmem:[#allocation32_spill] sm:$0xff] %v5054_v49  ;;  %8337 = vst [vmem:[#allocation33_spill] sm:$0xff] %v5059_v8  ;;  %v4073_v33 = vld [vmem:[%s8132_s2] ss:$8 sps:$4 sm:$0xff]  }
  0xf0   :  { %v381_v7 = vpop.permute.xlu1 %380  ;;  %v379_v50 = vpop.permute.xlu0 %378  ;;  %v408_v52 = vpack.c.bf16 %v404_v19, %v400_v36 }
  0xf1   :  { %v384_v58 = vsel %vm382_vm8, %v377_v34, %v381_v7  ;;  %v390_v6 = vsel %vm382_vm8, %v381_v7, %v369_v46  ;;  %v383_v45 = vsel %vm382_vm8, %v375_v48, %v379_v50  ;;  %v389_v35 = vsel %vm382_vm8, %v379_v50, %v367_v47 }
  0xf2   :  { %v406_v23 = vmul.f32 %v5044_v27, %v384_v58  ;;  %v407_v19 = vmul.f32 %v5049_v25, %v390_v6  ;;  %v402_v36 = vmul.f32 %v5054_v49, %v383_v45  ;;  %v403_v34 = vmul.f32 %v5059_v8, %v389_v35  ;;  %456 = vmatpush1.bf16.msra.mxu0 %v408_v52 }
  0xf4   :  { %v411_v46 = vpack.c.bf16 %v407_v19, %v403_v34  ;;  %v410_v7 = vpack.c.bf16 %v406_v23, %v402_v36 }
  0xf5   :  { %472 = vmatmul.mubr.bf16.vlgmr.msra.gmra.mrb[0].mxu0 %v4073_v33 }
  0xf6   :  { %498 = vmatprep.subr.bf16.mxu1 %v411_v46 }
  0xf7   :  { %499 = vmatpush1.bf16.msra.mxu1 %v410_v7 }
  0xfa   :  { %515 = vmatmul.mubr.bf16.vlgmr.msra.gmra.mrb[0].mxu1 %v4073_v33 }
 0x101   :  { %v5076_v48 = vpop.permute.xlu1 %423 }
 0x102   :  { %v5078_v47 = vpop.permute.xlu0 %418 }
 0x106   :  { %v5080_v21 = vpop.permute.xlu1 %535 }
 0x107   :  { %v5085_v19 = vpop.permute.xlu0 %540 }
 0x1c8   :  { %v473_v50 = vpop.f32.mrb[0].mxu0 }
 0x1c9   :  { %v474_v6 = vadd.f32 %v473_v50, %v5078_v47  ;;  %v475_v58 = vpop.f32.mrb[1].mxu0 }
 0x1ca   :  { %v477_v45 = vpop.f32.mrb[2].mxu0 }
 0x1cb   :  { %vm525_vm9 = vcmp.ge.f32.partialorder %v474_v6, 0.0  ;;  %v543_v35 = vmul.f32 %v5080_v21, %v474_v6  ;;  %v478_v23 = vadd.f32 %v477_v45, %v5076_v48  ;;  %v479_v52 = vpop.f32.mrb[3].mxu0 }
 0x1cd   :  { %v551_v33 = vsel %vm525_vm9, %v474_v6, %v543_v35  ;;  %vm529_vm10 = vcmp.ge.f32.partialorder %v478_v23, 0.0  ;;  %v547_v36 = vmul.f32 %v5085_v19, %v478_v23  ;;  %v516_v34 = vpop.f32.mrb[0].mxu1 }
 0x1ce   :  { %v5089_v46 = vadd.f32 %v551_v33, %v4372_v1  ;;  %v518_v7 = vpop.f32.mrb[1].mxu1  ;;  %v517_v25 = vadd.f32 %v516_v34, %v5078_v47 }
 0x1cf   :  { %v555_v50 = vsel %vm529_vm10, %v478_v23, %v547_v36  ;;  %v520_v27 = vpop.f32.mrb[2].mxu1  ;;  %v519_v34 = vadd.f32 %v518_v7, %v5078_v47  ;;  %vm4317_vm10 = vmmov 0  }
 0x1d0   :  { %8338 = vst [vmem:[#allocation34_spill] sm:$0xff] %v5089_v46  ;;  %v5093_v8 = vadd.f32 %v555_v50, %v4386_v3  ;;  %v521_v45 = vadd.f32 %v520_v27, %v5076_v48  ;;  %v522_v49 = vpop.f32.mrb[3].mxu1  ;;  %567 = vrot.lane.b32.xlu1 %v5089_v46, %s4307_s28  ;;  %vm527_vm11 = vcmp.ge.f32.partialorder %v517_v25, 0.0  ;;  %v545_v6 = vmul.f32 %v5080_v21, %v517_v25 }
 0x1d1   :  { %vm528_vm15 = vcmp.ge.f32.partialorder %v519_v34, 0.0 }
 0x1d2   :  { %8339 = vst [vmem:[#allocation35_spill] sm:$0xff] %v5093_v8  ;;  %vm531_vm12 = vcmp.ge.f32.partialorder %v521_v45, 0.0  ;;  %v549_v1 = vmul.f32 %v5085_v19, %v521_v45  ;;  %569 = vrot.lane.b32.xlu0 %v5093_v8, %s4307_s28  ;;  %v553_v35 = vsel %vm527_vm11, %v517_v25, %v545_v6  ;;  %vm1079_vm11 = vcmask 64512  }
 0x1d3   :  { %v5105_v23 = vadd.f32 %v553_v35, %v4400_v5  ;;  %v480_v5 = vadd.f32 %v479_v52, %v5076_v48  ;;  %v546_v52 = vmul.f32 %v5080_v21, %v519_v34  ;;  %v4154_v35 = vld [vmem:[%s8131_s0 + $0x18] sm:$0xff] }
 0x1d4   :  { %v557_v27 = vsel %vm531_vm12, %v521_v45, %v549_v1  ;;  %v523_v45 = vadd.f32 %v522_v49, %v5076_v48  ;;  %v4152_v49 = vld [vmem:[%s8131_s0 + $0x8] sm:$0xff] }
 0x1d5   :  { %8340 = vst [vmem:[#allocation36_spill] sm:$0xff] %v5105_v23  ;;  %v5108_v33 = vadd.f32 %v557_v27, %v4395_v4  ;;  %575 = vrot.lane.b32.xlu1 %v5105_v23, %s4307_s28  ;;  %v476_v4 = vadd.f32 %v475_v58, %v5078_v47  ;;  %v548_v50 = vmul.f32 %v5085_v19, %v480_v5  ;;  %vm530_vm14 = vcmp.ge.f32.partialorder %v480_v5, 0.0 }
 0x1d6   :  { %v550_v1 = vmul.f32 %v5085_v19, %v523_v45  ;;  %vm532_vm9 = vcmp.ge.f32.partialorder %v523_v45, 0.0  ;;  %v554_v19 = vsel %vm528_vm15, %v519_v34, %v546_v52 }
 0x1d7   :  { %8341 = vst [vmem:[#allocation37_spill] sm:$0xff] %v5108_v33  ;;  %577 = vrot.lane.b32.xlu0 %v5108_v33, %s4307_s28  ;;  %v544_v25 = vmul.f32 %v5080_v21, %v476_v4  ;;  %vm526_vm13 = vcmp.ge.f32.partialorder %v476_v4, 0.0  ;;  %v556_v6 = vsel %vm530_vm14, %v480_v5, %v548_v50  ;;  %v4153_v21 = vld [vmem:[%s8131_s0 + $0x28] sm:$0xff]  ;;  %v5197_v27 = vadd.f32 %v4154_v35, %v554_v19  ;;  %v4076_v50 = vld [vmem:[%s8132_s2 + $0x14] ss:$8 sps:$4 sm:$0xff]  }
 0x1d8   :  { %v5188_v47 = vadd.f32 %v4153_v21, %v556_v6  ;;  %v558_v7 = vsel %vm532_vm9, %v523_v45, %v550_v1  ;;  %3894 = vmatprep.mubr.msk.bf16.mxu0 %vm435_vm1, %v4076_v50  ;;  %3895 = vmatprep.mubr.msk.bf16.mxu1 %vm435_vm1, %v4076_v50  ;;  %v3890_v1 = vld [vmem:[%s8134_s3 + $0x10] sm:$0xff]  ;;  %v3891_v21 = vld [vmem:[%s8134_s3 + $0x18] sm:$0xff] }
 0x1d9   :  { %603 = vrot.lane.b32.xlu1 %v5089_v46, %s4308_s18  ;;  %v552_v58 = vsel %vm526_vm13, %v476_v4, %v544_v25  ;;  %8342 = vst [vmem:[#allocation38_spill] sm:$0xff] %v5197_v27  ;;  %v4155_v4 = vld [vmem:[%s8131_s0 + $0x38] sm:$0xff] }
 0x1da   :  { %v5183_v48 = vadd.f32 %v4152_v49, %v552_v58  ;;  %v5202_v5 = vadd.f32 %v4155_v4, %v558_v7 }
 0x1db   :  { %605 = vrot.lane.b32.xlu0 %v5093_v8, %s4308_s18 }
 0x1dc   :  { %8343 = vst [vmem:[#allocation39_spill] sm:$0xff] %v5202_v5 }
 0x1dd   :  { %611 = vrot.lane.b32.xlu1 %v5105_v23, %s4308_s18 }
 0x1df   :  { %613 = vrot.lane.b32.xlu0 %v5108_v33, %s4308_s18 }
 0x1e1   :  { %639 = vrot.lane.b32.xlu1 %v5089_v46, %s4309_s19 }
 0x1e3   :  { %641 = vrot.lane.b32.xlu0 %v5093_v8, %s4309_s19 }
 0x1e5   :  { %647 = vrot.lane.b32.xlu1 %v5105_v23, %s4309_s19 }
 0x1e7   :  { %649 = vrot.lane.b32.xlu0 %v5108_v33, %s4309_s19 }
 0x1e9   :  { %675 = vrot.lane.b32.xlu1 %v5089_v46, %s4310_s20 }
 0x1eb   :  { %677 = vrot.lane.b32.xlu0 %v5093_v8, %s4310_s20 }
 0x1ed   :  { %683 = vrot.lane.b32.xlu1 %v5105_v23, %s4310_s20 }
 0x1ef   :  { %685 = vrot.lane.b32.xlu0 %v5108_v33, %s4310_s20 }
 0x1f1   :  { %723 = vrot.lane.b32.xlu1 %v5105_v23, %s4311_s21 }
 0x1f3   :  { %725 = vrot.lane.b32.xlu0 %v5108_v33, %s4311_s21 }
 0x1f5   :  { %715 = vrot.lane.b32.xlu1 %v5089_v46, %s4311_s21 }
 0x1f7   :  { %717 = vrot.lane.b32.xlu0 %v5093_v8, %s4311_s21 }
 0x1f9   :  { %759 = vrot.lane.b32.xlu1 %v5105_v23, %s4312_s22 }
 0x1fb   :  { %761 = vrot.lane.b32.xlu0 %v5108_v33, %s4312_s22 }
 0x1fd   :  { %751 = vrot.lane.b32.xlu1 %v5089_v46, %s4312_s22 }
 0x1ff   :  { %753 = vrot.lane.b32.xlu0 %v5093_v8, %s4312_s22 }
 0x201   :  { %795 = vrot.lane.b32.xlu1 %v5105_v23, %s4313_s23 }
 0x203   :  { %797 = vrot.lane.b32.xlu0 %v5108_v33, %s4313_s23 }
 0x205   :  { %787 = vrot.lane.b32.xlu1 %v5089_v46, %s4313_s23 }
 0x207   :  { %789 = vrot.lane.b32.xlu0 %v5093_v8, %s4313_s23 }
 0x209   :  { %831 = vrot.lane.b32.xlu1 %v5105_v23, %s4314_s24 }
 0x20b   :  { %833 = vrot.lane.b32.xlu0 %v5108_v33, %s4314_s24 }
 0x20d   :  { %823 = vrot.lane.b32.xlu1 %v5089_v46, %s4314_s24 }
 0x20f   :  { %825 = vrot.lane.b32.xlu0 %v5093_v8, %s4314_s24 }
 0x211   :  { %571 = vrot.lane.b32.xlu1 %v5183_v48, %s4307_s28 }
 0x213   :  { %573 = vrot.lane.b32.xlu0 %v5188_v47, %s4307_s28 }
 0x215   :  { %579 = vrot.lane.b32.xlu1 %v5197_v27, %s4307_s28 }
 0x217   :  { %581 = vrot.lane.b32.xlu0 %v5202_v5, %s4307_s28 }
 0x219   :  { %607 = vrot.lane.b32.xlu1 %v5183_v48, %s4308_s18 }
 0x21b   :  { %609 = vrot.lane.b32.xlu0 %v5188_v47, %s4308_s18 }
 0x21d   :  { %615 = vrot.lane.b32.xlu1 %v5197_v27, %s4308_s18 }
 0x21f   :  { %617 = vrot.lane.b32.xlu0 %v5202_v5, %s4308_s18 }
 0x221   :  { %643 = vrot.lane.b32.xlu1 %v5183_v48, %s4309_s19 }
 0x223   :  { %645 = vrot.lane.b32.xlu0 %v5188_v47, %s4309_s19 }
 0x225   :  { %651 = vrot.lane.b32.xlu1 %v5197_v27, %s4309_s19 }
 0x227   :  { %653 = vrot.lane.b32.xlu0 %v5202_v5, %s4309_s19 }
 0x229   :  { %679 = vrot.lane.b32.xlu1 %v5183_v48, %s4310_s20 }
 0x22b   :  { %681 = vrot.lane.b32.xlu0 %v5188_v47, %s4310_s20 }
 0x22d   :  { %687 = vrot.lane.b32.xlu1 %v5197_v27, %s4310_s20 }
 0x22f   :  { %689 = vrot.lane.b32.xlu0 %v5202_v5, %s4310_s20 }
 0x231   :  { %719 = vrot.lane.b32.xlu1 %v5183_v48, %s4311_s21 }
 0x233   :  { %721 = vrot.lane.b32.xlu0 %v5188_v47, %s4311_s21 }
 0x235   :  { %727 = vrot.lane.b32.xlu1 %v5197_v27, %s4311_s21 }
 0x237   :  { %729 = vrot.lane.b32.xlu0 %v5202_v5, %s4311_s21 }
 0x239   :  { %755 = vrot.lane.b32.xlu1 %v5183_v48, %s4312_s22 }
 0x23b   :  { %757 = vrot.lane.b32.xlu0 %v5188_v47, %s4312_s22 }
 0x23d   :  { %763 = vrot.lane.b32.xlu1 %v5197_v27, %s4312_s22 }
 0x23f   :  { %765 = vrot.lane.b32.xlu0 %v5202_v5, %s4312_s22 }
 0x241   :  { %791 = vrot.lane.b32.xlu1 %v5183_v48, %s4313_s23 }
 0x242   :  { %v568_v25 = vpop.permute.xlu1 %567 }
 0x243   :  { %793 = vrot.lane.b32.xlu0 %v5188_v47, %s4313_s23 }
 0x244   :  { %v570_v34 = vpop.permute.xlu0 %569 }
 0x245   :  { %799 = vrot.lane.b32.xlu1 %v5197_v27, %s4313_s23 }
 0x247   :  { %801 = vrot.lane.b32.xlu0 %v5202_v5, %s4313_s23  ;;  %v576_v45 = vpop.permute.xlu1 %575 }
 0x249   :  { %v578_v58 = vpop.permute.xlu0 %577  ;;  %827 = vrot.lane.b32.xlu1 %v5183_v48, %s4314_s24 }
 0x24b   :  { %829 = vrot.lane.b32.xlu0 %v5188_v47, %s4314_s24  ;;  %v5265_v52 = vpop.permute.xlu1 %603 }
 0x24d   :  { %v5267_v6 = vpop.permute.xlu0 %605  ;;  %835 = vrot.lane.b32.xlu1 %v5197_v27, %s4314_s24 }
 0x24f   :  { %837 = vrot.lane.b32.xlu0 %v5202_v5, %s4314_s24  ;;  %v5276_v49 = vpop.permute.xlu1 %611 }
 0x251   :  { %v5281_v19 = vpop.permute.xlu0 %613  ;;  %867 = vperm.xlu1 %4062, %v3890_v1  }
 0x253   :  { %872 = vperm.xlu0 %4061, %v3891_v21   ;;  %v5283_v7 = vpop.permute.xlu1 %639 }
 0x255   :  { %v5285_v35 = vpop.permute.xlu0 %641 }
 0x257   :  { %v5287_v4 = vpop.permute.xlu1 %647 }
 0x259   :  { %v5289_v50 = vpop.permute.xlu0 %649 }
 0x25b   :  { %v5291_v36 = vpop.permute.xlu1 %675 }
 0x25d   :  { %v5293_v3 = vpop.permute.xlu0 %677 }
 0x25f   :  { %v5295_v24 = vpop.permute.xlu1 %683 }
 0x261   :  { %v5297_v26 = vpop.permute.xlu0 %685 }
 0x263   :  { %v5299_v23 = vpop.permute.xlu1 %723 }
 0x265   :  { %v5301_v1 = vpop.permute.xlu0 %725 }
 0x266   :  { %8344 = vst [vmem:[#allocation40_spill] sm:$0xff] %v5301_v1 }
 0x267   :  { %v5303_v21 = vpop.permute.xlu1 %715 }
 0x268   :  { %8345 = vst [vmem:[#allocation41_spill] sm:$0xff] %v5303_v21 }
 0x269   :  { %v5305_v33 = vpop.permute.xlu0 %717 }
 0x26a   :  { %8346 = vst [vmem:[#allocation42_spill] sm:$0xff] %v5305_v33 }
 0x26b   :  { %v5307_v46 = vpop.permute.xlu1 %759 }
 0x26c   :  { %8347 = vst [vmem:[#allocation43_spill] sm:$0xff] %v5307_v46 }
 0x26d   :  { %v5309_v8 = vpop.permute.xlu0 %761 }
 0x26e   :  { %8348 = vst [vmem:[#allocation44_spill] sm:$0xff] %v5309_v8 }
 0x26f   :  { %v5311_v40 = vpop.permute.xlu1 %751 }
 0x270   :  { %8349 = vst [vmem:[#allocation45_spill] sm:$0xff] %v5311_v40 }
 0x271   :  { %v5313_v39 = vpop.permute.xlu0 %753 }
 0x272   :  { %8350 = vst [vmem:[#allocation46_spill] sm:$0xff] %v5313_v39 }
 0x273   :  { %v5315_v44 = vpop.permute.xlu1 %795 }
 0x274   :  { %8351 = vst [vmem:[#allocation47_spill] sm:$0xff] %v5315_v44 }
 0x275   :  { %v5317_v41 = vpop.permute.xlu0 %797 }
 0x276   :  { %8352 = vst [vmem:[#allocation48_spill] sm:$0xff] %v5317_v41 }
 0x277   :  { %v5319_v22 = vpop.permute.xlu1 %787 }
 0x278   :  { %8353 = vst [vmem:[#allocation49_spill] sm:$0xff] %v5319_v22 }
 0x279   :  { %v5321_v20 = vpop.permute.xlu0 %789 }
 0x27a   :  { %8354 = vst [vmem:[#allocation50_spill] sm:$0xff] %v5321_v20  ;;  %v4156_v20 = vld [vmem:[%s8133_s1 + $0x8] sm:$0xff] }
 0x27b   :  { %v5323_v0 = vpop.permute.xlu1 %831 }
 0x27c   :  { %8355 = vst [vmem:[#allocation51_spill] sm:$0xff] %v5323_v0 }
 0x27d   :  { %v5325_v2 = vpop.permute.xlu0 %833 }
 0x27e   :  { %8356 = vst [vmem:[#allocation52_spill] sm:$0xff] %v5325_v2 }
 0x27f   :  { %v5327_v21 = vpop.permute.xlu1 %823 }
 0x280   :  { %8357 = vst [vmem:[#allocation53_spill] sm:$0xff] %v5327_v21 }
 0x281   :  { %v5329_v46 = vpop.permute.xlu0 %825 }
 0x282   :  { %8358 = vst [vmem:[#allocation54_spill] sm:$0xff] %v5329_v46  ;;  %v4157_v46 = vld [vmem:[%s8133_s1 + $0x28] sm:$0xff] }
 0x283   :  { %v572_v8 = vpop.permute.xlu1 %571 }
 0x284   :  { %v587_v39 = vsel %vm57_vm0, %v568_v25, %v572_v8  ;;  %v585_v44 = vsel %vm57_vm0, %v572_v8, %v576_v45 }
 0x285   :  { %v574_v40 = vpop.permute.xlu0 %573  ;;  %v592_v22 = vmul.f32 %v4156_v20, %v587_v39 }
 0x286   :  { %v588_v41 = vsel %vm57_vm0, %v570_v34, %v574_v40  ;;  %v586_v2 = vsel %vm57_vm0, %v574_v40, %v578_v58 }
 0x287   :  { %v596_v21 = vmul.f32 %v4157_v46, %v588_v41  ;;  %v580_v0 = vpop.permute.xlu1 %579  ;;  %v597_v39 = vmul.f32 %v586_v2, %v4559_v28 }
 0x288   :  { %v583_v5 = vsel %vm57_vm0, %v576_v45, %v580_v0  ;;  %v589_v27 = vsel %vm57_vm0, %v580_v0, %v568_v25  ;;  %v4158_v0 = vld [vmem:[%s8133_s1 + $0x10] sm:$0xff] }
 0x289   :  { %v582_v33 = vpop.permute.xlu0 %581  ;;  %v600_v20 = vpack.c.bf16 %v596_v21, %v592_v22  ;;  %v591_v46 = vmul.f32 %v589_v27, %v4568_v29  ;;  %v594_v8 = vmul.f32 %v583_v5, %v4578_v31  ;;  %v593_v28 = vmul.f32 %v4158_v0, %v585_v44 }
 0x28a   :  { %v584_v40 = vsel %vm57_vm0, %v578_v58, %v582_v33  ;;  %v590_v41 = vsel %vm57_vm0, %v582_v33, %v570_v34 }
 0x28b   :  { %v595_v1 = vmul.f32 %v590_v41, %v4573_v30  ;;  %v598_v45 = vmul.f32 %v584_v40, %v4583_v32  ;;  %887 = vmatprep.subr.bf16.mxu0 %v600_v20  ;;  %v608_v2 = vpop.permute.xlu1 %607  ;;  %v601_v27 = vpack.c.bf16 %v597_v39, %v593_v28 }
 0x28c   :  { %v623_v33 = vsel %vm102_vm2, %v5265_v52, %v608_v2  ;;  %v621_v34 = vsel %vm102_vm2, %v608_v2, %v5276_v49 }
 0x28d   :  { %v599_v22 = vpack.c.bf16 %v595_v1, %v591_v46  ;;  %v610_v25 = vpop.permute.xlu0 %609  ;;  %v602_v29 = vpack.c.bf16 %v598_v45, %v594_v8  ;;  %v628_v31 = vmul.f32 %v4619_v55, %v623_v33  ;;  %v629_v46 = vmul.f32 %v4637_v13, %v621_v34 }
 0x28e   :  { %v624_v30 = vsel %vm102_vm2, %v5267_v6, %v610_v25  ;;  %v622_v32 = vsel %vm102_vm2, %v610_v25, %v5281_v19 }
 0x28f   :  { %v632_v44 = vmul.f32 %v4614_v54, %v624_v30  ;;  %888 = vmatpush1.bf16.msra.mxu0 %v599_v22  ;;  %930 = vmatprep.subr.bf16.mxu1 %v602_v29  ;;  %v616_v5 = vpop.permute.xlu1 %615  ;;  %v633_v54 = vmul.f32 %v4630_v11, %v622_v32 }
 0x290   :  { %931 = vmatpush1.bf16.msra.mxu1 %v601_v27  ;;  %v619_v58 = vsel %vm102_vm2, %v5276_v49, %v616_v5  ;;  %v625_v55 = vsel %vm102_vm2, %v616_v5, %v5265_v52 }
 0x291   :  { %v618_v1 = vpop.permute.xlu0 %617  ;;  %v636_v21 = vpack.c.bf16 %v632_v44, %v628_v31  ;;  %v627_v40 = vmul.f32 %v4654_v17, %v625_v55  ;;  %v630_v49 = vmul.f32 %v4659_v18, %v619_v58 }
 0x292   :  { %v620_v20 = vsel %vm102_vm2, %v5281_v19, %v618_v1  ;;  %v626_v39 = vsel %vm102_vm2, %v618_v1, %v5267_v6  ;;  %v637_v6 = vpack.c.bf16 %v633_v54, %v629_v46  ;;  %v8361_v46 = vld [vmem:[#allocation38_spill] sm:$0xff] }
 0x293   :  { %v631_v41 = vmul.f32 %v4644_v15, %v626_v39  ;;  %v634_v52 = vmul.f32 %v4649_v16, %v620_v20  ;;  %889 = vmatprep.subr.bf16.mxu0 %v636_v21  ;;  %v644_v11 = vpop.permute.xlu1 %643 }
 0x294   :  { %v659_v19 = vsel %vm148_vm3, %v5283_v7, %v644_v11  ;;  %v657_v28 = vsel %vm148_vm3, %v644_v11, %v5287_v4  ;;  %v8362_v11 = vld [vmem:[#allocation39_spill] sm:$0xff] }
 0x295   :  { %v635_v8 = vpack.c.bf16 %v631_v41, %v627_v40  ;;  %v646_v45 = vpop.permute.xlu0 %645  ;;  %v638_v0 = vpack.c.bf16 %v634_v52, %v630_v49  ;;  %v664_v15 = vmul.f32 %v4684_v43, %v659_v19  ;;  %v665_v31 = vmul.f32 %v4702_v57, %v657_v28  ;;  %v8363_v19 = vld [vmem:[#allocation41_spill] sm:$0xff] }
 0x296   :  { %v660_v17 = vsel %vm148_vm3, %v5285_v35, %v646_v45  ;;  %v658_v16 = vsel %vm148_vm3, %v646_v45, %v5289_v50 }
 0x297   :  { %v668_v13 = vmul.f32 %v4679_v42, %v660_v17  ;;  %890 = vmatpush1.bf16.msra.mxu0 %v635_v8  ;;  %932 = vmatprep.subr.bf16.mxu1 %v638_v0  ;;  %v652_v18 = vpop.permute.xlu1 %651  ;;  %v669_v42 = vmul.f32 %v4695_v53, %v658_v16  ;;  %v714_v8 = vpack.c.bf16 %v8362_v11, %v8361_v46  ;;  %v8364_v0 = vld [vmem:[#allocation3_spill] sm:$0xff]  ;;  %v8365_v17 = vld [vmem:[#allocation2_spill] sm:$0xff]  ;;  %v8386_v46 = vld [vmem:[#allocation16_spill] sm:$0xff] }
 0x298   :  { %933 = vmatpush1.bf16.msra.mxu1 %v637_v6  ;;  %v655_v2 = vsel %vm148_vm3, %v5287_v4, %v652_v18  ;;  %v661_v43 = vsel %vm148_vm3, %v652_v18, %v5283_v7 }
 0x299   :  { %v654_v22 = vpop.permute.xlu0 %653  ;;  %v672_v33 = vpack.c.bf16 %v668_v13, %v664_v15  ;;  %v663_v27 = vmul.f32 %v4719_v61, %v661_v43  ;;  %v666_v4 = vmul.f32 %v4724_v62, %v655_v2  ;;  %v8367_v43 = vld [vmem:[#allocation5_spill] sm:$0xff] }
 0x29a   :  { %v656_v25 = vsel %vm148_vm3, %v5289_v50, %v654_v22  ;;  %v662_v29 = vsel %vm148_vm3, %v654_v22, %v5285_v35  ;;  %v673_v35 = vpack.c.bf16 %v669_v42, %v665_v31 }
 0x29b   :  { %v667_v30 = vmul.f32 %v4709_v59, %v662_v29  ;;  %v670_v7 = vmul.f32 %v4714_v60, %v656_v25  ;;  %891 = vmatprep.subr.bf16.mxu0 %v672_v33  ;;  %v680_v53 = vpop.permute.xlu1 %679  ;;  %v8368_v25 = vld [vmem:[#allocation8_spill] sm:$0xff] }
 0x29c   :  { %v695_v50 = vsel %vm194_vm4, %v5291_v36, %v680_v53  ;;  %v693_v34 = vsel %vm194_vm4, %v680_v53, %v5295_v24  ;;  %v8372_v53 = vld [vmem:[#allocation35_spill] sm:$0xff] }
 0x29d   :  { %v671_v32 = vpack.c.bf16 %v667_v30, %v663_v27  ;;  %v682_v44 = vpop.permute.xlu0 %681  ;;  %v674_v5 = vpack.c.bf16 %v670_v7, %v666_v4  ;;  %v700_v59 = vmul.f32 %v4749_v38, %v695_v50  ;;  %v701_v40 = vmul.f32 %v4767_v56, %v693_v34  ;;  %v8370_v4 = vld [vmem:[#allocation6_spill] sm:$0xff]  ;;  %v8371_v7 = vld [vmem:[#allocation7_spill] sm:$0xff]  ;;  %v8379_v34 = vld [vmem:[#allocation45_spill] sm:$0xff] }
 0x29e   :  { %v696_v61 = vsel %vm194_vm4, %v5293_v3, %v682_v44  ;;  %v694_v60 = vsel %vm194_vm4, %v682_v44, %v5297_v26 }
 0x29f   :  { %v704_v57 = vmul.f32 %v4744_v37, %v696_v61  ;;  %892 = vmatpush1.bf16.msra.mxu0 %v671_v32  ;;  %934 = vmatprep.subr.bf16.mxu1 %v674_v5  ;;  %v688_v62 = vpop.permute.xlu1 %687  ;;  %v705_v37 = vmul.f32 %v4760_v51, %v694_v60  ;;  %v8373_v32 = vld [vmem:[#allocation34_spill] sm:$0xff]  ;;  %v8376_v61 = vld [vmem:[#allocation36_spill] sm:$0xff] }
 0x2a0   :  { %935 = vmatpush1.bf16.msra.mxu1 %v673_v35  ;;  %v691_v58 = vsel %vm194_vm4, %v5295_v24, %v688_v62  ;;  %v697_v38 = vsel %vm194_vm4, %v688_v62, %v5291_v36  ;;  %v8374_v50 = vpack.c.bf16 %v8372_v53, %v8373_v32  ;;  %v8375_v35 = vld [vmem:[#allocation37_spill] sm:$0xff] }
 0x2a1   :  { %v690_v55 = vpop.permute.xlu0 %689  ;;  %v708_v1 = vpack.c.bf16 %v704_v57, %v700_v59  ;;  %v699_v20 = vmul.f32 %v4784_v12, %v697_v38  ;;  %v702_v24 = vmul.f32 %v4789_v14, %v691_v58  ;;  %v712_v12 = vpack.c.bf16 %v5188_v47, %v5183_v48  ;;  %v8359_v14 = vld [vmem:[#allocation40_spill] sm:$0xff]  ;;  %v8378_v57 = vld [vmem:[#allocation43_spill] sm:$0xff] }
 0x2a2   :  { %v692_v21 = vsel %vm194_vm4, %v5297_v26, %v690_v55  ;;  %v698_v54 = vsel %vm194_vm4, %v690_v55, %v5293_v3  ;;  %v709_v3 = vpack.c.bf16 %v705_v37, %v701_v40  ;;  %v8366_v47 = vld [vmem:[#allocation4_spill] sm:$0xff]  ;;  %v8377_v59 = vpack.c.bf16 %v8375_v35, %v8376_v61 }
 0x2a3   :  { %v703_v39 = vmul.f32 %v4774_v63, %v698_v54  ;;  %v706_v36 = vmul.f32 %v4779_v10, %v692_v21  ;;  %893 = vmatprep.subr.bf16.mxu0 %v708_v1  ;;  %v720_v51 = vpop.permute.xlu1 %719  ;;  %v8360_v10 = vld [vmem:[#allocation42_spill] sm:$0xff]  ;;  %v8380_v1 = vld [vmem:[#allocation13_spill] sm:$0xff]  ;;  %v8381_v21 = vld [vmem:[#allocation44_spill] sm:$0xff] }
 0x2a4   :  { %v733_v26 = vsel %vm244_vm5, %v720_v51, %v5299_v23  ;;  %v735_v45 = vsel %vm244_vm5, %v8363_v19, %v720_v51  ;;  %v8384_v40 = vld [vmem:[#allocation12_spill] sm:$0xff] }
 0x2a5   :  { %v707_v49 = vpack.c.bf16 %v703_v39, %v699_v20  ;;  %v722_v41 = vpop.permute.xlu0 %721  ;;  %v710_v52 = vpack.c.bf16 %v706_v36, %v702_v24  ;;  %v740_v6 = vmul.f32 %v8364_v0, %v733_v26  ;;  %v739_v22 = vmul.f32 %v8367_v43, %v735_v45  ;;  %v8382_v20 = vld [vmem:[#allocation46_spill] sm:$0xff]  ;;  %v8383_v39 = vld [vmem:[#allocation11_spill] sm:$0xff]  ;;  %v8392_v43 = vld [vmem:[#allocation48_spill] sm:$0xff] }
 0x2a6   :  { %v734_v63 = vsel %vm244_vm5, %v722_v41, %v8359_v14  ;;  %v736_v56 = vsel %vm244_vm5, %v8360_v10, %v722_v41  ;;  %v8388_v45 = vld [vmem:[#allocation14_spill] sm:$0xff] }
 0x2a7   :  { %v744_v48 = vmul.f32 %v8365_v17, %v734_v63  ;;  %894 = vmatpush1.bf16.msra.mxu0 %v707_v49  ;;  %936 = vmatprep.subr.bf16.mxu1 %v710_v52  ;;  %v743_v15 = vmul.f32 %v8366_v47, %v736_v56  ;;  %v728_v16 = vpop.permute.xlu1 %727  ;;  %v8385_v49 = vld [vmem:[#allocation10_spill] sm:$0xff] }
 0x2a8   :  { %895 = vmatprep.subr.bf16.mxu0 %v712_v12  ;;  %937 = vmatpush1.bf16.msra.mxu1 %v709_v3  ;;  %v731_v13 = vsel %vm244_vm5, %v5299_v23, %v728_v16  ;;  %v737_v18 = vsel %vm244_vm5, %v728_v16, %v8363_v19  ;;  %v8369_v23 = vld [vmem:[#allocation9_spill] sm:$0xff] }
 0x2a9   :  { %v730_v28 = vpop.permute.xlu0 %729  ;;  %938 = vmatprep.subr.bf16.mxu1 %v714_v8  ;;  %v748_v2 = vpack.c.bf16 %v744_v48, %v740_v6  ;;  %v741_v29 = vmul.f32 %v8368_v25, %v731_v13  ;;  %v742_v27 = vmul.f32 %v8369_v23, %v737_v18  ;;  %v747_v44 = vpack.c.bf16 %v743_v15, %v739_v22  ;;  %v8387_v8 = vld [vmem:[#allocation17_spill] sm:$0xff]  ;;  %v8389_v6 = vld [vmem:[#allocation15_spill] sm:$0xff] }
 0x2aa   :  { %v732_v33 = vsel %vm244_vm5, %v8359_v14, %v730_v28  ;;  %v738_v42 = vsel %vm244_vm5, %v730_v28, %v8360_v10  ;;  %v8390_v15 = vld [vmem:[#allocation47_spill] sm:$0xff]  ;;  %v8391_v13 = vld [vmem:[#allocation49_spill] sm:$0xff] }
 0x2ab   :  { %v745_v30 = vmul.f32 %v8370_v4, %v732_v33  ;;  %v746_v31 = vmul.f32 %v8371_v7, %v738_v42  ;;  %896 = vmatpush1.bf16.msra.mxu0 %v8374_v50  ;;  %v756_v5 = vpop.permute.xlu1 %755  ;;  %v8393_v33 = vld [vmem:[#allocation50_spill] sm:$0xff]  ;;  %v8394_v25 = vld [vmem:[#allocation21_spill] sm:$0xff]  ;;  %v8395_v23 = vld [vmem:[#allocation19_spill] sm:$0xff] }
 0x2ac   :  { %897 = vmatprep.subr.bf16.mxu0 %v748_v2  ;;  %939 = vmatpush1.bf16.msra.mxu1 %v8377_v59  ;;  %v769_v62 = vsel %vm290_vm6, %v756_v5, %v8378_v57  ;;  %v771_v58 = vsel %vm290_vm6, %v8379_v34, %v756_v5  ;;  %v8396_v4 = vld [vmem:[#allocation20_spill] sm:$0xff]  ;;  %v8397_v7 = vld [vmem:[#allocation18_spill] sm:$0xff] }
 0x2ad   :  { %v749_v60 = vpack.c.bf16 %v745_v30, %v741_v29  ;;  %v758_v38 = vpop.permute.xlu0 %757  ;;  %v750_v55 = vpack.c.bf16 %v746_v31, %v742_v27  ;;  %v775_v37 = vmul.f32 %v8380_v1, %v771_v58  ;;  %v776_v36 = vmul.f32 %v8383_v39, %v769_v62  ;;  %v8399_v62 = vld [vmem:[#allocation25_spill] sm:$0xff]  ;;  %v8400_v58 = vld [vmem:[#allocation22_spill] sm:$0xff] }
 0x2ae   :  { %v770_v54 = vsel %vm290_vm6, %v758_v38, %v8381_v21  ;;  %v772_v24 = vsel %vm290_vm6, %v8382_v20, %v758_v38 }
 0x2af   :  { %v779_v51 = vmul.f32 %v8384_v40, %v772_v24  ;;  %v780_v26 = vmul.f32 %v8385_v49, %v770_v54  ;;  %940 = vmatprep.subr.bf16.mxu1 %v750_v55  ;;  %898 = vmatpush1.bf16.msra.mxu0 %v747_v44  ;;  %v764_v41 = vpop.permute.xlu1 %763  ;;  %v8401_v55 = vld [vmem:[#allocation23_spill] sm:$0xff]  ;;  %v8403_v24 = vld [vmem:[#allocation53_spill] sm:$0xff] }
 0x2b0   :  { %941 = vmatpush1.bf16.msra.mxu1 %v749_v60  ;;  %v767_v12 = vsel %vm290_vm6, %v8378_v57, %v764_v41  ;;  %v773_v3 = vsel %vm290_vm6, %v764_v41, %v8379_v34  ;;  %v8398_v60 = vld [vmem:[#allocation24_spill] sm:$0xff]  ;;  %v8402_v54 = vld [vmem:[#allocation51_spill] sm:$0xff] }
 0x2b1   :  { %v783_v52 = vpack.c.bf16 %v779_v51, %v775_v37  ;;  %v766_v14 = vpop.permute.xlu0 %765  ;;  %v784_v63 = vpack.c.bf16 %v780_v26, %v776_v36  ;;  %v777_v11 = vmul.f32 %v8386_v46, %v767_v12  ;;  %v778_v19 = vmul.f32 %v8387_v8, %v773_v3  ;;  %v8404_v51 = vld [vmem:[#allocation52_spill] sm:$0xff]  ;;  %v8405_v26 = vld [vmem:[#allocation54_spill] sm:$0xff]  ;;  %v8407_v3 = vld [vmem:[#allocation27_spill] sm:$0xff] }
 0x2b2   :  { %v768_v10 = vsel %vm290_vm6, %v8381_v21, %v766_v14  ;;  %v774_v56 = vsel %vm290_vm6, %v766_v14, %v8382_v20 }
 0x2b3   :  { %v781_v0 = vmul.f32 %v8388_v45, %v768_v10  ;;  %v782_v17 = vmul.f32 %v8389_v6, %v774_v56  ;;  %899 = vmatprep.subr.bf16.mxu0 %v784_v63  ;;  %v792_v48 = vpop.permute.xlu1 %791  ;;  %v8408_v63 = vld [vmem:[#allocation28_spill] sm:$0xff]  ;;  %v8409_v56 = vld [vmem:[#allocation26_spill] sm:$0xff] }
 0x2b4   :  { %900 = vmatpush1.bf16.msra.mxu0 %v783_v52  ;;  %v805_v16 = vsel %vm336_vm7, %v792_v48, %v8390_v15  ;;  %v807_v18 = vsel %vm336_vm7, %v8391_v13, %v792_v48  ;;  %v8406_v52 = vld [vmem:[#allocation29_spill] sm:$0xff] }
 0x2b5   :  { %v785_v47 = vpack.c.bf16 %v781_v0, %v777_v11  ;;  %v794_v28 = vpop.permute.xlu0 %793  ;;  %v786_v2 = vpack.c.bf16 %v782_v17, %v778_v19  ;;  %v811_v29 = vmul.f32 %v8394_v25, %v807_v18  ;;  %v812_v27 = vmul.f32 %v8395_v23, %v805_v16  ;;  %v8411_v16 = vld [vmem:[#allocation33_spill] sm:$0xff]  ;;  %v8412_v18 = vld [vmem:[#allocation30_spill] sm:$0xff] }
 0x2b6   :  { %v806_v22 = vsel %vm336_vm7, %v794_v28, %v8392_v43  ;;  %v808_v42 = vsel %vm336_vm7, %v8393_v33, %v794_v28 }
 0x2b7   :  { %v815_v30 = vmul.f32 %v8396_v4, %v808_v42  ;;  %v816_v31 = vmul.f32 %v8397_v7, %v806_v22  ;;  %942 = vmatprep.subr.bf16.mxu1 %v786_v2  ;;  %v800_v53 = vpop.permute.xlu1 %799  ;;  %v8413_v2 = vld [vmem:[#allocation31_spill] sm:$0xff]  ;;  %v4078_v22 = vld [vmem:[%s8132_s2 + $0x10] ss:$8 sps:$4 sm:$0xff]  }
 0x2b8   :  { %943 = vmatpush1.bf16.msra.mxu1 %v785_v47  ;;  %v803_v50 = vsel %vm336_vm7, %v8390_v15, %v800_v53  ;;  %v809_v44 = vsel %vm336_vm7, %v800_v53, %v8391_v13  ;;  %v8410_v47 = vld [vmem:[#allocation32_spill] sm:$0xff] }
 0x2b9   :  { %v819_v32 = vpack.c.bf16 %v815_v30, %v811_v29  ;;  %v802_v5 = vpop.permute.xlu0 %801  ;;  %v820_v35 = vpack.c.bf16 %v816_v31, %v812_v27  ;;  %v813_v57 = vmul.f32 %v8398_v60, %v803_v50  ;;  %v814_v34 = vmul.f32 %v8399_v62, %v809_v44 }
 0x2ba   :  { %v804_v61 = vsel %vm336_vm7, %v8392_v43, %v802_v5  ;;  %v810_v59 = vsel %vm336_vm7, %v802_v5, %v8393_v33 }
 0x2bb   :  { %v817_v38 = vmul.f32 %v8400_v58, %v804_v61  ;;  %v818_v1 = vmul.f32 %v8401_v55, %v810_v59  ;;  %901 = vmatprep.subr.bf16.mxu0 %v820_v35  ;;  %v828_v37 = vpop.permute.xlu1 %827  ;;  %v8200_v55 = vmov 0.0|0.0  }
 0x2bc   :  { %902 = vmatpush1.bf16.msra.mxu0 %v819_v32  ;;  %v841_v20 = vsel %vm382_vm8, %v828_v37, %v8402_v54  ;;  %v843_v39 = vsel %vm382_vm8, %v8403_v24, %v828_v37  ;;  %v5628_v37 = vld [vmem:[%s8136_s5] sm:$0xff] }
 0x2bd   :  { %v821_v21 = vpack.c.bf16 %v817_v38, %v813_v57  ;;  %v830_v36 = vpop.permute.xlu0 %829  ;;  %v822_v40 = vpack.c.bf16 %v818_v1, %v814_v34  ;;  %v847_v12 = vmul.f32 %v8406_v52, %v843_v39  ;;  %v848_v14 = vmul.f32 %v8407_v3, %v841_v20 }
 0x2be   :  { %v842_v49 = vsel %vm382_vm8, %v830_v36, %v8404_v51  ;;  %v844_v41 = vsel %vm382_vm8, %v8405_v26, %v830_v36  ;;  %v8198_v1 = vmov 0.0  }
 0x2bf   :  { %v851_v10 = vmul.f32 %v8408_v63, %v844_v41  ;;  %v852_v46 = vmul.f32 %v8409_v56, %v842_v49  ;;  %944 = vmatprep.subr.bf16.mxu1 %v822_v40  ;;  %v836_v11 = vpop.permute.xlu1 %835  ;;  %v4159_v56 = vld [vmem:[%s8135_s4] sm:$0xff] }
 0x2c0   :  { %945 = vmatpush1.bf16.msra.mxu1 %v821_v21  ;;  %v839_v19 = vsel %vm382_vm8, %v8402_v54, %v836_v11  ;;  %v845_v45 = vsel %vm382_vm8, %v836_v11, %v8403_v24 }
 0x2c1   :  { %v855_v8 = vpack.c.bf16 %v851_v10, %v847_v12  ;;  %v838_v0 = vpop.permute.xlu0 %837  ;;  %v856_v6 = vpack.c.bf16 %v852_v46, %v848_v14  ;;  %v849_v15 = vmul.f32 %v8410_v47, %v839_v19  ;;  %v850_v13 = vmul.f32 %v8411_v16, %v845_v45  ;;  %v4160_v45 = vld [vmem:[%s8135_s4 + $0x8] sm:$0xff] }
 0x2c2   :  { %v840_v17 = vsel %vm382_vm8, %v8404_v51, %v838_v0  ;;  %v846_v48 = vsel %vm382_vm8, %v838_v0, %v8405_v26 }
 0x2c3   :  { %v853_v28 = vmul.f32 %v8412_v18, %v840_v17  ;;  %v854_v43 = vmul.f32 %v8413_v2, %v846_v48  ;;  %903 = vmatprep.subr.bf16.mxu0 %v856_v6 }
 0x2c4   :  { %904 = vmatpush1.bf16.msra.mxu0 %v855_v8 }
 0x2c5   :  { %v857_v33 = vpack.c.bf16 %v853_v28, %v849_v15  ;;  %v858_v42 = vpack.c.bf16 %v854_v43, %v850_v13  ;;  %4016 = vmatprep.subr.bf16.mxu0 %v8200_v55 }
 0x2c7   :  { %920 = vmatmul.mubr.bf16.vlgmr.msra.gmra.mrb[4].mxu0 %v4078_v22  ;;  %946 = vmatprep.subr.bf16.mxu1 %v858_v42 }
 0x2c8   :  { %947 = vmatpush1.bf16.msra.mxu1 %v857_v33  ;;  %3972 = vmatprep.mubr.msk.f32.mxu0 %vm4317_vm10, %v8198_v1 }
 0x2cb   :  { %963 = vmatmul.mubr.bf16.vlgmr.msra.gmra.mrb[4].mxu1 %v4078_v22 }
 0x2d0   :  { %v868_v25 = vpop.permute.xlu1 %867 }
 0x2d2   :  { %v873_v4 = vpop.permute.xlu0 %872 }
 0x39a   :  { %v921_v29 = vpop.f32.mrb[4].mxu0 }
 0x39b   :  { %v5598_v23 = vadd.f32 %v921_v29, %v868_v25  ;;  %v923_v27 = vpop.f32.mrb[5].mxu0 }
 0x39c   :  { %v5600_v30 = vadd.f32 %v923_v27, %v868_v25  ;;  %v925_v7 = vpop.f32.mrb[6].mxu0 }
 0x39d   :  { %v5602_v31 = vadd.f32 %v925_v7, %v873_v4  ;;  %v927_v53 = vpop.f32.mrb[7].mxu0 }
 0x39e   :  { %v973_v32 = vadd.f32 %v5600_v30, %v5598_v23  ;;  %v5606_v50 = vadd.f32 %v927_v53, %v873_v4  ;;  %v964_v44 = vpop.f32.mrb[4].mxu1 }
 0x39f   :  { %v966_v5 = vpop.f32.mrb[5].mxu1  ;;  %v5610_v61 = vadd.f32 %v964_v44, %v868_v25 }
 0x3a0   :  { %v976_v35 = vadd.f32 %v5606_v50, %v5602_v31  ;;  %v5612_v59 = vadd.f32 %v966_v5, %v868_v25  ;;  %v968_v60 = vpop.f32.mrb[6].mxu1  ;;  %974 = vadd.xlane.f32.xlu1 %v973_v32 }
 0x3a1   :  { %v5614_v57 = vadd.f32 %v968_v60, %v873_v4  ;;  %v970_v62 = vpop.f32.mrb[7].mxu1 }
 0x3a2   :  { %v5616_v34 = vadd.f32 %v970_v62, %v873_v4  ;;  %977 = vadd.xlane.f32.xlu0 %v976_v35  ;;  %v1185_v58 = vadd.f32 %v5612_v59, %v5610_v61 }
 0x3a4   :  { %v1188_v38 = vadd.f32 %v5616_v34, %v5614_v57 }
 0x3a6   :  { %1186 = vadd.xlane.f32.xlu0 %v1185_v58  ;;  %1189 = vadd.xlane.f32.xlu1 %v1188_v38 }
 0x3bc   :  { %983 = vrot.lane.b32.xlu0 %v5628_v37, %s4313_s23 }
 0x42d   :  { %v975_v21 = vpop.xlane.xlu1 %974 }
 0x42e   :  { %v980_v20 = vmul.f32 0.00390625, %v975_v21 }
 0x42f   :  { %v978_v54 = vpop.xlane.xlu0 %977 }
 0x430   :  { %v981_v24 = vmul.f32 0.00390625, %v978_v54 }
 0x432   :  { %v4017_v39 = vpack.c.bf16 %v981_v24, %v980_v20 }
 0x433   :  { %v1187_v36 = vpop.xlane.xlu0 %1186  ;;  %v1190_v40 = vpop.xlane.xlu1 %1189 }
 0x434   :  { %v1191_v51 = vmul.f32 0.00390625, %v1187_v36  ;;  %v1192_v49 = vmul.f32 0.00390625, %v1190_v40  ;;  %4018 = vmatpush3.bf16.msra.mxu0 %v4017_v39 }
 0x435   :  { %4019 = vmatprep.subr.bf16.mxu0 %v8200_v55  ;;  %v6040_v55 = vld [vmem:[%s8133_s1 + $0x68] sm:$0xff] }
 0x436   :  { %v4020_v26 = vpack.c.bf16 %v1192_v49, %v1191_v51  ;;  %v8197_v51 = vmov 34   ;;  %v8196_v49 = vmov 35   ;;  %8433 = vst [vmem:[#allocation43_spill] sm:$0xff] %v6040_v55 }
 0x437   :  { %3973 = vmatmul.mubr.msk.f32.vlgmr.msra.gmra.mrb[8].mxu0 %vm435_vm1, %v5628_v37  ;;  %v984_v41 = vpop.permute.xlu0 %983 }
 0x438   :  { %4021 = vmatpush3.bf16.msra.mxu0 %v4020_v26  ;;  %3984 = vmatprep.mubr.msk.f32.mxu0 %vm4317_vm10, %v8198_v1  ;;  %v8414_v26 = vmov 0  }
 0x43b   :  { %3985 = vmatmul.mubr.msk.f32.vlgmr.msra.gmra.mrb[10].mxu0 %vm435_vm1, %v5628_v37 }
 0x43c   :  { %1447 = vmatprep.mubr.f32.mxu0 %v8198_v1 }
 0x50a   :  { %v1054_v52 = vpop.f32.mrb[8].mxu0 }
 0x50b   :  { %v1055_v12 = vadd.f32 %v1054_v52, %v984_v41  ;;  %v3974_v3 = vpop.f32.mrb[9].mxu0 }
 0x50d   :  { %1060 = vrot.lane.b32.xlu1 %v1055_v12, %s4307_s28  ;;  %vm1058_vm12 = vcmp.ge.f32.partialorder %v1055_v12, 0.0 }
 0x50e   :  { %v1259_v14 = vpop.f32.mrb[10].mxu0 }
 0x50f   :  { %v1260_v63 = vadd.f32 %v1259_v14, %v984_v41  ;;  %v3986_v10 = vpop.f32.mrb[11].mxu0 }
 0x511   :  { %1265 = vrot.lane.b32.xlu1 %v1260_v63, %s4307_s28  ;;  %vm1263_vm13 = vcmp.ge.f32.partialorder %v1260_v63, 0.0 }
 0x515   :  { %1069 = vrot.lane.b32.xlu1 %v4159_v56, %s4319_s26 }
 0x57f   :  { %v1061_v46 = vpop.permute.xlu1 %1060 }
 0x580   :  { %v1063_v11 = vmul.f32 %v1061_v46, %v5628_v37 }
 0x582   :  { %1065 = vrot.lane.b32.xlu0 %v1063_v11, %s4314_s24 }
 0x583   :  { %v1266_v8 = vpop.permute.xlu1 %1265 }
 0x584   :  { %v1268_v19 = vmul.f32 %v1266_v8, %v5628_v37 }
 0x586   :  { %1071 = vrot.lane.b32.xlu0 %v4160_v45, %s4319_s26  ;;  %1270 = vrot.lane.b32.xlu1 %v1268_v19, %s4314_s24 }
 0x587   :  { %v1070_v0 = vpop.permute.xlu1 %1069 }
 0x588   :  { %3977 = vmatprep.mubr.msk.f32.mxu1 %vm1079_vm11, %v1070_v0 }
 0x58a   :  { %1075 = vrot.lane.b32.xlu1 %v4160_v45, %s4311_s21  ;;  %1073 = vrot.lane.b32.xlu0 %v4159_v56, %s4311_s21 }
 0x5f4   :  { %v1066_v6 = vpop.permute.xlu0 %1065 }
 0x5f5   :  { %v1068_v17 = vsel %vm1058_vm12, %v1055_v12, %v1066_v6 }
 0x5f6   :  { %3975 = vmatprep.subr.mxu1 %v1068_v17 }
 0x5f7   :  { %3976 = vmatpush3.msra.mxu1 %v1068_v17 }
 0x5f8   :  { %v1072_v48 = vpop.permute.xlu0 %1071  ;;  %v1271_v47 = vpop.permute.xlu1 %1270 }
 0x5f9   :  { %3978 = vmatmul.mubr.msk.f32.vlgmr.msra.gmra.mrb[8].mxu1 %vm1079_vm11, %v1072_v48  ;;  %v1273_v15 = vsel %vm1263_vm13, %v1260_v63, %v1271_v47 }
 0x5fa   :  { %3987 = vmatprep.subr.mxu1 %v1273_v15  ;;  %3989 = vmatprep.mubr.msk.f32.mxu1 %vm1079_vm11, %v1070_v0 }
 0x5fb   :  { %3988 = vmatpush3.msra.mxu1 %v1273_v15 }
 0x5fc   :  { %v1076_v16 = vpop.permute.xlu1 %1075  ;;  %v1074_v13 = vpop.permute.xlu0 %1073 }
 0x5fd   :  { %3990 = vmatmul.mubr.msk.f32.vlgmr.msra.gmra.mrb[10].mxu1 %vm1079_vm11, %v1072_v48 }
 0x5fe   :  { %1518 = vmatprep.mubr.f32.mxu1 %v8198_v1 }
 0x6cc   :  { %v3979_v18 = vpop.f32.mrb[8].mxu1 }
 0x6cd   :  { %v1156_v28 = vadd.f32 %v3979_v18, %v1076_v16  ;;  %v1150_v2 = vpop.f32.mrb[9].mxu1 }
 0x6ce   :  { %v1151_v43 = vadd.f32 %v1150_v2, %v1074_v13 }
 0x6cf   :  { %v1160_v22 = vsub.f32 0.0, %v1156_v28 }
 0x6d0   :  { %v1159_v33 = vsub.f32 0.0, %v1151_v43  ;;  %v3991_v42 = vpop.f32.mrb[10].mxu1 }
 0x6d1   :  { %v1163_v25 = vmul.f32 1.442695, %v1160_v22  ;;  %v1346_v29 = vadd.f32 %v3991_v42, %v1076_v16  ;;  %v1340_v27 = vpop.f32.mrb[11].mxu1 }
 0x6d2   :  { %v1161_v4 = vmul.f32 1.442695, %v1159_v33  ;;  %v1341_v7 = vadd.f32 %v1340_v27, %v1074_v13 }
 0x6d3   :  { %4088 = vpow2.f32 %v1163_v25  ;;  %v1350_v53 = vsub.f32 0.0, %v1346_v29  ;;  %v8415_v25 = vlaneseq }
 0x6d4   :  { %4090 = vpow2.f32 %v1161_v4  ;;  %v1349_v32 = vsub.f32 0.0, %v1341_v7 }
 0x6d5   :  { %v1353_v44 = vmul.f32 1.442695, %v1350_v53  ;;  %v1547_v29 = vshrl.u32 %v8415_v25, 7  ;;  %v4166_v25 = vld [vmem:[%s8131_s0 + $0x30] sm:$0xff] }
 0x6d6   :  { %v1351_v5 = vmul.f32 1.442695, %v1349_v32 }
 0x6d7   :  { %4092 = vpow2.f32 %v1353_v44  ;;  %v5712_v27 = vsub.s32 0, %v1547_v29  ;;  %v1748_v29 = vmul.f32 2.0, %v4166_v25 }
 0x6d8   :  { %4094 = vpow2.f32 %v1351_v5 }
 0x6d9   :  { %8416 = vst [vmem:[#allocation40_spill] sm:$0xff] %v5712_v27 }
 0x6dd   :  { %v4089_v35 = vpop.eup %4088 }
 0x6de   :  { %v4091_v60 = vpop.eup %4090  ;;  %v1166_v62 = vadd.f32 1.0, %v4089_v35 }
 0x6df   :  { %v1165_v58 = vadd.f32 1.0, %v4091_v60 }
 0x6e0   :  { %4096 = vrcp.f32 %v1166_v62 }
 0x6e1   :  { %v4093_v38 = vpop.eup %4092  ;;  %4098 = vrcp.f32 %v1165_v58 }
 0x6e2   :  { %v4095_v21 = vpop.eup %4094  ;;  %v1356_v54 = vadd.f32 1.0, %v4093_v38 }
 0x6e3   :  { %v1355_v20 = vadd.f32 1.0, %v4095_v21 }
 0x6e4   :  { %4100 = vrcp.f32 %v1356_v54 }
 0x6e5   :  { %4102 = vrcp.f32 %v1355_v20 }
 0x6ea   :  { %v4097_v24 = vpop.eup %4096 }
 0x6eb   :  { %v4099_v39 = vpop.eup %4098  ;;  %1178 = vperm.xlu1 %4062, %v4097_v24  }
 0x6ec   :  { %1173 = vperm.xlu0 %4061, %v4099_v39  }
 0x6ee   :  { %v4101_v36 = vpop.eup %4100 }
 0x6ef   :  { %v4103_v40 = vpop.eup %4102  ;;  %1368 = vperm.xlu1 %4062, %v4101_v36  }
 0x6f0   :  { %1363 = vperm.xlu0 %4061, %v4103_v40   ;;  %v4161_v40 = vld [vmem:[%s8131_s0] sm:$0xff] }
 0x6f3   :  { %4063 = vset.pattern.permute.xlu1 %v8197_v51 }
 0x6f4   :  { %1379 = vrot.lane.b32.xlu0 %v5628_v37, %s4320_s30  ;;  %1376 = vperm.xlu1 %4063, %v5628_v37  }
 0x6f5   :  { %4064 = vset.pattern.permute.xlu0 %v8196_v49 }
 0x6f8   :  { %1530 = vperm.xlu0 %4064, %v5628_v37  }
 0x6fc   :  { %4067 = vset.pattern.permute.xlu0 %v8414_v26 }
 0x76a   :  { %v1179_v41 = vpop.permute.xlu1 %1178 }
 0x76b   :  { %v5669_v52 = vmul.f32 %v1179_v41, %v5602_v31  ;;  %v5672_v12 = vmul.f32 %v1179_v41, %v5606_v50  ;;  %v1174_v3 = vpop.permute.xlu0 %1173  ;;  %v1742_v41 = vmul.f32 2.0, %v4161_v40  ;;  %v3912_v40 = vld [vmem:[%s8134_s3 + $0x20] sm:$0xff] }
 0x76c   :  { %v5675_v14 = vmul.f32 %v1174_v3, %v5598_v23  ;;  %v5678_v63 = vmul.f32 %v1174_v3, %v5600_v30  ;;  %v4162_v3 = vld [vmem:[%s8131_s0 + $0x20] sm:$0xff] }
 0x76e   :  { %v4024_v10 = vpack.c.bf16 %v5669_v52, %v5675_v14  ;;  %v1369_v37 = vpop.permute.xlu1 %1368  ;;  %v4022_v56 = vpack.c.bf16 %v5672_v12, %v5678_v63 }
 0x76f   :  { %v5685_v31 = vmul.f32 %v1369_v37, %v5614_v57  ;;  %v5688_v50 = vmul.f32 %v1369_v37, %v5616_v34  ;;  %v1364_v46 = vpop.permute.xlu0 %1363 }
 0x770   :  { %v5691_v23 = vmul.f32 %v1364_v46, %v5610_v61  ;;  %v5694_v30 = vmul.f32 %v1364_v46, %v5612_v59  ;;  %4023 = vmatprep.subr.bf16.mxu0 %v4022_v56  ;;  %v38_v61 = vld [vmem:[%s8137_s6] sm:$0x1]  ;;  %v8195_v59 = vmov 8  }
 0x771   :  { %4025 = vmatpush1.bf16.msra.mxu0 %v4024_v10  ;;  %4065 = vset.pattern.permute.xlu1 %v8195_v59  ;;  %v1746_v10 = vmul.f32 2.0, %v4162_v3 }
 0x772   :  { %v4028_v11 = vpack.c.bf16 %v5685_v31, %v5691_v23  ;;  %v4026_v8 = vpack.c.bf16 %v5688_v50, %v5694_v30  ;;  %1543 = vperm.xlu1 %4065, %v38_v61  }
 0x773   :  { %v1380_v57 = vpop.permute.xlu0 %1379  ;;  %v1377_v34 = vpop.permute.xlu1 %1376 }
 0x774   :  { %3902 = vmatmul.mubr.msk.f32.vlgmr.msra.gmra.mrb[12].mxu0 %vm435_vm1, %v1380_v57  ;;  %4027 = vmatprep.subr.bf16.mxu1 %v4026_v8 }
 0x775   :  { %4029 = vmatpush1.bf16.msra.mxu1 %v4028_v11  ;;  %1616 = vmatprep.mubr.f32.mxu0 %v8198_v1 }
 0x776   :  { %4066 = vset.pattern.permute.xlu1 %v8414_v26  ;;  %v6048_v26 = vld [vmem:[%s8133_s1 + $0x48] sm:$0xff] }
 0x777   :  { %v1531_v45 = vpop.permute.xlu0 %1530  ;;  %8434 = vst [vmem:[#allocation45_spill] sm:$0xff] %v6048_v26 }
 0x778   :  { %3903 = vmatmul.mubr.msk.f32.vlgmr.msra.gmra.mrb[12].mxu1 %vm435_vm1, %v1380_v57 }
 0x779   :  { %1687 = vmatprep.mubr.f32.mxu1 %v8198_v1 }
 0x7f1   :  { %v1544_v4 = vpop.permute.xlu1 %1543 }
 0x7f2   :  { %v1549_v7 = vrot.slane %v1544_v4, %v5712_v27 }
 0x847   :  { %v1449_v19 = vpop.f32.mrb[12].mxu0 }
 0x848   :  { %v1451_v0 = vpop.f32.mrb[13].mxu0  ;;  %v1450_v6 = vadd.f32 %v1449_v19, %v1377_v34 }
 0x849   :  { %v1452_v17 = vadd.f32 %v1451_v0, %v1377_v34 }
 0x84a   :  { %v1533_v48 = vmul.f32 %v1531_v45, %v1450_v6  ;;  %vm1525_vm15 = vcmp.ge.f32.partialorder %v1450_v6, 0.0 }
 0x84b   :  { %v1520_v47 = vpop.f32.mrb[12].mxu1  ;;  %vm1526_vm14 = vcmp.ge.f32.partialorder %v1452_v17, 0.0  ;;  %v1534_v15 = vmul.f32 %v1531_v45, %v1452_v17 }
 0x84c   :  { %v1521_v16 = vadd.f32 %v1520_v47, %v1377_v34  ;;  %v1522_v13 = vpop.f32.mrb[13].mxu1  ;;  %v1537_v43 = vsel %vm1525_vm15, %v1450_v6, %v1533_v48  ;;  %v4163_v6 = vld [vmem:[%s8131_s0 + $0x8] sm:$0xff] }
 0x84d   :  { %v1523_v18 = vadd.f32 %v1522_v13, %v1377_v34  ;;  %v1538_v28 = vsel %vm1526_vm14, %v1452_v17, %v1534_v15  ;;  %v1743_v17 = vmul.f32 2.0, %v4163_v6  ;;  %v4164_v48 = vld [vmem:[%s8131_s0 + $0x28] sm:$0xff] }
 0x84e   :  { %v1535_v2 = vmul.f32 %v1531_v45, %v1521_v16  ;;  %1552 = vmatprep.subr.mxu0 %v1538_v28  ;;  %vm1527_vm9 = vcmp.ge.f32.partialorder %v1521_v16, 0.0  ;;  %v1747_v47 = vmul.f32 2.0, %v4164_v48 }
 0x84f   :  { %v1536_v22 = vmul.f32 %v1531_v45, %v1523_v18  ;;  %1553 = vmatpush1.msra.mxu0 %v1537_v43  ;;  %vm1528_vm12 = vcmp.ge.f32.partialorder %v1523_v18, 0.0 }
 0x850   :  { %3904 = vmatmul.mubr.msk.f32.vlgmr.msra.gmra.mrb[14].mxu0 %vm1079_vm11, %v38_v61  ;;  %v1539_v42 = vsel %vm1527_vm9, %v1521_v16, %v1535_v2 }
 0x851   :  { %v1540_v33 = vsel %vm1528_vm12, %v1523_v18, %v1536_v22 }
 0x852   :  { %1623 = vmatprep.subr.mxu1 %v1540_v33  ;;  %v4165_v33 = vld [vmem:[%s8131_s0 + $0x10] sm:$0xff] }
 0x853   :  { %1624 = vmatpush1.msra.mxu1 %v1539_v42  ;;  %v1744_v42 = vmul.f32 2.0, %v4165_v33 }
 0x854   :  { %3905 = vmatmul.mubr.msk.f32.vlgmr.msra.gmra.mrb[14].mxu1 %vm1079_vm11, %v38_v61 }
 0x923   :  { %v1618_v53 = vpop.f32.mrb[14].mxu0 }
 0x924   :  { %v1619_v32 = vadd.f32 %v1618_v53, %v1549_v7  ;;  %v1620_v44 = vpop.f32.mrb[15].mxu0 }
 0x925   :  { %v1621_v38 = vadd.f32 %v1620_v44, %v1549_v7 }
 0x926   :  { %v1694_v5 = vsub.f32 0.0, %v1619_v32 }
 0x927   :  { %v1689_v35 = vpop.f32.mrb[14].mxu1  ;;  %v1695_v54 = vsub.f32 0.0, %v1621_v38 }
 0x928   :  { %v1698_v60 = vmul.f32 1.442695, %v1694_v5  ;;  %v1691_v62 = vpop.f32.mrb[15].mxu1 }
 0x929   :  { %v5715_v58 = vadd.f32 %v1691_v62, %v1549_v7  ;;  %v1700_v24 = vmul.f32 1.442695, %v1695_v54  ;;  %v4168_v62 = vld [vmem:[%s8131_s0 + $0x38] sm:$0xff] }
 0x92a   :  { %4104 = vpow2.f32 %v1698_v60 }
 0x92b   :  { %v1697_v13 = vsub.f32 0.0, %v5715_v58  ;;  %v1749_v58 = vmul.f32 2.0, %v4168_v62 }
 0x92d   :  { %v1704_v28 = vmul.f32 1.442695, %v1697_v13 }
 0x934   :  { %v4105_v21 = vpop.eup %4104 }
 0x935   :  { %v1706_v20 = vadd.f32 1.0, %v4105_v21 }
 0x937   :  { %4106 = vrcp.f32 %v1706_v20 }
 0x938   :  { %4108 = vpow2.f32 %v1700_v24  ;;  %v4079_v24 = vld [vmem:[%s8132_s2 + $0x24] ss:$8 sps:$4 sm:$0xff]  }
 0x939   :  { %3916 = vmatprep.mubr.msk.bf16.mxu0 %vm435_vm1, %v4079_v24  ;;  %3917 = vmatprep.mubr.msk.bf16.mxu1 %vm435_vm1, %v4079_v24 }
 0x941   :  { %v4107_v39 = vpop.eup %4106 }
 0x942   :  { %v1721_v36 = vrot.slane %v4107_v39, %v5712_v27  ;;  %v4109_v46 = vpop.eup %4108 }
 0x943   :  { %v1707_v57 = vadd.f32 1.0, %v4109_v46 }
 0x944   :  { %v1734_v37 = vmul.f32 %v1721_v36, %v5675_v14  ;;  %v1738_v56 = vmul.f32 %v1721_v36, %v5669_v52  ;;  %v1690_v52 = vadd.f32 %v1689_v35, %v1549_v7  ;;  %v4167_v35 = vld [vmem:[%s8131_s0 + $0x18] sm:$0xff] }
 0x945   :  { %4110 = vrcp.f32 %v1707_v57  ;;  %v1745_v60 = vmul.f32 2.0, %v4167_v35  ;;  %v3907_v57 = vld [vmem:[%s8135_s4 + $0x18] sm:$0xff] }
 0x946   :  { %v5726_v11 = vadd.f32 %v1742_v41, %v1734_v37  ;;  %v5728_v8 = vadd.f32 %v1746_v10, %v1738_v56  ;;  %v1696_v14 = vsub.f32 0.0, %v1690_v52  ;;  %v3913_v41 = vld [vmem:[%s8134_s3 + $0x28] sm:$0xff]  ;;  %v3906_v37 = vld [vmem:[%s8135_s4 + $0x10] sm:$0xff] }
 0x948   :  { %8417 = vst [vmem:[#allocation42_spill] sm:$0xff] %v5726_v11  ;;  %8418 = vst [vmem:[#allocation38_spill] sm:$0xff] %v5728_v8  ;;  %1767 = vrot.lane.b32.xlu0 %v5728_v8, %s4307_s28  ;;  %1765 = vrot.lane.b32.xlu1 %v5726_v11, %s4307_s28  ;;  %v1702_v34 = vmul.f32 1.442695, %v1696_v14 }
 0x94a   :  { %4112 = vpow2.f32 %v1702_v34 }
 0x94c   :  { %1803 = vrot.lane.b32.xlu0 %v5728_v8, %s4308_s18  ;;  %1801 = vrot.lane.b32.xlu1 %v5726_v11, %s4308_s18 }
 0x94f   :  { %v4111_v61 = vpop.eup %4110 }
 0x950   :  { %1839 = vrot.lane.b32.xlu0 %v5728_v8, %s4309_s19  ;;  %1837 = vrot.lane.b32.xlu1 %v5726_v11, %s4309_s19  ;;  %v1725_v19 = vrot.slane %v4111_v61, %v5712_v27 }
 0x952   :  { %v1735_v45 = vmul.f32 %v1725_v19, %v5678_v63  ;;  %v1739_v0 = vmul.f32 %v1725_v19, %v5672_v12 }
 0x954   :  { %1875 = vrot.lane.b32.xlu0 %v5728_v8, %s4310_s20  ;;  %1873 = vrot.lane.b32.xlu1 %v5726_v11, %s4310_s20  ;;  %v5767_v15 = vadd.f32 %v1743_v17, %v1735_v45  ;;  %v5769_v63 = vadd.f32 %v1747_v47, %v1739_v0  ;;  %v4113_v12 = vpop.eup %4112  ;;  %v5952_v17 = vld [vmem:[%s8133_s1 + $0x28] sm:$0xff] }
 0x955   :  { %v1708_v16 = vadd.f32 1.0, %v4113_v12  ;;  %8428 = vst [vmem:[#allocation7_spill] sm:$0xff] %v5952_v17  ;;  %v5958_v47 = vld [vmem:[%s8133_s1 + $0x8] sm:$0xff] }
 0x956   :  { %8419 = vst [vmem:[#allocation39_spill] sm:$0xff] %v5767_v15  ;;  %8420 = vst [vmem:[#allocation41_spill] sm:$0xff] %v5769_v63 }
 0x957   :  { %4114 = vrcp.f32 %v1708_v16  ;;  %8429 = vst [vmem:[#allocation35_spill] sm:$0xff] %v5958_v47 }
 0x958   :  { %1915 = vrot.lane.b32.xlu0 %v5728_v8, %s4311_s21  ;;  %1913 = vrot.lane.b32.xlu1 %v5726_v11, %s4311_s21  ;;  %4116 = vpow2.f32 %v1704_v28 }
 0x95c   :  { %1951 = vrot.lane.b32.xlu0 %v5728_v8, %s4312_s22  ;;  %1949 = vrot.lane.b32.xlu1 %v5726_v11, %s4312_s22 }
 0x960   :  { %1987 = vrot.lane.b32.xlu0 %v5728_v8, %s4313_s23  ;;  %1985 = vrot.lane.b32.xlu1 %v5726_v11, %s4313_s23 }
 0x961   :  { %v4115_v18 = vpop.eup %4114 }
 0x962   :  { %v1729_v2 = vrot.slane %v4115_v18, %v5712_v27 }
 0x964   :  { %1771 = vrot.lane.b32.xlu0 %v5769_v63, %s4307_s28  ;;  %1769 = vrot.lane.b32.xlu1 %v5767_v15, %s4307_s28  ;;  %v1736_v43 = vmul.f32 %v1729_v2, %v5691_v23  ;;  %v1740_v22 = vmul.f32 %v1729_v2, %v5685_v31  ;;  %v4117_v31 = vpop.eup %4116 }
 0x965   :  { %v1709_v7 = vadd.f32 1.0, %v4117_v31 }
 0x966   :  { %v5813_v4 = vadd.f32 %v1744_v42, %v1736_v43  ;;  %v5815_v23 = vadd.f32 %v1748_v29, %v1740_v22 }
 0x967   :  { %4118 = vrcp.f32 %v1709_v7 }
 0x968   :  { %1807 = vrot.lane.b32.xlu0 %v5769_v63, %s4308_s18  ;;  %1805 = vrot.lane.b32.xlu1 %v5767_v15, %s4308_s18  ;;  %8421 = vst [vmem:[#allocation3_spill] sm:$0xff] %v5813_v4  ;;  %8422 = vst [vmem:[#allocation2_spill] sm:$0xff] %v5815_v23 }
 0x96c   :  { %1843 = vrot.lane.b32.xlu0 %v5769_v63, %s4309_s19  ;;  %1841 = vrot.lane.b32.xlu1 %v5767_v15, %s4309_s19 }
 0x970   :  { %1879 = vrot.lane.b32.xlu0 %v5769_v63, %s4310_s20  ;;  %1877 = vrot.lane.b32.xlu1 %v5767_v15, %s4310_s20 }
 0x971   :  { %v4119_v53 = vpop.eup %4118 }
 0x972   :  { %v1733_v32 = vrot.slane %v4119_v53, %v5712_v27 }
 0x974   :  { %1919 = vrot.lane.b32.xlu0 %v5769_v63, %s4311_s21  ;;  %1917 = vrot.lane.b32.xlu1 %v5767_v15, %s4311_s21  ;;  %v1737_v44 = vmul.f32 %v1733_v32, %v5694_v30  ;;  %v1741_v5 = vmul.f32 %v1733_v32, %v5688_v50 }
 0x976   :  { %v5858_v38 = vadd.f32 %v1745_v60, %v1737_v44  ;;  %v5860_v30 = vadd.f32 %v1749_v58, %v1741_v5 }
 0x978   :  { %1955 = vrot.lane.b32.xlu0 %v5769_v63, %s4312_s22  ;;  %1953 = vrot.lane.b32.xlu1 %v5767_v15, %s4312_s22  ;;  %8423 = vst [vmem:[#allocation4_spill] sm:$0xff] %v5858_v38  ;;  %8424 = vst [vmem:[#allocation5_spill] sm:$0xff] %v5860_v30 }
 0x97c   :  { %1991 = vrot.lane.b32.xlu0 %v5769_v63, %s4313_s23  ;;  %1989 = vrot.lane.b32.xlu1 %v5767_v15, %s4313_s23 }
 0x980   :  { %2027 = vrot.lane.b32.xlu0 %v5769_v63, %s4314_s24  ;;  %2025 = vrot.lane.b32.xlu1 %v5767_v15, %s4314_s24 }
 0x984   :  { %1775 = vrot.lane.b32.xlu0 %v5815_v23, %s4307_s28  ;;  %1773 = vrot.lane.b32.xlu1 %v5813_v4, %s4307_s28 }
 0x988   :  { %1811 = vrot.lane.b32.xlu0 %v5815_v23, %s4308_s18  ;;  %1809 = vrot.lane.b32.xlu1 %v5813_v4, %s4308_s18 }
 0x98c   :  { %1847 = vrot.lane.b32.xlu0 %v5815_v23, %s4309_s19  ;;  %1845 = vrot.lane.b32.xlu1 %v5813_v4, %s4309_s19 }
 0x990   :  { %1883 = vrot.lane.b32.xlu0 %v5815_v23, %s4310_s20  ;;  %1881 = vrot.lane.b32.xlu1 %v5813_v4, %s4310_s20 }
 0x994   :  { %1923 = vrot.lane.b32.xlu0 %v5815_v23, %s4311_s21  ;;  %1921 = vrot.lane.b32.xlu1 %v5813_v4, %s4311_s21 }
 0x998   :  { %1959 = vrot.lane.b32.xlu0 %v5815_v23, %s4312_s22  ;;  %1957 = vrot.lane.b32.xlu1 %v5813_v4, %s4312_s22 }
 0x99c   :  { %1995 = vrot.lane.b32.xlu0 %v5815_v23, %s4313_s23  ;;  %1993 = vrot.lane.b32.xlu1 %v5813_v4, %s4313_s23 }
 0x9a0   :  { %2031 = vrot.lane.b32.xlu0 %v5815_v23, %s4314_s24  ;;  %2029 = vrot.lane.b32.xlu1 %v5813_v4, %s4314_s24 }
 0x9a4   :  { %1779 = vrot.lane.b32.xlu0 %v5860_v30, %s4307_s28  ;;  %1777 = vrot.lane.b32.xlu1 %v5858_v38, %s4307_s28 }
 0x9a8   :  { %1815 = vrot.lane.b32.xlu0 %v5860_v30, %s4308_s18  ;;  %1813 = vrot.lane.b32.xlu1 %v5858_v38, %s4308_s18 }
 0x9ac   :  { %1851 = vrot.lane.b32.xlu0 %v5860_v30, %s4309_s19  ;;  %1849 = vrot.lane.b32.xlu1 %v5858_v38, %s4309_s19 }
 0x9b0   :  { %1887 = vrot.lane.b32.xlu0 %v5860_v30, %s4310_s20  ;;  %1885 = vrot.lane.b32.xlu1 %v5858_v38, %s4310_s20 }
 0x9b4   :  { %2023 = vrot.lane.b32.xlu0 %v5728_v8, %s4314_s24  ;;  %2021 = vrot.lane.b32.xlu1 %v5726_v11, %s4314_s24 }
 0x9b8   :  { %1927 = vrot.lane.b32.xlu0 %v5860_v30, %s4311_s21  ;;  %1925 = vrot.lane.b32.xlu1 %v5858_v38, %s4311_s21 }
 0x9ba   :  { %v5886_v50 = vpop.permute.xlu0 %1767  ;;  %v5888_v21 = vpop.permute.xlu1 %1765 }
 0x9bc   :  { %1963 = vrot.lane.b32.xlu0 %v5860_v30, %s4312_s22  ;;  %1961 = vrot.lane.b32.xlu1 %v5858_v38, %s4312_s22 }
 0x9be   :  { %v5894_v54 = vpop.permute.xlu0 %1803  ;;  %v5896_v20 = vpop.permute.xlu1 %1801 }
 0x9c0   :  { %1999 = vrot.lane.b32.xlu0 %v5860_v30, %s4313_s23  ;;  %1997 = vrot.lane.b32.xlu1 %v5858_v38, %s4313_s23 }
 0x9c2   :  { %v5907_v39 = vpop.permute.xlu0 %1839  ;;  %v5909_v36 = vpop.permute.xlu1 %1837 }
 0x9c4   :  { %2035 = vrot.lane.b32.xlu0 %v5860_v30, %s4314_s24  ;;  %2033 = vrot.lane.b32.xlu1 %v5858_v38, %s4314_s24 }
 0x9c6   :  { %v5921_v3 = vpop.permute.xlu0 %1875  ;;  %v5923_v10 = vpop.permute.xlu1 %1873 }
 0x9c8   :  { %2065 = vperm.xlu1 %4066, %v3912_v40   ;;  %2070 = vperm.xlu0 %4067, %v3913_v41  }
 0x9ca   :  { %v5928_v56 = vpop.permute.xlu0 %1915  ;;  %v5930_v46 = vpop.permute.xlu1 %1913 }
 0x9cb   :  { %8425 = vst [vmem:[#allocation8_spill] sm:$0xff] %v5928_v56 }
 0x9cc   :  { %2181 = vperm.xlu1 %4066, %v3906_v37  }
 0x9ce   :  { %v5935_v52 = vpop.permute.xlu0 %1951  ;;  %v5937_v14 = vpop.permute.xlu1 %1949 }
 0x9cf   :  { %8426 = vst [vmem:[#allocation9_spill] sm:$0xff] %v5935_v52  ;;  %8427 = vst [vmem:[#allocation6_spill] sm:$0xff] %v5937_v14 }
 0x9d0   :  { %2186 = vperm.xlu1 %4066, %v3907_v57  }
 0x9d2   :  { %v5939_v61 = vpop.permute.xlu0 %1987  ;;  %v5941_v34 = vpop.permute.xlu1 %1985 }
 0x9d6   :  { %v1772_v19 = vpop.permute.xlu0 %1771  ;;  %v1770_v45 = vpop.permute.xlu1 %1769 }
 0x9d7   :  { %v1786_v0 = vsel %vm57_vm0, %v5886_v50, %v1772_v19  ;;  %v1785_v6 = vsel %vm57_vm0, %v5888_v21, %v1770_v45 }
 0x9d8   :  { %v1794_v48 = vmul.f32 %v5952_v17, %v1786_v0  ;;  %v1790_v12 = vmul.f32 %v5958_v47, %v1785_v6  ;;  %v6056_v47 = vld [vmem:[%s8133_s1 + $0xa8] sm:$0xff] }
 0x9d9   :  { %8435 = vst [vmem:[#allocation13_spill] sm:$0xff] %v6056_v47 }
 0x9da   :  { %v5961_v16 = vpop.permute.xlu0 %1807  ;;  %v5963_v13 = vpop.permute.xlu1 %1805  ;;  %v1798_v18 = vpack.c.bf16 %v1794_v48, %v1790_v12 }
 0x9db   :  { %v1822_v6 = vsel %vm102_vm2, %v5894_v54, %v5961_v16  ;;  %v1821_v48 = vsel %vm102_vm2, %v5896_v20, %v5963_v13 }
 0x9dc   :  { %2085 = vmatprep.subr.bf16.mxu0 %v1798_v18  ;;  %v6043_v27 = vmul.f32 %v6040_v55, %v1822_v6  ;;  %v6051_v17 = vmul.f32 %v6048_v26, %v1821_v48  ;;  %v6064_v6 = vld [vmem:[%s8133_s1 + $0x88] sm:$0xff] }
 0x9dd   :  { %8436 = vst [vmem:[#allocation44_spill] sm:$0xff] %v6064_v6  ;;  %v6072_v48 = vld [vmem:[%s8133_s1 + $0xe8] sm:$0xff] }
 0x9de   :  { %v5965_v28 = vpop.permute.xlu0 %1843  ;;  %v5967_v2 = vpop.permute.xlu1 %1841  ;;  %8437 = vst [vmem:[#allocation46_spill] sm:$0xff] %v6072_v48 }
 0x9df   :  { %v1858_v12 = vsel %vm148_vm3, %v5907_v39, %v5965_v28  ;;  %v1857_v18 = vsel %vm148_vm3, %v5909_v36, %v5967_v2 }
 0x9e0   :  { %v6067_v55 = vmul.f32 %v6064_v6, %v1857_v18 }
 0x9e2   :  { %v5969_v43 = vpop.permute.xlu0 %1879  ;;  %v5971_v22 = vpop.permute.xlu1 %1877 }
 0x9e3   :  { %v1894_v59 = vsel %vm194_vm4, %v5921_v3, %v5969_v43  ;;  %v1893_v49 = vsel %vm194_vm4, %v5923_v10, %v5971_v22 }
 0x9e4   :  { %v6075_v26 = vmul.f32 %v6072_v48, %v1894_v59 }
 0x9e6   :  { %v5973_v33 = vpop.permute.xlu0 %1919  ;;  %v5975_v42 = vpop.permute.xlu1 %1917 }
 0x9e7   :  { %v1934_v18 = vsel %vm244_vm5, %v5928_v56, %v5973_v33  ;;  %v1933_v6 = vsel %vm244_vm5, %v5930_v46, %v5975_v42 }
 0x9ea   :  { %v5977_v25 = vpop.permute.xlu0 %1955  ;;  %v5979_v29 = vpop.permute.xlu1 %1953 }
 0x9ee   :  { %v5981_v31 = vpop.permute.xlu0 %1991  ;;  %v5983_v7 = vpop.permute.xlu1 %1989 }
 0x9f2   :  { %v5985_v53 = vpop.permute.xlu0 %2027  ;;  %v5987_v32 = vpop.permute.xlu1 %2025 }
 0x9f3   :  { %8430 = vst [vmem:[#allocation34_spill] sm:$0xff] %v5985_v53  ;;  %8431 = vst [vmem:[#allocation37_spill] sm:$0xff] %v5987_v32  ;;  %v6059_v32 = vmul.f32 %v6056_v47, %v1858_v12  ;;  %v6080_v12 = vld [vmem:[%s8133_s1 + $0xc8] sm:$0xff] }
 0x9f4   :  { %8438 = vst [vmem:[#allocation11_spill] sm:$0xff] %v6080_v12  ;;  %v6083_v47 = vmul.f32 %v6080_v12, %v1893_v49  ;;  %v1834_v12 = vpack.c.bf16 %v6043_v27, %v6051_v17  ;;  %v6126_v17 = vld [vmem:[%s8133_s1 + $0x30] sm:$0xff] }
 0x9f5   :  { %8443 = vst [vmem:[#allocation14_spill] sm:$0xff] %v6126_v17 }
 0x9f6   :  { %v1776_v44 = vpop.permute.xlu0 %1775  ;;  %v1774_v5 = vpop.permute.xlu1 %1773 }
 0x9f7   :  { %v1784_v59 = vsel %vm57_vm0, %v1772_v19, %v1776_v44  ;;  %v1783_v48 = vsel %vm57_vm0, %v1770_v45, %v1774_v5  ;;  %v6110_v19 = vld [vmem:[%s8133_s1 + $0x160] sm:$0xff] }
 0x9f8   :  { %8441 = vst [vmem:[#allocation16_spill] sm:$0xff] %v6110_v19  ;;  %v6113_v45 = vmul.f32 %v6110_v19, %v1934_v18  ;;  %v6132_v18 = vld [vmem:[%s8133_s1 + $0x10] sm:$0xff] }
 0x9f9   :  { %8444 = vst [vmem:[#allocation15_spill] sm:$0xff] %v6132_v18  ;;  %v1791_v56 = vmul.f32 %v6132_v18, %v1783_v48 }
 0x9fa   :  { %v5989_v35 = vpop.permute.xlu0 %1811  ;;  %v5991_v60 = vpop.permute.xlu1 %1809 }
 0x9fb   :  { %v1819_v48 = vsel %vm102_vm2, %v5963_v13, %v5991_v60  ;;  %v6166_v13 = vld [vmem:[%s8133_s1 + $0x20] sm:$0xff] }
 0x9fc   :  { %8445 = vst [vmem:[#allocation47_spill] sm:$0xff] %v6166_v13 }
 0x9fe   :  { %v5993_v62 = vpop.permute.xlu0 %1847  ;;  %v5995_v58 = vpop.permute.xlu1 %1845 }
 0xa02   :  { %v5997_v24 = vpop.permute.xlu0 %1883  ;;  %v5999_v40 = vpop.permute.xlu1 %1881 }
 0xa06   :  { %v6001_v41 = vpop.permute.xlu0 %1923  ;;  %v6003_v37 = vpop.permute.xlu1 %1921 }
 0xa0a   :  { %v6005_v57 = vpop.permute.xlu0 %1959  ;;  %v6007_v0 = vpop.permute.xlu1 %1957 }
 0xa0e   :  { %v6033_v51 = vpop.permute.xlu0 %1995  ;;  %v6035_v1 = vpop.permute.xlu1 %1993 }
 0xa0f   :  { %8432 = vst [vmem:[#allocation36_spill] sm:$0xff] %v6035_v1  ;;  %v1795_v1 = vmul.f32 %v6126_v17, %v1784_v59  ;;  %v1820_v59 = vsel %vm102_vm2, %v5961_v16, %v5989_v35 }
 0xa12   :  { %v6097_v53 = vpop.permute.xlu0 %2031  ;;  %v6099_v49 = vpop.permute.xlu1 %2029 }
 0xa13   :  { %8439 = vst [vmem:[#allocation12_spill] sm:$0xff] %v6097_v53  ;;  %8440 = vst [vmem:[#allocation10_spill] sm:$0xff] %v6099_v49  ;;  %v6118_v49 = vld [vmem:[%s8133_s1 + $0x140] sm:$0xff] }
 0xa14   :  { %8442 = vst [vmem:[#allocation17_spill] sm:$0xff] %v6118_v49  ;;  %v6121_v27 = vmul.f32 %v6118_v49, %v1933_v6  ;;  %v1970_v6 = vsel %vm290_vm6, %v5935_v52, %v5977_v25  ;;  %v6143_v49 = vsel %vm290_vm6, %v5937_v14, %v5979_v29 }
 0xa16   :  { %v1780_v19 = vpop.permute.xlu0 %1779  ;;  %v1778_v18 = vpop.permute.xlu1 %1777 }
 0xa17   :  { %v1782_v17 = vsel %vm57_vm0, %v1776_v44, %v1780_v19  ;;  %v1788_v14 = vsel %vm57_vm0, %v1780_v19, %v5886_v50  ;;  %v1781_v52 = vsel %vm57_vm0, %v1774_v5, %v1778_v18  ;;  %v1787_v16 = vsel %vm57_vm0, %v1778_v18, %v5888_v21  ;;  %v6172_v44 = vld [vmem:[%s8133_s1 + $0x38] sm:$0xff]  ;;  %v6178_v5 = vld [vmem:[%s8133_s1] sm:$0xff] }
 0xa18   :  { %v1793_v53 = vmul.f32 %v6166_v13, %v1788_v14  ;;  %8446 = vst [vmem:[#allocation49_spill] sm:$0xff] %v6172_v44  ;;  %v1796_v50 = vmul.f32 %v6172_v44, %v1782_v17  ;;  %8447 = vst [vmem:[#allocation48_spill] sm:$0xff] %v6178_v5  ;;  %v1789_v21 = vmul.f32 %v6178_v5, %v1787_v16  ;;  %v6184_v19 = vld [vmem:[%s8133_s1 + $0x18] sm:$0xff]  ;;  %v6190_v18 = vld [vmem:[%s8133_s1 + $0x1a0] sm:$0xff] }
 0xa19   :  { %8448 = vst [vmem:[#allocation50_spill] sm:$0xff] %v6184_v19  ;;  %v1792_v14 = vmul.f32 %v6184_v19, %v1781_v52  ;;  %8449 = vst [vmem:[#allocation21_spill] sm:$0xff] %v6190_v18  ;;  %v6193_v17 = vmul.f32 %v6190_v18, %v1970_v6  ;;  %v1799_v44 = vpack.c.bf16 %v1795_v1, %v1791_v56  ;;  %v6198_v16 = vld [vmem:[%s8133_s1 + $0x70] sm:$0xff] }
 0xa1a   :  { %8450 = vst [vmem:[#allocation19_spill] sm:$0xff] %v6198_v16  ;;  %v1831_v13 = vmul.f32 %v6198_v16, %v1820_v59  ;;  %v6204_v52 = vld [vmem:[%s8133_s1 + $0x50] sm:$0xff]  ;;  %v1856_v6 = vsel %vm148_vm3, %v5965_v28, %v5993_v62  ;;  %v1855_v1 = vsel %vm148_vm3, %v5967_v2, %v5995_v58  ;;  %v1797_v56 = vpack.c.bf16 %v1793_v53, %v1789_v21  ;;  %v1816_v18 = vpop.permute.xlu0 %1815  ;;  %v1814_v59 = vpop.permute.xlu1 %1813  ;;  %v6230_v53 = vld [vmem:[%s8133_s1 + $0x60] sm:$0xff]  ;;  %v6248_v21 = vld [vmem:[%s8133_s1 + $0x58] sm:$0xff] }
 0xa1b   :  { %v1827_v19 = vmul.f32 %v6204_v52, %v1819_v48  ;;  %v1800_v5 = vpack.c.bf16 %v1796_v50, %v1792_v14  ;;  %v1818_v16 = vsel %vm102_vm2, %v5989_v35, %v1816_v18  ;;  %v1824_v48 = vsel %vm102_vm2, %v1816_v18, %v5894_v54  ;;  %v6236_v35 = vld [vmem:[%s8133_s1 + $0x78] sm:$0xff] }
 0xa1c   :  { %v1817_v28 = vsel %vm102_vm2, %v5991_v60, %v1814_v59  ;;  %v1823_v2 = vsel %vm102_vm2, %v1814_v59, %v5896_v20  ;;  %v1829_v50 = vmul.f32 %v6230_v53, %v1824_v48  ;;  %8451 = vst [vmem:[#allocation20_spill] sm:$0xff] %v6236_v35  ;;  %v1832_v54 = vmul.f32 %v6236_v35, %v1818_v16  ;;  %v6242_v60 = vld [vmem:[%s8133_s1 + $0x40] sm:$0xff]  ;;  %v6254_v16 = vld [vmem:[%s8133_s1 + $0xb0] sm:$0xff] }
 0xa1d   :  { %v1825_v20 = vmul.f32 %v6242_v60, %v1823_v2  ;;  %v1828_v14 = vmul.f32 %v6248_v21, %v1817_v28  ;;  %2086 = vmatpush1.bf16.msra.mxu0 %v1797_v56  ;;  %v1835_v18 = vpack.c.bf16 %v1831_v13, %v1827_v19  ;;  %v6257_v59 = vmul.f32 %v6254_v16, %v1856_v6  ;;  %v6262_v48 = vld [vmem:[%s8133_s1 + $0x90] sm:$0xff] }
 0xa1e   :  { %v1863_v2 = vmul.f32 %v6262_v48, %v1855_v1  ;;  %2128 = vmatprep.subr.bf16.mxu1 %v1800_v5  ;;  %2087 = vmatprep.subr.bf16.mxu0 %v1834_v12  ;;  %v1892_v13 = vsel %vm194_vm4, %v5969_v43, %v5997_v24  ;;  %v1891_v19 = vsel %vm194_vm4, %v5971_v22, %v5999_v40  ;;  %v1852_v56 = vpop.permute.xlu0 %1851  ;;  %v1850_v28 = vpop.permute.xlu1 %1849 }
 0xa1f   :  { %v1833_v6 = vpack.c.bf16 %v1829_v50, %v1825_v20  ;;  %2129 = vmatpush1.bf16.msra.mxu1 %v1799_v44  ;;  %v1836_v35 = vpack.c.bf16 %v1832_v54, %v1828_v14  ;;  %v1854_v5 = vsel %vm148_vm3, %v5993_v62, %v1852_v56  ;;  %v1860_v12 = vsel %vm148_vm3, %v1852_v56, %v5907_v39  ;;  %v6288_v44 = vld [vmem:[%s8133_s1 + $0xa0] sm:$0xff]  ;;  %v6294_v62 = vld [vmem:[%s8133_s1 + $0xb8] sm:$0xff]  ;;  %v6313_v14 = vld [vmem:[%s8133_s1 + $0xf0] sm:$0xff] }
 0xa20   :  { %v1853_v43 = vsel %vm148_vm3, %v5995_v58, %v1850_v28  ;;  %v1859_v22 = vsel %vm148_vm3, %v1850_v28, %v5909_v36  ;;  %v1865_v1 = vmul.f32 %v6288_v44, %v1860_v12  ;;  %v1868_v39 = vmul.f32 %v6294_v62, %v1854_v5  ;;  %v6300_v58 = vld [vmem:[%s8133_s1 + $0x80] sm:$0xff]  ;;  %v6306_v50 = vld [vmem:[%s8133_s1 + $0x98] sm:$0xff]  ;;  %v6319_v28 = vld [vmem:[%s8133_s1 + $0xd0] sm:$0xff] }
 0xa21   :  { %v1861_v36 = vmul.f32 %v6300_v58, %v1859_v22  ;;  %v1864_v54 = vmul.f32 %v6306_v50, %v1853_v43  ;;  %2088 = vmatpush1.bf16.msra.mxu0 %v1833_v6  ;;  %v1871_v20 = vpack.c.bf16 %v6257_v59, %v1863_v2  ;;  %v1903_v56 = vmul.f32 %v6313_v14, %v1892_v13  ;;  %v6366_v22 = vld [vmem:[%s8133_s1 + $0xd8] sm:$0xff] }
 0xa22   :  { %v1899_v5 = vmul.f32 %v6319_v28, %v1891_v19  ;;  %2130 = vmatprep.subr.bf16.mxu1 %v1836_v35  ;;  %v8452_v6 = vpack.c.bf16 %v6059_v32, %v6067_v55  ;;  %v1932_v59 = vsel %vm244_vm5, %v5973_v33, %v6001_v41  ;;  %v1931_v2 = vsel %vm244_vm5, %v5975_v42, %v6003_v37  ;;  %v1888_v12 = vpop.permute.xlu0 %1887  ;;  %v1886_v43 = vpop.permute.xlu1 %1885  ;;  %v6348_v35 = vld [vmem:[%s8133_s1 + $0xe0] sm:$0xff] }
 0xa23   :  { %v1869_v13 = vpack.c.bf16 %v1865_v1, %v1861_v36  ;;  %2131 = vmatpush1.bf16.msra.mxu1 %v1835_v18  ;;  %v1872_v19 = vpack.c.bf16 %v1868_v39, %v1864_v54  ;;  %v1890_v55 = vsel %vm194_vm4, %v5997_v24, %v1888_v12  ;;  %v1896_v32 = vsel %vm194_vm4, %v1888_v12, %v5921_v3  ;;  %v6354_v24 = vld [vmem:[%s8133_s1 + $0xf8] sm:$0xff]  ;;  %v6372_v39 = vld [vmem:[%s8133_s1 + $0x180] sm:$0xff]  ;;  %v6381_v54 = vld [vmem:[%s8133_s1 + $0x168] sm:$0xff] }
 0xa24   :  { %2089 = vmatprep.subr.bf16.mxu0 %v8452_v6  ;;  %v1889_v33 = vsel %vm194_vm4, %v5999_v40, %v1886_v43  ;;  %v1895_v42 = vsel %vm194_vm4, %v1886_v43, %v5923_v10  ;;  %v1901_v18 = vmul.f32 %v6348_v35, %v1896_v32  ;;  %v1904_v3 = vmul.f32 %v6354_v24, %v1890_v55  ;;  %v6360_v40 = vld [vmem:[%s8133_s1 + $0xc0] sm:$0xff] }
 0xa25   :  { %v1897_v10 = vmul.f32 %v6360_v40, %v1895_v42  ;;  %v1900_v1 = vmul.f32 %v6366_v22, %v1889_v33  ;;  %2090 = vmatpush1.bf16.msra.mxu0 %v1869_v13  ;;  %8453 = vst [vmem:[#allocation18_spill] sm:$0xff] %v6372_v39  ;;  %v6376_v36 = vmul.f32 %v6372_v39, %v6143_v49  ;;  %8454 = vst [vmem:[#allocation24_spill] sm:$0xff] %v6381_v54  ;;  %v6387_v13 = vld [vmem:[%s8133_s1 + $0x148] sm:$0xff] }
 0xa26   :  { %v1942_v6 = vmul.f32 %v6381_v54, %v1932_v59  ;;  %8455 = vst [vmem:[#allocation25_spill] sm:$0xff] %v6387_v13  ;;  %v1938_v12 = vmul.f32 %v6387_v13, %v1931_v2  ;;  %2132 = vmatprep.subr.bf16.mxu1 %v1872_v19  ;;  %v8456_v43 = vpack.c.bf16 %v6075_v26, %v6083_v47  ;;  %v6401_v32 = vpop.permute.xlu0 %2023  ;;  %v6403_v2 = vpop.permute.xlu1 %2021 }
 0xa27   :  { %v1968_v49 = vsel %vm290_vm6, %v5977_v25, %v6005_v57  ;;  %v1967_v59 = vsel %vm290_vm6, %v5979_v29, %v6007_v0  ;;  %v1905_v55 = vpack.c.bf16 %v1901_v18, %v1897_v10  ;;  %2133 = vmatpush1.bf16.msra.mxu1 %v1871_v20  ;;  %v1908_v19 = vpack.c.bf16 %v1904_v3, %v1900_v1  ;;  %v6428_v10 = vld [vmem:[%s8133_s1 + $0x1a8] sm:$0xff] }
 0xa28   :  { %2091 = vmatprep.subr.bf16.mxu0 %v8456_v43  ;;  %v2006_v26 = vsel %vm336_vm7, %v5939_v61, %v5981_v31  ;;  %v1910_v47 = vpack.c.bf16 %v5769_v63, %v5767_v15  ;;  %v1909_v25 = vpack.c.bf16 %v5728_v8, %v5726_v11  ;;  %v1911_v29 = vpack.c.bf16 %v5815_v23, %v5813_v4 }
 0xa29   :  { %v1945_v20 = vpack.c.bf16 %v6113_v45, %v6121_v27  ;;  %v1907_v33 = vpack.c.bf16 %v1903_v56, %v1899_v5  ;;  %2092 = vmatpush1.bf16.msra.mxu0 %v1905_v55  ;;  %2134 = vmatprep.subr.bf16.mxu1 %v1908_v19  ;;  %v1912_v42 = vpack.c.bf16 %v5860_v30, %v5858_v38  ;;  %v6434_v27 = vld [vmem:[%s8133_s1 + $0x188] sm:$0xff]  ;;  %v6440_v5 = vld [vmem:[%s8133_s1 + $0x1e0] sm:$0xff] }
 0xa2a   :  { %v2005_v3 = vsel %vm336_vm7, %v5941_v34, %v5983_v7  ;;  %8457 = vst [vmem:[#allocation22_spill] sm:$0xff] %v6428_v10  ;;  %v1978_v45 = vmul.f32 %v6428_v10, %v1968_v49  ;;  %8458 = vst [vmem:[#allocation23_spill] sm:$0xff] %v6434_v27  ;;  %v1974_v56 = vmul.f32 %v6434_v27, %v1967_v59  ;;  %2093 = vmatprep.subr.bf16.mxu0 %v1910_v47  ;;  %v8460_v49 = vld [vmem:[#allocation36_spill] sm:$0xff]  ;;  %v1928_v59 = vpop.permute.xlu0 %1927  ;;  %v1926_v19 = vpop.permute.xlu1 %1925 }
 0xa2b   :  { %8459 = vst [vmem:[#allocation51_spill] sm:$0xff] %v6440_v5  ;;  %v6443_v1 = vmul.f32 %v6440_v5, %v2006_v26  ;;  %v2004_v43 = vsel %vm336_vm7, %v5981_v31, %v6033_v51  ;;  %v2003_v55 = vsel %vm336_vm7, %v5983_v7, %v8460_v49  ;;  %2135 = vmatpush1.bf16.msra.mxu1 %v1907_v33  ;;  %v8461_v26 = vld [vmem:[#allocation8_spill] sm:$0xff] }
 0xa2c   :  { %v1946_v47 = vpack.c.bf16 %v1942_v6, %v1938_v12  ;;  %v1930_v18 = vsel %vm244_vm5, %v6001_v41, %v1928_v59  ;;  %v1936_v5 = vsel %vm244_vm5, %v1928_v59, %v8461_v26  ;;  %2136 = vmatprep.subr.bf16.mxu1 %v1912_v42  ;;  %v1929_v31 = vsel %vm244_vm5, %v6003_v37, %v1926_v19  ;;  %v6468_v6 = vld [vmem:[%s8133_s1 + $0x170] sm:$0xff]  ;;  %v6474_v12 = vld [vmem:[%s8133_s1 + $0x178] sm:$0xff]  ;;  %v6492_v59 = vld [vmem:[%s8133_s1 + $0x1c0] sm:$0xff] }
 0xa2d   :  { %v1935_v7 = vsel %vm244_vm5, %v1926_v19, %v5930_v46  ;;  %8462 = vst [vmem:[#allocation53_spill] sm:$0xff] %v6468_v6  ;;  %v1943_v41 = vmul.f32 %v6468_v6, %v1930_v18  ;;  %8463 = vst [vmem:[#allocation52_spill] sm:$0xff] %v6474_v12  ;;  %v1944_v33 = vmul.f32 %v6474_v12, %v1936_v5  ;;  %v6480_v37 = vld [vmem:[%s8133_s1 + $0x150] sm:$0xff]  ;;  %v6486_v42 = vld [vmem:[%s8133_s1 + $0x158] sm:$0xff]  ;;  %2094 = vmatpush1.bf16.msra.mxu0 %v1909_v25 }
 0xa2e   :  { %8464 = vst [vmem:[#allocation54_spill] sm:$0xff] %v6480_v37  ;;  %v1939_v46 = vmul.f32 %v6480_v37, %v1929_v31  ;;  %8465 = vst [vmem:[#allocation29_spill] sm:$0xff] %v6486_v42  ;;  %v1940_v18 = vmul.f32 %v6486_v42, %v1935_v7  ;;  %v6495_v5 = vmul.f32 %v6492_v59, %v2005_v3  ;;  %v6500_v19 = vld [vmem:[%s8133_s1 + $0x1e8] sm:$0xff]  ;;  %2095 = vmatprep.subr.bf16.mxu0 %v1946_v47  ;;  %v8469_v12 = vld [vmem:[#allocation12_spill] sm:$0xff]  ;;  %v1962_v27 = vpop.permute.xlu1 %1961 }
 0xa2f   :  { %8466 = vst [vmem:[#allocation27_spill] sm:$0xff] %v6492_v59  ;;  %8467 = vst [vmem:[#allocation28_spill] sm:$0xff] %v6500_v19  ;;  %v2014_v26 = vmul.f32 %v6500_v19, %v2004_v43  ;;  %v6506_v31 = vld [vmem:[%s8133_s1 + $0x1c8] sm:$0xff]  ;;  %v1982_v7 = vpack.c.bf16 %v1978_v45, %v1974_v56  ;;  %v8470_v6 = vld [vmem:[#allocation34_spill] sm:$0xff]  ;;  %2137 = vmatpush1.bf16.msra.mxu1 %v1911_v29  ;;  %v1964_v19 = vpop.permute.xlu0 %1963  ;;  %v1965_v47 = vsel %vm290_vm6, %v6007_v0, %v1962_v27 }
 0xa30   :  { %8468 = vst [vmem:[#allocation26_spill] sm:$0xff] %v6506_v31  ;;  %v2010_v25 = vmul.f32 %v6506_v31, %v2003_v55  ;;  %v2040_v3 = vsel %vm382_vm8, %v8470_v6, %v8469_v12  ;;  %v8471_v59 = vld [vmem:[#allocation10_spill] sm:$0xff]  ;;  %v8472_v42 = vld [vmem:[#allocation37_spill] sm:$0xff]  ;;  %v1947_v43 = vpack.c.bf16 %v1943_v41, %v1939_v46  ;;  %v1948_v39 = vpack.c.bf16 %v1944_v33, %v1940_v18  ;;  %v6532_v29 = vld [vmem:[%s8133_s1 + $0x1b0] sm:$0xff] }
 0xa31   :  { %v2039_v37 = vsel %vm382_vm8, %v8472_v42, %v8471_v59  ;;  %v1966_v55 = vsel %vm290_vm6, %v6005_v57, %v1964_v19  ;;  %v8473_v45 = vld [vmem:[#allocation9_spill] sm:$0xff]  ;;  %v8474_v31 = vld [vmem:[#allocation6_spill] sm:$0xff]  ;;  %8475 = vst [vmem:[#allocation32_spill] sm:$0xff] %v6532_v29  ;;  %v6544_v0 = vld [vmem:[%s8133_s1 + $0x190] sm:$0xff]  ;;  %2096 = vmatpush1.bf16.msra.mxu0 %v1945_v20  ;;  %v2042_v20 = vsel %vm382_vm8, %v6401_v32, %v8470_v6 }
 0xa32   :  { %v1972_v56 = vsel %vm290_vm6, %v1964_v19, %v8473_v45  ;;  %v1971_v41 = vsel %vm290_vm6, %v1962_v27, %v8474_v31  ;;  %v1979_v33 = vmul.f32 %v6532_v29, %v1966_v55  ;;  %v6538_v57 = vld [vmem:[%s8133_s1 + $0x1b8] sm:$0xff]  ;;  %8477 = vst [vmem:[#allocation30_spill] sm:$0xff] %v6544_v0  ;;  %v1975_v27 = vmul.f32 %v6544_v0, %v1965_v47  ;;  %v6556_v31 = vld [vmem:[%s8133_s1 + $0x228] sm:$0xff]  ;;  %v1998_v29 = vpop.permute.xlu1 %1997 }
 0xa33   :  { %8476 = vst [vmem:[#allocation33_spill] sm:$0xff] %v6538_v57  ;;  %v1980_v46 = vmul.f32 %v6538_v57, %v1972_v56  ;;  %v6550_v18 = vld [vmem:[%s8133_s1 + $0x198] sm:$0xff]  ;;  %8479 = vst [vmem:[#allocation36_spill] sm:$0xff] %v6556_v31  ;;  %v2050_v55 = vmul.f32 %v6556_v31, %v2040_v3  ;;  %v6562_v45 = vld [vmem:[%s8133_s1 + $0x208] sm:$0xff]  ;;  %2138 = vmatprep.subr.bf16.mxu1 %v1948_v39  ;;  %2097 = vmatprep.subr.bf16.mxu0 %v1982_v7  ;;  %v2000_v57 = vpop.permute.xlu0 %1999 }
 0xa34   :  { %8478 = vst [vmem:[#allocation31_spill] sm:$0xff] %v6550_v18  ;;  %v1976_v19 = vmul.f32 %v6550_v18, %v1971_v41  ;;  %8480 = vst [vmem:[#allocation8_spill] sm:$0xff] %v6562_v45  ;;  %v2046_v56 = vmul.f32 %v6562_v45, %v2039_v37  ;;  %v2018_v47 = vpack.c.bf16 %v2014_v26, %v2010_v25  ;;  %2139 = vmatpush1.bf16.msra.mxu1 %v1947_v43  ;;  %v6588_v26 = vld [vmem:[%s8133_s1 + $0x1f0] sm:$0xff]  ;;  %v6606_v7 = vld [vmem:[%s8133_s1 + $0x1d8] sm:$0xff] }
 0xa35   :  { %v2041_v3 = vsel %vm382_vm8, %v6403_v2, %v8472_v42  ;;  %v1983_v41 = vpack.c.bf16 %v1979_v33, %v1975_v27  ;;  %v2002_v39 = vsel %vm336_vm7, %v6033_v51, %v2000_v57  ;;  %v2008_v37 = vsel %vm336_vm7, %v2000_v57, %v5939_v61  ;;  %8481 = vst [vmem:[#allocation12_spill] sm:$0xff] %v6588_v26  ;;  %v6594_v51 = vld [vmem:[%s8133_s1 + $0x1f8] sm:$0xff] }
 0xa36   :  { %v1984_v18 = vpack.c.bf16 %v1980_v46, %v1976_v19  ;;  %v2001_v6 = vsel %vm336_vm7, %v8460_v49, %v1998_v29  ;;  %v2007_v42 = vsel %vm336_vm7, %v1998_v29, %v5941_v34  ;;  %v2015_v25 = vmul.f32 %v6588_v26, %v2002_v39  ;;  %8482 = vst [vmem:[#allocation34_spill] sm:$0xff] %v6594_v51  ;;  %v6600_v49 = vld [vmem:[%s8133_s1 + $0x1d0] sm:$0xff]  ;;  %v6617_v46 = vld [vmem:[%s8133_s1 + $0x220] sm:$0xff]  ;;  %v6659_v39 = vld [vmem:[%s8133_s1 + $0x218] sm:$0xff] }
 0xa37   :  { %v2016_v61 = vmul.f32 %v6594_v51, %v2008_v37  ;;  %8483 = vst [vmem:[#allocation10_spill] sm:$0xff] %v6600_v49  ;;  %v2011_v34 = vmul.f32 %v6600_v49, %v2001_v6  ;;  %8484 = vst [vmem:[#allocation37_spill] sm:$0xff] %v6606_v7  ;;  %v2012_v43 = vmul.f32 %v6606_v7, %v2007_v42  ;;  %v6623_v19 = vld [vmem:[%s8133_s1 + $0x200] sm:$0xff] }
 0xa38   :  { %v8485_v29 = vpack.c.bf16 %v6193_v17, %v6376_v36  ;;  %v2017_v33 = vpack.c.bf16 %v6443_v1, %v6495_v5  ;;  %2140 = vmatprep.subr.bf16.mxu1 %v1984_v18  ;;  %v2054_v57 = vpack.c.bf16 %v2050_v55, %v2046_v56  ;;  %8486 = vst [vmem:[#allocation9_spill] sm:$0xff] %v6617_v46  ;;  %8487 = vst [vmem:[#allocation6_spill] sm:$0xff] %v6623_v19  ;;  %v2036_v1 = vpop.permute.xlu0 %2035  ;;  %v2034_v5 = vpop.permute.xlu1 %2033 }
 0xa39   :  { %v2049_v27 = vmul.f32 %v6617_v46, %v2042_v20  ;;  %v2045_v17 = vmul.f32 %v6623_v19, %v2041_v3  ;;  %v2019_v36 = vpack.c.bf16 %v2015_v25, %v2011_v34  ;;  %2141 = vmatpush1.bf16.msra.mxu1 %v1983_v41  ;;  %v2020_v18 = vpack.c.bf16 %v2016_v61, %v2012_v43  ;;  %v6641_v3 = vld [vmem:[%s8133_s1 + $0x230] sm:$0xff]  ;;  %v4081_v61 = vld [vmem:[%s8132_s2 + $0x20] ss:$8 sps:$4 sm:$0xff]  }
 0xa3a   :  { %2098 = vmatpush1.bf16.msra.mxu0 %v8485_v29  ;;  %v2038_v55 = vsel %vm382_vm8, %v8469_v12, %v2036_v1  ;;  %v2044_v56 = vsel %vm382_vm8, %v2036_v1, %v6401_v32  ;;  %v2043_v20 = vsel %vm382_vm8, %v2034_v5, %v6403_v2  ;;  %8488 = vst [vmem:[#allocation55_spill] sm:$0xff] %v6641_v3  ;;  %v6647_v12 = vld [vmem:[%s8133_s1 + $0x238] sm:$0xff]  ;;  %8491 = vst [vmem:[#allocation58_spill] sm:$0xff] %v6659_v39 }
 0xa3b   :  { %2099 = vmatprep.subr.bf16.mxu0 %v2018_v47  ;;  %v2037_v47 = vsel %vm382_vm8, %v8471_v59, %v2034_v5  ;;  %v2051_v41 = vmul.f32 %v6641_v3, %v2038_v55  ;;  %8489 = vst [vmem:[#allocation56_spill] sm:$0xff] %v6647_v12  ;;  %v2052_v32 = vmul.f32 %v6647_v12, %v2044_v56  ;;  %v6653_v59 = vld [vmem:[%s8133_s1 + $0x210] sm:$0xff] }
 0xa3c   :  { %8490 = vst [vmem:[#allocation57_spill] sm:$0xff] %v6653_v59  ;;  %v2047_v2 = vmul.f32 %v6653_v59, %v2037_v47  ;;  %v2048_v37 = vmul.f32 %v6659_v39, %v2043_v20  ;;  %2142 = vmatprep.subr.bf16.mxu1 %v2020_v18  ;;  %v2053_v6 = vpack.c.bf16 %v2049_v27, %v2045_v17 }
 0xa3d   :  { %2143 = vmatpush1.bf16.msra.mxu1 %v2019_v36 }
 0xa3e   :  { %2100 = vmatpush1.bf16.msra.mxu0 %v2017_v33  ;;  %v2055_v42 = vpack.c.bf16 %v2051_v41, %v2047_v2  ;;  %v2056_v25 = vpack.c.bf16 %v2052_v32, %v2048_v37 }
 0xa3f   :  { %2101 = vmatprep.subr.bf16.mxu0 %v2054_v57 }
 0xa40   :  { %2144 = vmatprep.subr.bf16.mxu1 %v2056_v25 }
 0xa41   :  { %2145 = vmatpush1.bf16.msra.mxu1 %v2055_v42 }
 0xa42   :  { %2102 = vmatpush1.bf16.msra.mxu0 %v2053_v6 }
 0xa44   :  { %2161 = vmatmul.mubr.bf16.vlgmr.msra.gmra.mrb[16].mxu1 %v4081_v61 }
 0xa45   :  { %2118 = vmatmul.mubr.bf16.vlgmr.msra.gmra.mrb[16].mxu0 %v4081_v61 }
 0xa47   :  { %v6665_v34 = vpop.permute.xlu1 %2065  ;;  %v6669_v33 = vpop.permute.xlu0 %2070 }
 0xa4b   :  { %v6667_v43 = vpop.permute.xlu1 %2181 }
 0xa4f   :  { %v6676_v47 = vpop.permute.xlu1 %2186 }
 0xb17   :  { %v2162_v17 = vpop.f32.mrb[16].mxu1 }
 0xb18   :  { %v2119_v29 = vpop.f32.mrb[16].mxu0  ;;  %v6674_v18 = vpop.f32.mrb[17].mxu1 }
 0xb19   :  { %v2120_v57 = vadd.f32 %v2119_v29, %v6665_v34  ;;  %v2121_v27 = vpop.f32.mrb[17].mxu0  ;;  %v2166_v56 = vpop.f32.mrb[18].mxu1  ;;  %v2163_v29 = vadd.f32 %v2162_v17, %v6665_v34 }
 0xb1a   :  { %v2123_v36 = vpop.f32.mrb[18].mxu0  ;;  %v6678_v41 = vpop.f32.mrb[19].mxu1  ;;  %v2122_v42 = vadd.f32 %v2121_v27, %v6665_v34  ;;  %v2167_v27 = vadd.f32 %v2166_v56, %v6669_v33 }
 0xb1b   :  { %vm2171_vm13 = vcmp.ge.f32.partialorder %v2120_v57, 0.0  ;;  %v2189_v1 = vmul.f32 %v6667_v43, %v2120_v57  ;;  %v2124_v5 = vadd.f32 %v2123_v36, %v6669_v33  ;;  %v2125_v55 = vpop.f32.mrb[19].mxu0  ;;  %vm2173_vm12 = vcmp.ge.f32.partialorder %v2163_v29, 0.0 }
 0xb1c   :  { %v2126_v25 = vadd.f32 %v2125_v55, %v6669_v33  ;;  %v2190_v61 = vmul.f32 %v6667_v43, %v2122_v42  ;;  %vm2172_vm15 = vcmp.ge.f32.partialorder %v2122_v42, 0.0  ;;  %v2195_v55 = vmul.f32 %v6676_v47, %v2167_v27 }
 0xb1d   :  { %v2197_v20 = vsel %vm2171_vm13, %v2120_v57, %v2189_v1  ;;  %vm2175_vm14 = vcmp.ge.f32.partialorder %v2124_v5, 0.0  ;;  %v2193_v2 = vmul.f32 %v6676_v47, %v2124_v5  ;;  %v2191_v1 = vmul.f32 %v6667_v43, %v2163_v29 }
 0xb1e   :  { %v6681_v32 = vadd.f32 %v2197_v20, %v5726_v11  ;;  %v2194_v57 = vmul.f32 %v6676_v47, %v2126_v25  ;;  %v2198_v36 = vsel %vm2172_vm15, %v2122_v42, %v2190_v61  ;;  %vm2176_vm9 = vcmp.ge.f32.partialorder %v2126_v25, 0.0 }
 0xb1f   :  { %v2201_v37 = vsel %vm2175_vm14, %v2124_v5, %v2193_v2  ;;  %v6721_v17 = vadd.f32 %v2198_v36, %v5767_v15  ;;  %v2199_v20 = vsel %vm2173_vm12, %v2163_v29, %v2191_v1  ;;  %vm2177_vm13 = vcmp.ge.f32.partialorder %v2167_v27, 0.0 }
 0xb20   :  { %8492 = vst [vmem:[#allocation59_spill] sm:$0xff] %v6681_v32  ;;  %2213 = vrot.lane.b32.xlu0 %v6681_v32, %s4307_s28  ;;  %v6687_v6 = vadd.f32 %v2201_v37, %v5728_v8  ;;  %v2202_v5 = vsel %vm2176_vm9, %v2126_v25, %v2194_v57  ;;  %v6732_v2 = vadd.f32 %v2199_v20, %v5813_v4  ;;  %v3920_v20 = vld [vmem:[%s8134_s3 + $0x30] sm:$0xff]  ;;  %v8505_v8 = vld [vmem:[#allocation7_spill] sm:$0xff] }
 0xb21   :  { %8494 = vst [vmem:[#allocation61_spill] sm:$0xff] %v6721_v17  ;;  %v6729_v56 = vadd.f32 %v2202_v5, %v5769_v63  ;;  %v2203_v37 = vsel %vm2177_vm13, %v2167_v27, %v2195_v55  ;;  %v2165_v25 = vadd.f32 %v6674_v18, %v6665_v34  ;;  %v2169_v61 = vadd.f32 %v6678_v41, %v6669_v33  ;;  %v4082_v27 = vld [vmem:[%s8132_s2 + $0x34] ss:$8 sps:$4 sm:$0xff]   ;;  %v8504_v63 = vld [vmem:[#allocation35_spill] sm:$0xff] }
 0xb22   :  { %8493 = vst [vmem:[#allocation60_spill] sm:$0xff] %v6687_v6  ;;  %2215 = vrot.lane.b32.xlu1 %v6687_v6, %s4307_s28  ;;  %8496 = vst [vmem:[#allocation63_spill] sm:$0xff] %v6732_v2  ;;  %v6739_v42 = vadd.f32 %v2203_v37, %v5815_v23  ;;  %3924 = vmatprep.mubr.msk.bf16.mxu0 %vm435_vm1, %v4082_v27 }
 0xb23   :  { %8495 = vst [vmem:[#allocation62_spill] sm:$0xff] %v6729_v56  ;;  %v2192_v29 = vmul.f32 %v6667_v43, %v2165_v25  ;;  %vm2174_vm14 = vcmp.ge.f32.partialorder %v2165_v25, 0.0  ;;  %v2196_v34 = vmul.f32 %v6676_v47, %v2169_v61  ;;  %vm2178_vm15 = vcmp.ge.f32.partialorder %v2169_v61, 0.0  ;;  %3925 = vmatprep.mubr.msk.bf16.mxu1 %vm435_vm1, %v4082_v27 }
 0xb24   :  { %2249 = vrot.lane.b32.xlu0 %v6681_v32, %s4308_s18  ;;  %8497 = vst [vmem:[#allocation64_spill] sm:$0xff] %v6739_v42 }
 0xb25   :  { %v2200_v18 = vsel %vm2174_vm14, %v2165_v25, %v2192_v29  ;;  %v2204_v43 = vsel %vm2178_vm15, %v2169_v61, %v2196_v34  ;;  %v3921_v25 = vld [vmem:[%s8134_s3 + $0x38] sm:$0xff] }
 0xb26   :  { %2251 = vrot.lane.b32.xlu1 %v6687_v6, %s4308_s18  ;;  %v6800_v33 = vadd.f32 %v2200_v18, %v5858_v38  ;;  %v6807_v47 = vadd.f32 %v2204_v43, %v5860_v30 }
 0xb28   :  { %2285 = vrot.lane.b32.xlu0 %v6681_v32, %s4309_s19  ;;  %8498 = vst [vmem:[#allocation65_spill] sm:$0xff] %v6800_v33  ;;  %8499 = vst [vmem:[#allocation66_spill] sm:$0xff] %v6807_v47 }
 0xb2a   :  { %2287 = vrot.lane.b32.xlu1 %v6687_v6, %s4309_s19 }
 0xb2c   :  { %2321 = vrot.lane.b32.xlu0 %v6681_v32, %s4310_s20 }
 0xb2e   :  { %2323 = vrot.lane.b32.xlu1 %v6687_v6, %s4310_s20 }
 0xb30   :  { %2361 = vrot.lane.b32.xlu0 %v6681_v32, %s4311_s21 }
 0xb32   :  { %2363 = vrot.lane.b32.xlu1 %v6687_v6, %s4311_s21 }
 0xb34   :  { %2397 = vrot.lane.b32.xlu0 %v6681_v32, %s4312_s22 }
 0xb36   :  { %2399 = vrot.lane.b32.xlu1 %v6687_v6, %s4312_s22 }
 0xb38   :  { %2433 = vrot.lane.b32.xlu0 %v6681_v32, %s4313_s23 }
 0xb3a   :  { %2435 = vrot.lane.b32.xlu1 %v6687_v6, %s4313_s23 }
 0xb3c   :  { %2217 = vrot.lane.b32.xlu0 %v6721_v17, %s4307_s28 }
 0xb3e   :  { %2219 = vrot.lane.b32.xlu1 %v6729_v56, %s4307_s28 }
 0xb40   :  { %2221 = vrot.lane.b32.xlu0 %v6732_v2, %s4307_s28 }
 0xb42   :  { %2223 = vrot.lane.b32.xlu1 %v6739_v42, %s4307_s28 }
 0xb44   :  { %2253 = vrot.lane.b32.xlu0 %v6721_v17, %s4308_s18 }
 0xb46   :  { %2255 = vrot.lane.b32.xlu1 %v6729_v56, %s4308_s18 }
 0xb48   :  { %2257 = vrot.lane.b32.xlu0 %v6732_v2, %s4308_s18 }
 0xb4a   :  { %2259 = vrot.lane.b32.xlu1 %v6739_v42, %s4308_s18 }
 0xb4c   :  { %2289 = vrot.lane.b32.xlu0 %v6721_v17, %s4309_s19 }
 0xb4e   :  { %2291 = vrot.lane.b32.xlu1 %v6729_v56, %s4309_s19 }
 0xb50   :  { %2293 = vrot.lane.b32.xlu0 %v6732_v2, %s4309_s19 }
 0xb52   :  { %2295 = vrot.lane.b32.xlu1 %v6739_v42, %s4309_s19 }
 0xb54   :  { %2325 = vrot.lane.b32.xlu0 %v6721_v17, %s4310_s20 }
 0xb56   :  { %2327 = vrot.lane.b32.xlu1 %v6729_v56, %s4310_s20 }
 0xb58   :  { %2329 = vrot.lane.b32.xlu0 %v6732_v2, %s4310_s20 }
 0xb5a   :  { %2331 = vrot.lane.b32.xlu1 %v6739_v42, %s4310_s20 }
 0xb5c   :  { %2365 = vrot.lane.b32.xlu0 %v6721_v17, %s4311_s21 }
 0xb5e   :  { %2367 = vrot.lane.b32.xlu1 %v6729_v56, %s4311_s21 }
 0xb60   :  { %2369 = vrot.lane.b32.xlu0 %v6732_v2, %s4311_s21 }
 0xb62   :  { %2371 = vrot.lane.b32.xlu1 %v6739_v42, %s4311_s21 }
 0xb64   :  { %2401 = vrot.lane.b32.xlu0 %v6721_v17, %s4312_s22 }
 0xb66   :  { %2403 = vrot.lane.b32.xlu1 %v6729_v56, %s4312_s22 }
 0xb68   :  { %2405 = vrot.lane.b32.xlu0 %v6732_v2, %s4312_s22 }
 0xb6a   :  { %2407 = vrot.lane.b32.xlu1 %v6739_v42, %s4312_s22 }
 0xb6c   :  { %2437 = vrot.lane.b32.xlu0 %v6721_v17, %s4313_s23 }
 0xb6e   :  { %2439 = vrot.lane.b32.xlu1 %v6729_v56, %s4313_s23 }
 0xb70   :  { %2441 = vrot.lane.b32.xlu0 %v6732_v2, %s4313_s23 }
 0xb72   :  { %2443 = vrot.lane.b32.xlu1 %v6739_v42, %s4313_s23 }
 0xb74   :  { %2473 = vrot.lane.b32.xlu0 %v6721_v17, %s4314_s24 }
 0xb76   :  { %2475 = vrot.lane.b32.xlu1 %v6729_v56, %s4314_s24  ;;  %v8523_v56 = vld [vmem:[#allocation44_spill] sm:$0xff] }
 0xb78   :  { %2225 = vrot.lane.b32.xlu0 %v6800_v33, %s4307_s28 }
 0xb7a   :  { %2227 = vrot.lane.b32.xlu1 %v6807_v47, %s4307_s28 }
 0xb7c   :  { %2261 = vrot.lane.b32.xlu0 %v6800_v33, %s4308_s18 }
 0xb7e   :  { %2263 = vrot.lane.b32.xlu1 %v6807_v47, %s4308_s18 }
 0xb80   :  { %2297 = vrot.lane.b32.xlu0 %v6800_v33, %s4309_s19 }
 0xb82   :  { %2299 = vrot.lane.b32.xlu1 %v6807_v47, %s4309_s19 }
 0xb84   :  { %2333 = vrot.lane.b32.xlu0 %v6800_v33, %s4310_s20 }
 0xb86   :  { %2335 = vrot.lane.b32.xlu1 %v6807_v47, %s4310_s20 }
 0xb88   :  { %2477 = vrot.lane.b32.xlu0 %v6732_v2, %s4314_s24 }
 0xb8a   :  { %2479 = vrot.lane.b32.xlu1 %v6739_v42, %s4314_s24 }
 0xb8c   :  { %2373 = vrot.lane.b32.xlu0 %v6800_v33, %s4311_s21 }
 0xb8e   :  { %2471 = vrot.lane.b32.xlu1 %v6687_v6, %s4314_s24 }
 0xb90   :  { %2409 = vrot.lane.b32.xlu0 %v6800_v33, %s4312_s22 }
 0xb92   :  { %v6833_v41 = vpop.permute.xlu0 %2213  ;;  %2375 = vrot.lane.b32.xlu1 %v6807_v47, %s4311_s21 }
 0xb94   :  { %2445 = vrot.lane.b32.xlu0 %v6800_v33, %s4313_s23  ;;  %v6839_v57 = vpop.permute.xlu1 %2215 }
 0xb96   :  { %v6844_v36 = vpop.permute.xlu0 %2249  ;;  %2411 = vrot.lane.b32.xlu1 %v6807_v47, %s4312_s22 }
 0xb98   :  { %2469 = vrot.lane.b32.xlu0 %v6681_v32, %s4314_s24  ;;  %v6852_v1 = vpop.permute.xlu1 %2251 }
 0xb9a   :  { %v6854_v5 = vpop.permute.xlu0 %2285  ;;  %2447 = vrot.lane.b32.xlu1 %v6807_v47, %s4313_s23 }
 0xb9c   :  { %2481 = vrot.lane.b32.xlu0 %v6800_v33, %s4314_s24  ;;  %v6860_v55 = vpop.permute.xlu1 %2287 }
 0xb9e   :  { %v6865_v37 = vpop.permute.xlu0 %2321  ;;  %2483 = vrot.lane.b32.xlu1 %v6807_v47, %s4314_s24 }
 0xba0   :  { %2513 = vperm.xlu0 %4067, %v3920_v20   ;;  %v6872_v61 = vpop.permute.xlu1 %2323 }
 0xba2   :  { %v6874_v29 = vpop.permute.xlu0 %2361  ;;  %2518 = vperm.xlu1 %4066, %v3921_v25  }
 0xba4   :  { %v6876_v34 = vpop.permute.xlu1 %2363 }
 0xba6   :  { %v6878_v18 = vpop.permute.xlu0 %2397 }
 0xba7   :  { %8500 = vst [vmem:[#allocation67_spill] sm:$0xff] %v6878_v18 }
 0xba8   :  { %v6880_v43 = vpop.permute.xlu1 %2399 }
 0xba9   :  { %8501 = vst [vmem:[#allocation68_spill] sm:$0xff] %v6880_v43 }
 0xbaa   :  { %v6882_v27 = vpop.permute.xlu0 %2433 }
 0xbab   :  { %8502 = vst [vmem:[#allocation69_spill] sm:$0xff] %v6882_v27 }
 0xbac   :  { %v6884_v30 = vpop.permute.xlu1 %2435 }
 0xbad   :  { %8503 = vst [vmem:[#allocation70_spill] sm:$0xff] %v6884_v30 }
 0xbae   :  { %v2218_v20 = vpop.permute.xlu0 %2217 }
 0xbaf   :  { %v2233_v38 = vsel %vm57_vm0, %v6833_v41, %v2218_v20 }
 0xbb0   :  { %v2220_v23 = vpop.permute.xlu1 %2219  ;;  %v2238_v15 = vmul.f32 %v8504_v63, %v2233_v38 }
 0xbb1   :  { %v2234_v25 = vsel %vm57_vm0, %v6839_v57, %v2220_v23 }
 0xbb2   :  { %v2222_v4 = vpop.permute.xlu0 %2221  ;;  %v2242_v11 = vmul.f32 %v8505_v8, %v2234_v25 }
 0xbb4   :  { %v2224_v12 = vpop.permute.xlu1 %2223  ;;  %v2246_v3 = vpack.c.bf16 %v2242_v11, %v2238_v15 }
 0xbb5   :  { %v2232_v32 = vsel %vm57_vm0, %v2220_v23, %v2224_v12 }
 0xbb6   :  { %v2254_v39 = vpop.permute.xlu0 %2253  ;;  %2533 = vmatprep.subr.bf16.mxu0 %v2246_v3 }
 0xbb8   :  { %v2256_v59 = vpop.permute.xlu1 %2255 }
 0xbb9   :  { %v2270_v43 = vsel %vm102_vm2, %v6852_v1, %v2256_v59 }
 0xbba   :  { %v2258_v46 = vpop.permute.xlu0 %2257 }
 0xbbb   :  { %v2267_v23 = vsel %vm102_vm2, %v2254_v39, %v2258_v46 }
 0xbbc   :  { %v6894_v51 = vpop.permute.xlu1 %2259 }
 0xbbe   :  { %v2290_v26 = vpop.permute.xlu0 %2289 }
 0xbbf   :  { %v2305_v47 = vsel %vm148_vm3, %v6854_v5, %v2290_v26 }
 0xbc0   :  { %v2292_v7 = vpop.permute.xlu1 %2291  ;;  %v2310_v17 = vmul.f32 %v8523_v56, %v2305_v47 }
 0xbc2   :  { %v6896_v49 = vpop.permute.xlu0 %2293 }
 0xbc4   :  { %v6898_v19 = vpop.permute.xlu1 %2295 }
 0xbc6   :  { %v6900_v45 = vpop.permute.xlu0 %2325 }
 0xbc8   :  { %v6902_v0 = vpop.permute.xlu1 %2327 }
 0xbca   :  { %v6904_v63 = vpop.permute.xlu0 %2329 }
 0xbcc   :  { %v6906_v8 = vpop.permute.xlu1 %2331 }
 0xbce   :  { %v6908_v11 = vpop.permute.xlu0 %2365 }
 0xbd0   :  { %v6910_v15 = vpop.permute.xlu1 %2367 }
 0xbd2   :  { %v6912_v38 = vpop.permute.xlu0 %2369 }
 0xbd3   :  { %8506 = vst [vmem:[#allocation35_spill] sm:$0xff] %v6912_v38 }
 0xbd4   :  { %v6914_v3 = vpop.permute.xlu1 %2371 }
 0xbd6   :  { %v6916_v25 = vpop.permute.xlu0 %2401 }
 0xbd7   :  { %8507 = vst [vmem:[#allocation7_spill] sm:$0xff] %v6916_v25  ;;  %v8516_v25 = vld [vmem:[#allocation14_spill] sm:$0xff] }
 0xbd8   :  { %v6918_v31 = vpop.permute.xlu1 %2403 }
 0xbd9   :  { %8508 = vst [vmem:[#allocation71_spill] sm:$0xff] %v6918_v31 }
 0xbda   :  { %v6920_v30 = vpop.permute.xlu0 %2405 }
 0xbdb   :  { %8509 = vst [vmem:[#allocation72_spill] sm:$0xff] %v6920_v30  ;;  %v2231_v30 = vsel %vm57_vm0, %v2218_v20, %v2222_v4 }
 0xbdc   :  { %v6922_v27 = vpop.permute.xlu1 %2407 }
 0xbdd   :  { %8510 = vst [vmem:[#allocation73_spill] sm:$0xff] %v6922_v27  ;;  %v2275_v27 = vmul.f32 %v6204_v52, %v2267_v23  ;;  %v8527_v23 = vld [vmem:[#allocation49_spill] sm:$0xff] }
 0xbde   :  { %v6924_v42 = vpop.permute.xlu0 %2437 }
 0xbdf   :  { %8511 = vst [vmem:[#allocation74_spill] sm:$0xff] %v6924_v42  ;;  %v2243_v42 = vmul.f32 %v8516_v25, %v2232_v32  ;;  %v8519_v32 = vld [vmem:[#allocation15_spill] sm:$0xff] }
 0xbe0   :  { %v6926_v2 = vpop.permute.xlu1 %2439  ;;  %v2239_v25 = vmul.f32 %v8519_v32, %v2231_v30  ;;  %v8522_v30 = vld [vmem:[#allocation13_spill] sm:$0xff] }
 0xbe1   :  { %8512 = vst [vmem:[#allocation75_spill] sm:$0xff] %v6926_v2  ;;  %v8517_v2 = vld [vmem:[#allocation43_spill] sm:$0xff] }
 0xbe2   :  { %v6928_v6 = vpop.permute.xlu0 %2441  ;;  %v2278_v13 = vmul.f32 %v8517_v2, %v2270_v43  ;;  %v8520_v43 = vld [vmem:[#allocation45_spill] sm:$0xff]  ;;  %v2247_v31 = vpack.c.bf16 %v2243_v42, %v2239_v25  ;;  %v8525_v25 = vld [vmem:[#allocation50_spill] sm:$0xff] }
 0xbe3   :  { %8513 = vst [vmem:[#allocation76_spill] sm:$0xff] %v6928_v6  ;;  %v2269_v6 = vsel %vm102_vm2, %v6844_v36, %v2254_v39 }
 0xbe4   :  { %v6932_v10 = vpop.permute.xlu1 %2443  ;;  %v2274_v33 = vmul.f32 %v8520_v43, %v2269_v6  ;;  %v2303_v6 = vsel %vm148_vm3, %v2290_v26, %v6896_v49 }
 0xbe5   :  { %8514 = vst [vmem:[#allocation77_spill] sm:$0xff] %v6932_v10  ;;  %v2268_v10 = vsel %vm102_vm2, %v2256_v59, %v6894_v51 }
 0xbe6   :  { %v6937_v18 = vpop.permute.xlu0 %2473  ;;  %v2282_v38 = vpack.c.bf16 %v2278_v13, %v2274_v33 }
 0xbe7   :  { %8515 = vst [vmem:[#allocation78_spill] sm:$0xff] %v6937_v18  ;;  %v2306_v18 = vsel %vm148_vm3, %v6860_v55, %v2292_v7 }
 0xbe8   :  { %v6954_v20 = vpop.permute.xlu1 %2475  ;;  %v2314_v32 = vmul.f32 %v8522_v30, %v2306_v18  ;;  %v8526_v18 = vld [vmem:[#allocation47_spill] sm:$0xff] }
 0xbe9   :  { %8518 = vst [vmem:[#allocation14_spill] sm:$0xff] %v6954_v20  ;;  %v8521_v20 = vld [vmem:[#allocation19_spill] sm:$0xff] }
 0xbea   :  { %v2226_v2 = vpop.permute.xlu0 %2225  ;;  %v2279_v54 = vmul.f32 %v8521_v20, %v2268_v10 }
 0xbeb   :  { %v2229_v39 = vsel %vm57_vm0, %v2222_v4, %v2226_v2  ;;  %v2235_v59 = vsel %vm57_vm0, %v2226_v2, %v6833_v41  ;;  %v2304_v4 = vsel %vm148_vm3, %v2292_v7, %v6898_v19  ;;  %v8524_v41 = vld [vmem:[#allocation48_spill] sm:$0xff]  ;;  %v2311_v2 = vmul.f32 %v6262_v48, %v2303_v6 }
 0xbec   :  { %v2228_v43 = vpop.permute.xlu1 %2227  ;;  %v2237_v42 = vmul.f32 %v8524_v41, %v2235_v59  ;;  %v2240_v52 = vmul.f32 %v8525_v25, %v2229_v39  ;;  %v2283_v33 = vpack.c.bf16 %v2279_v54, %v2275_v27  ;;  %v2318_v39 = vpack.c.bf16 %v2314_v32, %v2310_v17  ;;  %v8528_v32 = vld [vmem:[#allocation20_spill] sm:$0xff]  ;;  %v8530_v41 = vld [vmem:[#allocation46_spill] sm:$0xff] }
 0xbed   :  { %v2230_v10 = vsel %vm57_vm0, %v2224_v12, %v2228_v43  ;;  %v2236_v56 = vsel %vm57_vm0, %v2228_v43, %v6839_v57  ;;  %v2315_v12 = vmul.f32 %v6254_v16, %v2304_v4  ;;  %v2341_v57 = vsel %vm194_vm4, %v6865_v37, %v6900_v45 }
 0xbee   :  { %v2262_v47 = vpop.permute.xlu0 %2261  ;;  %v2241_v26 = vmul.f32 %v8526_v18, %v2236_v56  ;;  %v2244_v20 = vmul.f32 %v8527_v23, %v2230_v10 }
 0xbef   :  { %v2265_v7 = vsel %vm102_vm2, %v2258_v46, %v2262_v47  ;;  %v2271_v13 = vsel %vm102_vm2, %v2262_v47, %v6844_v36  ;;  %v2342_v46 = vsel %vm194_vm4, %v6872_v61, %v6902_v0 }
 0xbf0   :  { %v2245_v59 = vpack.c.bf16 %v2241_v26, %v2237_v42  ;;  %v2264_v30 = vpop.permute.xlu1 %2263  ;;  %v2248_v43 = vpack.c.bf16 %v2244_v20, %v2240_v52  ;;  %v2273_v54 = vmul.f32 %v6242_v60, %v2271_v13  ;;  %v2276_v48 = vmul.f32 %v6248_v21, %v2265_v7  ;;  %v8529_v21 = vld [vmem:[#allocation11_spill] sm:$0xff] }
 0xbf1   :  { %v2266_v16 = vsel %vm102_vm2, %v6894_v51, %v2264_v30  ;;  %v2272_v17 = vsel %vm102_vm2, %v2264_v30, %v6852_v1  ;;  %v2346_v4 = vmul.f32 %v8529_v21, %v2341_v57  ;;  %v2350_v42 = vmul.f32 %v8530_v41, %v2342_v46  ;;  %v8534_v57 = vld [vmem:[#allocation16_spill] sm:$0xff]  ;;  %v8542_v21 = vld [vmem:[#allocation7_spill] sm:$0xff] }
 0xbf2   :  { %v2298_v36 = vpop.permute.xlu0 %2297  ;;  %v2277_v27 = vmul.f32 %v6230_v53, %v2272_v17  ;;  %v2280_v6 = vmul.f32 %v8528_v32, %v2266_v16  ;;  %2534 = vmatpush1.bf16.msra.mxu0 %v2245_v59  ;;  %2576 = vmatprep.subr.bf16.mxu1 %v2248_v43  ;;  %v2319_v1 = vpack.c.bf16 %v2315_v12, %v2311_v2  ;;  %v8532_v2 = vld [vmem:[#allocation61_spill] sm:$0xff]  ;;  %v8533_v12 = vld [vmem:[#allocation62_spill] sm:$0xff]  ;;  %v8535_v59 = vld [vmem:[#allocation24_spill] sm:$0xff] }
 0xbf3   :  { %v2301_v60 = vsel %vm148_vm3, %v6896_v49, %v2298_v36  ;;  %v2307_v51 = vsel %vm148_vm3, %v2298_v36, %v6854_v5  ;;  %2535 = vmatprep.subr.bf16.mxu0 %v2282_v38  ;;  %2577 = vmatpush1.bf16.msra.mxu1 %v2247_v31  ;;  %v2340_v53 = vsel %vm194_vm4, %v6902_v0, %v6906_v8  ;;  %v8536_v43 = vld [vmem:[#allocation73_spill] sm:$0xff] }
 0xbf4   :  { %v2281_v25 = vpack.c.bf16 %v2277_v27, %v2273_v54  ;;  %v2300_v52 = vpop.permute.xlu1 %2299  ;;  %v2284_v10 = vpack.c.bf16 %v2280_v6, %v2276_v48  ;;  %v2309_v49 = vmul.f32 %v6300_v58, %v2307_v51  ;;  %v2312_v56 = vmul.f32 %v6306_v50, %v2301_v60  ;;  %v8537_v54 = vld [vmem:[#allocation71_spill] sm:$0xff]  ;;  %v8538_v17 = vld [vmem:[#allocation17_spill] sm:$0xff]  ;;  %v8540_v27 = vld [vmem:[#allocation66_spill] sm:$0xff] }
 0xbf5   :  { %v2302_v47 = vsel %vm148_vm3, %v6898_v19, %v2300_v52  ;;  %v2308_v31 = vsel %vm148_vm3, %v2300_v52, %v6860_v55  ;;  %v2339_v50 = vsel %vm194_vm4, %v6900_v45, %v6904_v63  ;;  %v2382_v55 = vsel %vm244_vm5, %v6876_v34, %v6910_v15  ;;  %v8539_v36 = vld [vmem:[#allocation65_spill] sm:$0xff] }
 0xbf6   :  { %v2334_v5 = vpop.permute.xlu0 %2333  ;;  %v2313_v38 = vmul.f32 %v6288_v44, %v2308_v31  ;;  %v2316_v0 = vmul.f32 %v6294_v62, %v2302_v47  ;;  %2536 = vmatpush1.bf16.msra.mxu0 %v2281_v25  ;;  %2578 = vmatprep.subr.bf16.mxu1 %v2284_v10  ;;  %v2354_v44 = vpack.c.bf16 %v2350_v42, %v2346_v4  ;;  %v8541_v6 = vld [vmem:[#allocation25_spill] sm:$0xff]  ;;  %v8543_v4 = vld [vmem:[#allocation67_spill] sm:$0xff]  ;;  %v8544_v42 = vld [vmem:[#allocation72_spill] sm:$0xff] }
 0xbf7   :  { %v2337_v58 = vsel %vm194_vm4, %v6904_v63, %v2334_v5  ;;  %v2343_v19 = vsel %vm194_vm4, %v2334_v5, %v6865_v37  ;;  %2537 = vmatprep.subr.bf16.mxu0 %v2318_v39  ;;  %2579 = vmatpush1.bf16.msra.mxu1 %v2283_v33  ;;  %v2351_v62 = vmul.f32 %v6313_v14, %v2340_v53  ;;  %v8546_v25 = vld [vmem:[#allocation22_spill] sm:$0xff]  ;;  %v8547_v10 = vld [vmem:[#allocation77_spill] sm:$0xff]  ;;  %v8549_v31 = vld [vmem:[#allocation59_spill] sm:$0xff] }
 0xbf8   :  { %v2317_v18 = vpack.c.bf16 %v2313_v38, %v2309_v49  ;;  %v2336_v26 = vpop.permute.xlu1 %2335  ;;  %v2320_v23 = vpack.c.bf16 %v2316_v0, %v2312_v56  ;;  %v2380_v45 = vsel %vm244_vm5, %v6910_v15, %v6914_v3  ;;  %v2348_v37 = vmul.f32 %v6366_v22, %v2337_v58  ;;  %v8548_v49 = vld [vmem:[#allocation75_spill] sm:$0xff]  ;;  %v8550_v5 = vld [vmem:[#allocation60_spill] sm:$0xff] }
 0xbf9   :  { %v2338_v63 = vsel %vm194_vm4, %v6906_v8, %v2336_v26  ;;  %v2344_v14 = vsel %vm194_vm4, %v2336_v26, %v6872_v61  ;;  %v2345_v7 = vmul.f32 %v6360_v40, %v2343_v19  ;;  %v2347_v22 = vmul.f32 %v6319_v28, %v2339_v50  ;;  %v8531_v61 = vld [vmem:[#allocation35_spill] sm:$0xff]  ;;  %v8551_v58 = vld [vmem:[#allocation76_spill] sm:$0xff]  ;;  %v8552_v50 = vld [vmem:[#allocation74_spill] sm:$0xff] }
 0xbfa   :  { %v7058_v20 = vpop.permute.xlu0 %2477  ;;  %v2349_v13 = vmul.f32 %v6348_v35, %v2344_v14  ;;  %v2352_v33 = vmul.f32 %v6354_v24, %v2338_v63  ;;  %2538 = vmatpush1.bf16.msra.mxu0 %v2317_v18  ;;  %2580 = vmatprep.subr.bf16.mxu1 %v2320_v23  ;;  %v2381_v8 = vsel %vm244_vm5, %v6874_v29, %v6908_v11  ;;  %v8554_v18 = vld [vmem:[#allocation64_spill] sm:$0xff]  ;;  %v8555_v23 = vld [vmem:[#allocation18_spill] sm:$0xff] }
 0xbfb   :  { %2539 = vmatprep.subr.bf16.mxu0 %v2354_v44  ;;  %2581 = vmatpush1.bf16.msra.mxu1 %v2319_v1  ;;  %v2379_v40 = vsel %vm244_vm5, %v6908_v11, %v8531_v61  ;;  %v2358_v39 = vpack.c.bf16 %v8533_v12, %v8532_v2  ;;  %v2355_v28 = vpack.c.bf16 %v2351_v62, %v2347_v22  ;;  %v8545_v1 = vld [vmem:[#allocation68_spill] sm:$0xff]  ;;  %v8558_v22 = vld [vmem:[#allocation69_spill] sm:$0xff]  ;;  %v8561_v2 = vld [vmem:[#allocation26_spill] sm:$0xff] }
 0xbfc   :  { %v2353_v15 = vpack.c.bf16 %v2349_v13, %v2345_v7  ;;  %v7072_v35 = vpop.permute.xlu1 %2479  ;;  %v2356_v24 = vpack.c.bf16 %v2352_v33, %v2348_v37  ;;  %v2389_v46 = vmul.f32 %v8534_v57, %v2382_v55  ;;  %v2390_v30 = vmul.f32 %v8535_v59, %v2380_v45  ;;  %v8553_v55 = vld [vmem:[#allocation63_spill] sm:$0xff]  ;;  %v8557_v13 = vld [vmem:[#allocation21_spill] sm:$0xff] }
 0xbfd   :  { %v2416_v48 = vsel %vm290_vm6, %v8537_v54, %v8536_v43  ;;  %v2385_v11 = vmul.f32 %v8538_v17, %v2381_v8  ;;  %v2360_v32 = vpack.c.bf16 %v8540_v27, %v8539_v36  ;;  %v2386_v60 = vmul.f32 %v8541_v6, %v2379_v40  ;;  %v8556_v37 = vld [vmem:[#allocation23_spill] sm:$0xff]  ;;  %v8559_v40 = vld [vmem:[#allocation28_spill] sm:$0xff]  ;;  %v8565_v27 = vld [vmem:[#allocation53_spill] sm:$0xff] }
 0xbfe   :  { %v2374_v16 = vpop.permute.xlu0 %2373  ;;  %2540 = vmatpush1.bf16.msra.mxu0 %v2353_v15  ;;  %2582 = vmatprep.subr.bf16.mxu1 %v2356_v24  ;;  %v2417_v41 = vsel %vm290_vm6, %v8543_v4, %v8542_v21  ;;  %v2415_v51 = vsel %vm290_vm6, %v8542_v21, %v8544_v42  ;;  %v2418_v53 = vsel %vm290_vm6, %v8545_v1, %v8537_v54  ;;  %v8560_v24 = vld [vmem:[#allocation70_spill] sm:$0xff]  ;;  %v8566_v6 = vld [vmem:[#allocation52_spill] sm:$0xff] }
 0xbff   :  { %2541 = vmatprep.subr.bf16.mxu0 %v2358_v39  ;;  %2583 = vmatpush1.bf16.msra.mxu1 %v2355_v28  ;;  %v2426_v52 = vmul.f32 %v8546_v25, %v2416_v48  ;;  %v2452_v56 = vsel %vm336_vm7, %v8548_v49, %v8547_v10  ;;  %v2357_v38 = vpack.c.bf16 %v8550_v5, %v8549_v31  ;;  %v8569_v25 = vld [vmem:[#allocation78_spill] sm:$0xff] }
 0xc00   :  { %v7103_v47 = vpop.permute.xlu1 %2471  ;;  %2584 = vmatprep.subr.bf16.mxu1 %v2360_v32  ;;  %v2393_v0 = vpack.c.bf16 %v2389_v46, %v2385_v11  ;;  %v2451_v19 = vsel %vm336_vm7, %v8552_v50, %v8551_v58  ;;  %v2394_v62 = vpack.c.bf16 %v2390_v30, %v2386_v60  ;;  %v2359_v26 = vpack.c.bf16 %v8554_v18, %v8553_v55  ;;  %v8563_v46 = vld [vmem:[#allocation54_spill] sm:$0xff]  ;;  %v8564_v30 = vld [vmem:[#allocation29_spill] sm:$0xff]  ;;  %v8573_v55 = vld [vmem:[#allocation32_spill] sm:$0xff] }
 0xc01   :  { %v2421_v45 = vmul.f32 %v8555_v23, %v2417_v41  ;;  %v2422_v63 = vmul.f32 %v8556_v37, %v2415_v51  ;;  %v2377_v14 = vsel %vm244_vm5, %v8531_v61, %v2374_v16  ;;  %v2383_v7 = vsel %vm244_vm5, %v2374_v16, %v6874_v29  ;;  %v8562_v29 = vld [vmem:[#allocation14_spill] sm:$0xff]  ;;  %v8568_v51 = vld [vmem:[#allocation51_spill] sm:$0xff]  ;;  %v8575_v37 = vld [vmem:[#allocation8_spill] sm:$0xff] }
 0xc02   :  { %v2410_v44 = vpop.permute.xlu0 %2409  ;;  %2542 = vmatpush1.bf16.msra.mxu0 %v2357_v38  ;;  %v2425_v33 = vmul.f32 %v8557_v13, %v2418_v53  ;;  %v2453_v8 = vsel %vm336_vm7, %v8558_v22, %v8552_v50  ;;  %v2462_v15 = vmul.f32 %v8559_v40, %v2452_v56  ;;  %v2454_v61 = vsel %vm336_vm7, %v8560_v24, %v8548_v49  ;;  %v8571_v5 = vld [vmem:[#allocation30_spill] sm:$0xff] }
 0xc03   :  { %2543 = vmatprep.subr.bf16.mxu0 %v2394_v62  ;;  %2585 = vmatpush1.bf16.msra.mxu1 %v2359_v26  ;;  %v2458_v12 = vmul.f32 %v8561_v2, %v2451_v19  ;;  %v2488_v39 = vsel %vm382_vm8, %v8562_v29, %v7072_v35  ;;  %v2430_v57 = vpack.c.bf16 %v2426_v52, %v2422_v63  ;;  %v8570_v52 = vld [vmem:[#allocation36_spill] sm:$0xff]  ;;  %v8574_v26 = vld [vmem:[#allocation33_spill] sm:$0xff]  ;;  %v8576_v40 = vld [vmem:[#allocation6_spill] sm:$0xff] }
 0xc04   :  { %v2376_v28 = vpop.permute.xlu1 %2375  ;;  %v2387_v59 = vmul.f32 %v8563_v46, %v2377_v14  ;;  %v2388_v54 = vmul.f32 %v8564_v30, %v2383_v7  ;;  %v2413_v11 = vsel %vm290_vm6, %v8544_v42, %v2410_v44  ;;  %v2419_v36 = vsel %vm290_vm6, %v2410_v44, %v8543_v4 }
 0xc05   :  { %v2378_v48 = vsel %vm244_vm5, %v6914_v3, %v2376_v28  ;;  %v2384_v16 = vsel %vm244_vm5, %v2376_v28, %v6876_v34  ;;  %v2429_v21 = vpack.c.bf16 %v2425_v33, %v2421_v45  ;;  %v8567_v3 = vld [vmem:[#allocation27_spill] sm:$0xff]  ;;  %v2461_v53 = vmul.f32 %v8568_v51, %v2454_v61  ;;  %v8578_v28 = vld [vmem:[#allocation37_spill] sm:$0xff]  ;;  %v8585_v51 = vld [vmem:[#allocation56_spill] sm:$0xff] }
 0xc06   :  { %v2446_v17 = vpop.permute.xlu0 %2445  ;;  %v2391_v32 = vmul.f32 %v8565_v27, %v2378_v48  ;;  %v2392_v60 = vmul.f32 %v8566_v6, %v2384_v16  ;;  %2544 = vmatpush1.bf16.msra.mxu0 %v2393_v0  ;;  %v2457_v41 = vmul.f32 %v8567_v3, %v2453_v8  ;;  %v2466_v34 = vpack.c.bf16 %v2462_v15, %v2458_v12  ;;  %v8572_v0 = vld [vmem:[#allocation31_spill] sm:$0xff]  ;;  %v8577_v12 = vld [vmem:[#allocation10_spill] sm:$0xff]  ;;  %v8582_v6 = vld [vmem:[#allocation57_spill] sm:$0xff] }
 0xc07   :  { %2545 = vmatprep.subr.bf16.mxu0 %v2430_v57  ;;  %v2487_v42 = vsel %vm382_vm8, %v8569_v25, %v7058_v20  ;;  %v2498_v49 = vmul.f32 %v8570_v52, %v2488_v39  ;;  %v2423_v38 = vmul.f32 %v8571_v5, %v2413_v11  ;;  %v2424_v50 = vmul.f32 %v8572_v0, %v2419_v36  ;;  %v8584_v3 = vld [vmem:[#allocation55_spill] sm:$0xff] }
 0xc08   :  { %v2395_v4 = vpack.c.bf16 %v2391_v32, %v2387_v59  ;;  %v2412_v56 = vpop.permute.xlu1 %2411  ;;  %v2396_v31 = vpack.c.bf16 %v2392_v60, %v2388_v54  ;;  %v2494_v63 = vmul.f32 %v8575_v37, %v2487_v42  ;;  %v2465_v14 = vpack.c.bf16 %v2461_v53, %v2457_v41  ;;  %v8580_v59 = vld [vmem:[#allocation34_spill] sm:$0xff]  ;;  %v8581_v54 = vld [vmem:[#allocation9_spill] sm:$0xff] }
 0xc09   :  { %v2414_v19 = vsel %vm290_vm6, %v8536_v43, %v2412_v56  ;;  %v2420_v44 = vsel %vm290_vm6, %v2412_v56, %v8545_v1  ;;  %v2449_v43 = vsel %vm336_vm7, %v8551_v58, %v2446_v17  ;;  %v2455_v1 = vsel %vm336_vm7, %v2446_v17, %v8558_v22  ;;  %v8583_v60 = vld [vmem:[#allocation58_spill] sm:$0xff] }
 0xc0a   :  { %v2470_v62 = vpop.permute.xlu0 %2469  ;;  %v2427_v18 = vmul.f32 %v8573_v55, %v2414_v19  ;;  %v2428_v23 = vmul.f32 %v8574_v26, %v2420_v44  ;;  %2586 = vmatprep.subr.bf16.mxu1 %v2396_v31  ;;  %2546 = vmatpush1.bf16.msra.mxu0 %v2429_v21  ;;  %v2490_v7 = vsel %vm382_vm8, %v7103_v47, %v8562_v29  ;;  %v8579_v29 = vld [vmem:[#allocation12_spill] sm:$0xff]  ;;  %v8586_v42 = vmov 0.0|0.0  }
 0xc0b   :  { %v2489_v45 = vsel %vm382_vm8, %v2470_v62, %v8569_v25  ;;  %2547 = vmatprep.subr.bf16.mxu0 %v2466_v34  ;;  %2587 = vmatpush1.bf16.msra.mxu1 %v2395_v4  ;;  %v2502_v2 = vpack.c.bf16 %v2498_v49, %v2494_v63  ;;  %v2459_v39 = vmul.f32 %v8577_v12, %v2449_v43  ;;  %v4084_v34 = vld [vmem:[%s8132_s2 + $0x30] ss:$8 sps:$4 sm:$0xff]  }
 0xc0c   :  { %v2431_v13 = vpack.c.bf16 %v2427_v18, %v2423_v38  ;;  %v2448_v33 = vpop.permute.xlu1 %2447  ;;  %v2432_v8 = vpack.c.bf16 %v2428_v23, %v2424_v50  ;;  %v2493_v15 = vmul.f32 %v8576_v40, %v2489_v45  ;;  %v2460_v57 = vmul.f32 %v8578_v28, %v2455_v1 }
 0xc0d   :  { %v2450_v58 = vsel %vm336_vm7, %v8547_v10, %v2448_v33  ;;  %v2456_v22 = vsel %vm336_vm7, %v2448_v33, %v8560_v24  ;;  %v2497_v48 = vmul.f32 %v8581_v54, %v2490_v7  ;;  %v7243_v7 = vld [vmem:[%s8136_s5 + $0x8] sm:$0xff]  ;;  %v4233_v54 = vld [vmem:[%s8135_s4 + $0x10] sm:$0xff] }
 0xc0e   :  { %v2482_v61 = vpop.permute.xlu0 %2481  ;;  %v2463_v46 = vmul.f32 %v8579_v29, %v2450_v58  ;;  %v2464_v30 = vmul.f32 %v8580_v59, %v2456_v22  ;;  %2588 = vmatprep.subr.bf16.mxu1 %v2432_v8  ;;  %2548 = vmatpush1.bf16.msra.mxu0 %v2465_v14 }
 0xc0f   :  { %v2485_v10 = vsel %vm382_vm8, %v7058_v20, %v2482_v61  ;;  %v2491_v24 = vsel %vm382_vm8, %v2482_v61, %v2470_v62  ;;  %2589 = vmatpush1.bf16.msra.mxu1 %v2431_v13  ;;  %2549 = vmatprep.subr.bf16.mxu0 %v2502_v2  ;;  %v2501_v36 = vpack.c.bf16 %v2497_v48, %v2493_v15 }
 0xc10   :  { %v2467_v16 = vpack.c.bf16 %v2463_v46, %v2459_v39  ;;  %v2484_v17 = vpop.permute.xlu1 %2483  ;;  %v2468_v11 = vpack.c.bf16 %v2464_v30, %v2460_v57  ;;  %v2495_v20 = vmul.f32 %v8582_v6, %v2485_v10  ;;  %v2496_v21 = vmul.f32 %v8583_v60, %v2491_v24 }
 0xc11   :  { %v2486_v27 = vsel %vm382_vm8, %v7072_v35, %v2484_v17  ;;  %v2492_v32 = vsel %vm382_vm8, %v2484_v17, %v7103_v47  ;;  %v8587_v47 = vmov 0.0  }
 0xc12   :  { %v2499_v41 = vmul.f32 %v8584_v3, %v2486_v27  ;;  %v2500_v53 = vmul.f32 %v8585_v51, %v2492_v32  ;;  %2590 = vmatprep.subr.bf16.mxu1 %v2468_v11  ;;  %2550 = vmatpush1.bf16.msra.mxu0 %v2501_v36  ;;  %v4234_v11 = vld [vmem:[%s8135_s4 + $0x18] sm:$0xff] }
 0xc13   :  { %2591 = vmatpush1.bf16.msra.mxu1 %v2467_v16  ;;  %4030 = vmatprep.subr.bf16.mxu0 %v8586_v42 }
 0xc14   :  { %v2503_v35 = vpack.c.bf16 %v2499_v41, %v2495_v20  ;;  %v2504_v25 = vpack.c.bf16 %v2500_v53, %v2496_v21 }
 0xc15   :  { %2566 = vmatmul.mubr.bf16.vlgmr.msra.gmra.mrb[20].mxu0 %v4084_v34 }
 0xc16   :  { %2592 = vmatprep.subr.bf16.mxu1 %v2504_v25  ;;  %3996 = vmatprep.mubr.msk.f32.mxu0 %vm4317_vm10, %v8587_v47 }
 0xc17   :  { %2593 = vmatpush1.bf16.msra.mxu1 %v2503_v35 }
 0xc1a   :  { %2609 = vmatmul.mubr.bf16.vlgmr.msra.gmra.mrb[20].mxu1 %v4084_v34 }
 0xc1f   :  { %v2514_v52 = vpop.permute.xlu0 %2513 }
 0xc21   :  { %v2519_v31 = vpop.permute.xlu1 %2518 }
 0xce8   :  { %v2567_v49 = vpop.f32.mrb[20].mxu0 }
 0xce9   :  { %v7216_v4 = vadd.f32 %v2567_v49, %v2514_v52  ;;  %v2569_v56 = vpop.f32.mrb[21].mxu0 }
 0xcea   :  { %v7218_v5 = vadd.f32 %v2569_v56, %v2514_v52  ;;  %v2571_v38 = vpop.f32.mrb[22].mxu0 }
 0xceb   :  { %v7220_v0 = vadd.f32 %v2571_v38, %v2519_v31  ;;  %v2573_v50 = vpop.f32.mrb[23].mxu0 }
 0xcec   :  { %v2619_v19 = vadd.f32 %v7218_v5, %v7216_v4  ;;  %v7224_v44 = vadd.f32 %v2573_v50, %v2519_v31 }
 0xced   :  { %v2610_v62 = vpop.f32.mrb[20].mxu1 }
 0xcee   :  { %v7226_v55 = vadd.f32 %v2610_v62, %v2514_v52  ;;  %v2612_v18 = vpop.f32.mrb[21].mxu1  ;;  %v2622_v26 = vadd.f32 %v7224_v44, %v7220_v0  ;;  %2620 = vadd.xlane.f32.xlu0 %v2619_v19 }
 0xcef   :  { %v7230_v23 = vadd.f32 %v2612_v18, %v2514_v52  ;;  %v2614_v45 = vpop.f32.mrb[22].mxu1 }
 0xcf0   :  { %v2616_v37 = vpop.f32.mrb[23].mxu1  ;;  %v7234_v43 = vadd.f32 %v2614_v45, %v2519_v31  ;;  %2623 = vadd.xlane.f32.xlu1 %v2622_v26 }
 0xcf1   :  { %v2829_v63 = vadd.f32 %v7230_v23, %v7226_v55  ;;  %v7236_v1 = vadd.f32 %v2616_v37, %v2519_v31 }
 0xcf3   :  { %2830 = vadd.xlane.f32.xlu0 %v2829_v63  ;;  %v2832_v14 = vadd.f32 %v7236_v1, %v7234_v43 }
 0xcf7   :  { %2833 = vadd.xlane.f32.xlu0 %v2832_v14 }
 0xd01   :  { %2628 = vrot.lane.b32.xlu1 %v7243_v7, %s4313_s23 }
 0xd7b   :  { %v2621_v13 = vpop.xlane.xlu0 %2620 }
 0xd7c   :  { %v2625_v8 = vmul.f32 0.00390625, %v2621_v13 }
 0xd7d   :  { %v2624_v33 = vpop.xlane.xlu1 %2623 }
 0xd7e   :  { %v2626_v40 = vmul.f32 0.00390625, %v2624_v33 }
 0xd80   :  { %v2831_v15 = vpop.xlane.xlu0 %2830  ;;  %v4031_v58 = vpack.c.bf16 %v2626_v40, %v2625_v8 }
 0xd81   :  { %v2835_v61 = vmul.f32 0.00390625, %v2831_v15  ;;  %v2629_v39 = vpop.permute.xlu1 %2628 }
 0xd82   :  { %4032 = vmatpush3.bf16.msra.mxu0 %v4031_v58 }
 0xd83   :  { %4033 = vmatprep.subr.bf16.mxu0 %v8586_v42 }
 0xd84   :  { %v2834_v22 = vpop.xlane.xlu0 %2833 }
 0xd85   :  { %v2836_v2 = vmul.f32 0.00390625, %v2834_v22  ;;  %3997 = vmatmul.mubr.msk.f32.vlgmr.msra.gmra.mrb[24].mxu0 %vm435_vm1, %v7243_v7  ;;  %v8588_v22 = vmov 34  }
 0xd86   :  { %4008 = vmatprep.mubr.msk.f32.mxu0 %vm4317_vm10, %v8587_v47 }
 0xd87   :  { %v4034_v12 = vpack.c.bf16 %v2836_v2, %v2835_v61  ;;  %v8589_v61 = vmov 35   ;;  %v8590_v2 = vmov 0  }
 0xd89   :  { %4035 = vmatpush3.bf16.msra.mxu0 %v4034_v12  ;;  %v8591_v12 = vmov 8  }
 0xd8c   :  { %4009 = vmatmul.mubr.msk.f32.vlgmr.msra.gmra.mrb[26].mxu0 %vm435_vm1, %v7243_v7 }
 0xd8d   :  { %3091 = vmatprep.mubr.f32.mxu0 %v8587_v47 }
 0xe58   :  { %v2699_v28 = vpop.f32.mrb[24].mxu0 }
 0xe59   :  { %v2700_v57 = vadd.f32 %v2699_v28, %v2629_v39  ;;  %v3998_v29 = vpop.f32.mrb[25].mxu0 }
 0xe5b   :  { %2705 = vrot.lane.b32.xlu0 %v2700_v57, %s4307_s28  ;;  %vm2703_vm10 = vcmp.ge.f32.partialorder %v2700_v57, 0.0 }
 0xe5f   :  { %v2903_v46 = vpop.f32.mrb[26].mxu0  ;;  %2714 = vrot.lane.b32.xlu0 %v4233_v54, %s4319_s26 }
 0xe60   :  { %v2904_v59 = vadd.f32 %v2903_v46, %v2629_v39  ;;  %v4010_v30 = vpop.f32.mrb[27].mxu0 }
 0xe62   :  { %2909 = vrot.lane.b32.xlu1 %v2904_v59, %s4307_s28  ;;  %vm2907_vm9 = vcmp.ge.f32.partialorder %v2904_v59, 0.0 }
 0xecd   :  { %v2706_v48 = vpop.permute.xlu0 %2705 }
 0xece   :  { %v2708_v10 = vmul.f32 %v7243_v7, %v2706_v48 }
 0xed0   :  { %2710 = vrot.lane.b32.xlu1 %v2708_v10, %s4314_s24 }
 0xed1   :  { %v2715_v24 = vpop.permute.xlu0 %2714 }
 0xed2   :  { %4001 = vmatprep.mubr.msk.f32.mxu1 %vm1079_vm11, %v2715_v24 }
 0xed4   :  { %v2910_v16 = vpop.permute.xlu1 %2909  ;;  %2716 = vrot.lane.b32.xlu1 %v4234_v11, %s4319_s26 }
 0xed5   :  { %v2912_v17 = vmul.f32 %v7243_v7, %v2910_v16 }
 0xed7   :  { %2914 = vrot.lane.b32.xlu0 %v2912_v17, %s4314_s24 }
 0xed8   :  { %2718 = vrot.lane.b32.xlu1 %v4233_v54, %s4311_s21 }
 0xedb   :  { %2720 = vrot.lane.b32.xlu0 %v4234_v11, %s4311_s21 }
 0xf42   :  { %v2711_v36 = vpop.permute.xlu1 %2710 }
 0xf43   :  { %v2713_v27 = vsel %vm2703_vm10, %v2700_v57, %v2711_v36 }
 0xf44   :  { %3999 = vmatprep.subr.mxu1 %v2713_v27 }
 0xf45   :  { %4000 = vmatpush3.msra.mxu1 %v2713_v27 }
 0xf46   :  { %v2717_v32 = vpop.permute.xlu1 %2716 }
 0xf47   :  { %4002 = vmatmul.mubr.msk.f32.vlgmr.msra.gmra.mrb[24].mxu1 %vm1079_vm11, %v2717_v32 }
 0xf48   :  { %4013 = vmatprep.mubr.msk.f32.mxu1 %vm1079_vm11, %v2715_v24 }
 0xf49   :  { %v2915_v6 = vpop.permute.xlu0 %2914 }
 0xf4a   :  { %v2917_v20 = vsel %vm2907_vm9, %v2904_v59, %v2915_v6  ;;  %v2719_v21 = vpop.permute.xlu1 %2718 }
 0xf4b   :  { %4011 = vmatprep.subr.mxu1 %v2917_v20 }
 0xf4c   :  { %4012 = vmatpush3.msra.mxu1 %v2917_v20 }
 0xf4d   :  { %4014 = vmatmul.mubr.msk.f32.vlgmr.msra.gmra.mrb[26].mxu1 %vm1079_vm11, %v2717_v32  ;;  %v2721_v60 = vpop.permute.xlu0 %2720 }
 0xf4e   :  { %3162 = vmatprep.mubr.f32.mxu1 %v8587_v47 }
0x101a   :  { %v4003_v3 = vpop.f32.mrb[24].mxu1 }
0x101b   :  { %v2800_v41 = vadd.f32 %v4003_v3, %v2721_v60  ;;  %v2794_v51 = vpop.f32.mrb[25].mxu1 }
0x101c   :  { %v2795_v53 = vadd.f32 %v2794_v51, %v2719_v21 }
0x101d   :  { %v2804_v34 = vsub.f32 0.0, %v2800_v41 }
0x101e   :  { %v2803_v35 = vsub.f32 0.0, %v2795_v53 }
0x101f   :  { %v2807_v25 = vmul.f32 1.442695, %v2804_v34 }
0x1020   :  { %v4015_v42 = vpop.f32.mrb[26].mxu1  ;;  %v2805_v52 = vmul.f32 1.442695, %v2803_v35 }
0x1021   :  { %v2990_v49 = vadd.f32 %v4015_v42, %v2721_v60  ;;  %v2984_v56 = vpop.f32.mrb[27].mxu1  ;;  %4120 = vpow2.f32 %v2807_v25  ;;  %v8592_v25 = vld [vmem:[#allocation40_spill] sm:$0xff] }
0x1022   :  { %v2985_v31 = vadd.f32 %v2984_v56, %v2719_v21  ;;  %4122 = vpow2.f32 %v2805_v52 }
0x1023   :  { %v2994_v38 = vsub.f32 0.0, %v2990_v49 }
0x1024   :  { %v2993_v50 = vsub.f32 0.0, %v2985_v31 }
0x1025   :  { %v2997_v19 = vmul.f32 1.442695, %v2994_v38 }
0x1026   :  { %v2995_v62 = vmul.f32 1.442695, %v2993_v50 }
0x1027   :  { %4124 = vpow2.f32 %v2997_v19 }
0x1028   :  { %4126 = vpow2.f32 %v2995_v62 }
0x102b   :  { %v4121_v18 = vpop.eup %4120 }
0x102c   :  { %v4123_v26 = vpop.eup %4122  ;;  %v2810_v45 = vadd.f32 1.0, %v4121_v18 }
0x102d   :  { %v2809_v37 = vadd.f32 1.0, %v4123_v26 }
0x102e   :  { %4128 = vrcp.f32 %v2810_v45 }
0x102f   :  { %4130 = vrcp.f32 %v2809_v37 }
0x1031   :  { %v4125_v63 = vpop.eup %4124 }
0x1032   :  { %v4127_v14 = vpop.eup %4126  ;;  %v3000_v13 = vadd.f32 1.0, %v4125_v63 }
0x1033   :  { %v2999_v33 = vadd.f32 1.0, %v4127_v14 }
0x1034   :  { %4132 = vrcp.f32 %v3000_v13 }
0x1035   :  { %4134 = vrcp.f32 %v2999_v33 }
0x1038   :  { %v4129_v8 = vpop.eup %4128 }
0x1039   :  { %v4131_v40 = vpop.eup %4130  ;;  %2822 = vperm.xlu0 %4067, %v4129_v8  }
0x103a   :  { %2817 = vperm.xlu1 %4066, %v4131_v40  }
0x103e   :  { %v4133_v15 = vpop.eup %4132 }
0x103f   :  { %v4135_v58 = vpop.eup %4134  ;;  %3012 = vperm.xlu0 %4067, %v4133_v15  }
0x1040   :  { %3007 = vperm.xlu1 %4066, %v4135_v58  }
0x1043   :  { %4068 = vset.pattern.permute.xlu0 %v8588_v22 }
0x1044   :  { %3023 = vrot.lane.b32.xlu1 %v7243_v7, %s4320_s30  ;;  %3020 = vperm.xlu0 %4068, %v7243_v7  }
0x1045   :  { %4069 = vset.pattern.permute.xlu1 %v8589_v61 }
0x1048   :  { %3174 = vperm.xlu1 %4069, %v7243_v7   ;;  %4071 = vset.pattern.permute.xlu0 %v8590_v2 }
0x104c   :  { %4070 = vset.pattern.permute.xlu1 %v8591_v12 }
0x10b8   :  { %v2823_v39 = vpop.permute.xlu0 %2822 }
0x10b9   :  { %v7285_v28 = vmul.f32 %v2823_v39, %v7220_v0  ;;  %v7288_v57 = vmul.f32 %v2823_v39, %v7224_v44  ;;  %v2818_v29 = vpop.permute.xlu1 %2817  ;;  %v8594_v39 = vld [vmem:[#allocation38_spill] sm:$0xff] }
0x10ba   :  { %v7291_v46 = vmul.f32 %v2818_v29, %v7216_v4  ;;  %v7294_v59 = vmul.f32 %v2818_v29, %v7218_v5  ;;  %v3390_v29 = vmul.f32 2.0, %v8594_v39 }
0x10bc   :  { %v4036_v7 = vpack.c.bf16 %v7288_v57, %v7294_v59  ;;  %v4038_v30 = vpack.c.bf16 %v7285_v28, %v7291_v46 }
0x10be   :  { %v3013_v54 = vpop.permute.xlu0 %3012  ;;  %4037 = vmatprep.subr.bf16.mxu0 %v4036_v7 }
0x10bf   :  { %v7301_v0 = vmul.f32 %v3013_v54, %v7234_v43  ;;  %v7304_v44 = vmul.f32 %v3013_v54, %v7236_v1  ;;  %v3008_v48 = vpop.permute.xlu1 %3007  ;;  %4039 = vmatpush1.bf16.msra.mxu0 %v4038_v30  ;;  %v8595_v54 = vld [vmem:[#allocation39_spill] sm:$0xff] }
0x10c0   :  { %v7307_v4 = vmul.f32 %v3008_v48, %v7226_v55  ;;  %v7310_v5 = vmul.f32 %v3008_v48, %v7230_v23  ;;  %v3909_v55 = vld [vmem:[%s8137_s6 + $0x1] sm:$0x1]  ;;  %v3387_v48 = vmul.f32 2.0, %v8595_v54  ;;  %v4236_v54 = vld [vmem:[%s8133_s1 + $0x8] sm:$0xff] }
0x10c1   :  { %3187 = vperm.xlu1 %4070, %v3909_v55  }
0x10c2   :  { %v4040_v10 = vpack.c.bf16 %v7304_v44, %v7310_v5  ;;  %v4042_v24 = vpack.c.bf16 %v7301_v0, %v7307_v4 }
0x10c3   :  { %v3024_v16 = vpop.permute.xlu1 %3023  ;;  %v3021_v23 = vpop.permute.xlu0 %3020 }
0x10c4   :  { %3932 = vmatmul.mubr.msk.f32.vlgmr.msra.gmra.mrb[28].mxu0 %vm435_vm1, %v3024_v16  ;;  %4041 = vmatprep.subr.bf16.mxu1 %v4040_v10  ;;  %v8596_v10 = vld [vmem:[#allocation41_spill] sm:$0xff] }
0x10c5   :  { %4043 = vmatpush1.bf16.msra.mxu1 %v4042_v24  ;;  %3260 = vmatprep.mubr.f32.mxu0 %v8587_v47  ;;  %v3391_v24 = vmul.f32 2.0, %v8596_v10 }
0x10c6   :  { %4072 = vset.pattern.permute.xlu1 %v8590_v2  ;;  %v8593_v2 = vld [vmem:[#allocation42_spill] sm:$0xff] }
0x10c7   :  { %v3175_v1 = vpop.permute.xlu1 %3174  ;;  %v3386_v12 = vmul.f32 2.0, %v8593_v2 }
0x10c8   :  { %3933 = vmatmul.mubr.msk.f32.vlgmr.msra.gmra.mrb[28].mxu1 %vm435_vm1, %v3024_v16 }
0x10c9   :  { %3331 = vmatprep.mubr.f32.mxu1 %v8587_v47 }
0x1140   :  { %v3188_v35 = vpop.permute.xlu1 %3187 }
0x1141   :  { %v3193_v42 = vrot.slane %v3188_v35, %v8592_v25 }
0x1197   :  { %v3093_v43 = vpop.f32.mrb[28].mxu0 }
0x1198   :  { %v3095_v17 = vpop.f32.mrb[29].mxu0  ;;  %v3094_v11 = vadd.f32 %v3093_v43, %v3021_v23 }
0x1199   :  { %v3096_v36 = vadd.f32 %v3095_v17, %v3021_v23 }
0x119a   :  { %v3177_v27 = vmul.f32 %v3175_v1, %v3094_v11  ;;  %vm3169_vm13 = vcmp.ge.f32.partialorder %v3094_v11, 0.0 }
0x119b   :  { %v3178_v32 = vmul.f32 %v3175_v1, %v3096_v36  ;;  %v3164_v6 = vpop.f32.mrb[28].mxu1  ;;  %vm3170_vm12 = vcmp.ge.f32.partialorder %v3096_v36, 0.0 }
0x119c   :  { %v3165_v20 = vadd.f32 %v3164_v6, %v3021_v23  ;;  %v3166_v47 = vpop.f32.mrb[29].mxu1  ;;  %v3181_v41 = vsel %vm3169_vm13, %v3094_v11, %v3177_v27 }
0x119d   :  { %v3167_v60 = vadd.f32 %v3166_v47, %v3021_v23  ;;  %v3182_v21 = vsel %vm3170_vm12, %v3096_v36, %v3178_v32  ;;  %v8597_v47 = vld [vmem:[#allocation3_spill] sm:$0xff] }
0x119e   :  { %v3179_v3 = vmul.f32 %v3175_v1, %v3165_v20  ;;  %3196 = vmatprep.subr.mxu0 %v3182_v21  ;;  %vm3171_vm14 = vcmp.ge.f32.partialorder %v3165_v20, 0.0  ;;  %v8598_v21 = vld [vmem:[#allocation2_spill] sm:$0xff] }
0x119f   :  { %v3180_v51 = vmul.f32 %v3175_v1, %v3167_v60  ;;  %3197 = vmatpush1.msra.mxu0 %v3181_v41  ;;  %vm3172_vm15 = vcmp.ge.f32.partialorder %v3167_v60, 0.0 }
0x11a0   :  { %3934 = vmatmul.mubr.msk.f32.vlgmr.msra.gmra.mrb[30].mxu0 %vm1079_vm11, %v3909_v55  ;;  %v3183_v34 = vsel %vm3171_vm14, %v3165_v20, %v3179_v3  ;;  %v3392_v3 = vmul.f32 2.0, %v8598_v21 }
0x11a1   :  { %v3184_v53 = vsel %vm3172_vm15, %v3167_v60, %v3180_v51  ;;  %v3388_v60 = vmul.f32 2.0, %v8597_v47 }
0x11a2   :  { %3267 = vmatprep.subr.mxu1 %v3184_v53 }
0x11a3   :  { %3268 = vmatpush1.msra.mxu1 %v3183_v34 }
0x11a4   :  { %3935 = vmatmul.mubr.msk.f32.vlgmr.msra.gmra.mrb[30].mxu1 %vm1079_vm11, %v3909_v55 }
0x1273   :  { %v3262_v52 = vpop.f32.mrb[30].mxu0 }
0x1274   :  { %v3263_v49 = vadd.f32 %v3262_v52, %v3193_v42  ;;  %v3264_v56 = vpop.f32.mrb[31].mxu0  ;;  %v8599_v52 = vld [vmem:[#allocation4_spill] sm:$0xff] }
0x1275   :  { %v3265_v31 = vadd.f32 %v3264_v56, %v3193_v42  ;;  %v8600_v56 = vld [vmem:[#allocation5_spill] sm:$0xff] }
0x1276   :  { %v3338_v38 = vsub.f32 0.0, %v3263_v49  ;;  %v3389_v49 = vmul.f32 2.0, %v8599_v52  ;;  %v4240_v52 = vld [vmem:[%s8133_s1 + $0x180] sm:$0xff] }
0x1277   :  { %v3339_v50 = vsub.f32 0.0, %v3265_v31  ;;  %v3333_v19 = vpop.f32.mrb[30].mxu1  ;;  %v3393_v31 = vmul.f32 2.0, %v8600_v56 }
0x1278   :  { %v3342_v62 = vmul.f32 1.442695, %v3338_v38  ;;  %v3334_v18 = vadd.f32 %v3333_v19, %v3193_v42  ;;  %v3335_v26 = vpop.f32.mrb[31].mxu1 }
0x1279   :  { %v3344_v45 = vmul.f32 1.442695, %v3339_v50  ;;  %v3336_v37 = vadd.f32 %v3335_v26, %v3193_v42 }
0x127a   :  { %4136 = vpow2.f32 %v3342_v62  ;;  %v4085_v62 = vld [vmem:[%s8132_s2 + $0x44] ss:$8 sps:$4 sm:$0xff]  }
0x127b   :  { %4138 = vpow2.f32 %v3344_v45  ;;  %v3341_v11 = vsub.f32 0.0, %v3336_v37  ;;  %3942 = vmatprep.mubr.msk.bf16.mxu0 %vm435_vm1, %v4085_v62  ;;  %3943 = vmatprep.mubr.msk.bf16.mxu1 %vm435_vm1, %v4085_v62  ;;  %v3939_v45 = vld [vmem:[%s8134_s3 + $0x48] sm:$0xff]  ;;  %v3938_v37 = vld [vmem:[%s8134_s3 + $0x40] sm:$0xff] }
0x127d   :  { %v3348_v36 = vmul.f32 1.442695, %v3341_v11 }
0x1284   :  { %v4137_v63 = vpop.eup %4136 }
0x1285   :  { %v4139_v14 = vpop.eup %4138  ;;  %v3350_v13 = vadd.f32 1.0, %v4137_v63 }
0x1286   :  { %v3351_v33 = vadd.f32 1.0, %v4139_v14 }
0x1287   :  { %4140 = vrcp.f32 %v3350_v13 }
0x1288   :  { %4142 = vrcp.f32 %v3351_v33 }
0x1291   :  { %v4141_v8 = vpop.eup %4140 }
0x1292   :  { %v4143_v40 = vpop.eup %4142  ;;  %v3365_v15 = vrot.slane %v4141_v8, %v8592_v25 }
0x1293   :  { %v3369_v58 = vrot.slane %v4143_v40, %v8592_v25 }
0x1294   :  { %v3378_v22 = vmul.f32 %v3365_v15, %v7291_v46  ;;  %v3382_v61 = vmul.f32 %v3365_v15, %v7285_v28 }
0x1295   :  { %v3379_v7 = vmul.f32 %v3369_v58, %v7294_v59  ;;  %v3383_v30 = vmul.f32 %v3369_v58, %v7288_v57  ;;  %v3340_v59 = vsub.f32 0.0, %v3334_v18 }
0x1296   :  { %v7337_v16 = vadd.f32 %v3386_v12, %v3378_v22  ;;  %v7339_v55 = vadd.f32 %v3390_v29, %v3382_v61 }
0x1297   :  { %v7341_v23 = vadd.f32 %v3387_v48, %v3379_v7  ;;  %v7343_v46 = vadd.f32 %v3391_v24, %v3383_v30  ;;  %v3346_v43 = vmul.f32 1.442695, %v3340_v59  ;;  %v4235_v7 = vld [vmem:[%s8133_s1 + $0x28] sm:$0xff] }
0x1298   :  { %3404 = vrot.lane.b32.xlu1 %v7339_v55, %s4307_s28  ;;  %3402 = vrot.lane.b32.xlu0 %v7337_v16, %s4307_s28 }
0x1299   :  { %4144 = vpow2.f32 %v3346_v43 }
0x129c   :  { %3440 = vrot.lane.b32.xlu1 %v7339_v55, %s4308_s18  ;;  %3438 = vrot.lane.b32.xlu0 %v7337_v16, %s4308_s18 }
0x12a0   :  { %3476 = vrot.lane.b32.xlu1 %v7339_v55, %s4309_s19  ;;  %3474 = vrot.lane.b32.xlu0 %v7337_v16, %s4309_s19 }
0x12a3   :  { %v4145_v1 = vpop.eup %4144 }
0x12a4   :  { %3512 = vrot.lane.b32.xlu1 %v7339_v55, %s4310_s20  ;;  %3510 = vrot.lane.b32.xlu0 %v7337_v16, %s4310_s20  ;;  %v3352_v17 = vadd.f32 1.0, %v4145_v1 }
0x12a6   :  { %4146 = vrcp.f32 %v3352_v17 }
0x12a7   :  { %4148 = vpow2.f32 %v3348_v36 }
0x12a8   :  { %3552 = vrot.lane.b32.xlu1 %v7339_v55, %s4311_s21  ;;  %3550 = vrot.lane.b32.xlu0 %v7337_v16, %s4311_s21 }
0x12ac   :  { %3588 = vrot.lane.b32.xlu1 %v7339_v55, %s4312_s22  ;;  %3586 = vrot.lane.b32.xlu0 %v7337_v16, %s4312_s22 }
0x12b0   :  { %3624 = vrot.lane.b32.xlu1 %v7339_v55, %s4313_s23  ;;  %3622 = vrot.lane.b32.xlu0 %v7337_v16, %s4313_s23  ;;  %v4147_v27 = vpop.eup %4146 }
0x12b1   :  { %v3373_v32 = vrot.slane %v4147_v27, %v8592_v25  ;;  %v4149_v41 = vpop.eup %4148 }
0x12b3   :  { %v3380_v6 = vmul.f32 %v3373_v32, %v7307_v4  ;;  %v3384_v20 = vmul.f32 %v3373_v32, %v7301_v0  ;;  %v3353_v0 = vadd.f32 1.0, %v4149_v41 }
0x12b4   :  { %3660 = vrot.lane.b32.xlu1 %v7339_v55, %s4314_s24  ;;  %3658 = vrot.lane.b32.xlu0 %v7337_v16, %s4314_s24 }
0x12b5   :  { %v7418_v51 = vadd.f32 %v3388_v60, %v3380_v6  ;;  %v7420_v53 = vadd.f32 %v3392_v3, %v3384_v20  ;;  %4150 = vrcp.f32 %v3353_v0  ;;  %v4237_v20 = vld [vmem:[%s8133_s1 + $0x160] sm:$0xff] }
0x12b6   :  { %v4238_v60 = vld [vmem:[%s8133_s1 + $0x140] sm:$0xff] }
0x12b8   :  { %3408 = vrot.lane.b32.xlu1 %v7343_v46, %s4307_s28  ;;  %3406 = vrot.lane.b32.xlu0 %v7341_v23, %s4307_s28 }
0x12bc   :  { %3444 = vrot.lane.b32.xlu1 %v7343_v46, %s4308_s18  ;;  %3442 = vrot.lane.b32.xlu0 %v7341_v23, %s4308_s18 }
0x12bf   :  { %v4151_v4 = vpop.eup %4150 }
0x12c0   :  { %3480 = vrot.lane.b32.xlu1 %v7343_v46, %s4309_s19  ;;  %3478 = vrot.lane.b32.xlu0 %v7341_v23, %s4309_s19  ;;  %v3377_v34 = vrot.slane %v4151_v4, %v8592_v25 }
0x12c2   :  { %v3381_v35 = vmul.f32 %v3377_v34, %v7310_v5  ;;  %v3385_v42 = vmul.f32 %v3377_v34, %v7304_v44 }
0x12c4   :  { %3516 = vrot.lane.b32.xlu1 %v7343_v46, %s4310_s20  ;;  %3514 = vrot.lane.b32.xlu0 %v7341_v23, %s4310_s20  ;;  %v7455_v25 = vadd.f32 %v3389_v49, %v3381_v35  ;;  %v7457_v38 = vadd.f32 %v3393_v31, %v3385_v42  ;;  %v4239_v35 = vld [vmem:[%s8133_s1 + $0x1a0] sm:$0xff] }
0x12c8   :  { %3556 = vrot.lane.b32.xlu1 %v7343_v46, %s4311_s21  ;;  %3554 = vrot.lane.b32.xlu0 %v7341_v23, %s4311_s21 }
0x12cc   :  { %3592 = vrot.lane.b32.xlu1 %v7343_v46, %s4312_s22  ;;  %3590 = vrot.lane.b32.xlu0 %v7341_v23, %s4312_s22 }
0x12d0   :  { %3628 = vrot.lane.b32.xlu1 %v7343_v46, %s4313_s23  ;;  %3626 = vrot.lane.b32.xlu0 %v7341_v23, %s4313_s23 }
0x12d4   :  { %3664 = vrot.lane.b32.xlu1 %v7343_v46, %s4314_s24  ;;  %3662 = vrot.lane.b32.xlu0 %v7341_v23, %s4314_s24 }
0x12d8   :  { %3412 = vrot.lane.b32.xlu1 %v7420_v53, %s4307_s28  ;;  %3410 = vrot.lane.b32.xlu0 %v7418_v51, %s4307_s28 }
0x12dc   :  { %3448 = vrot.lane.b32.xlu1 %v7420_v53, %s4308_s18  ;;  %3446 = vrot.lane.b32.xlu0 %v7418_v51, %s4308_s18 }
0x12e0   :  { %3484 = vrot.lane.b32.xlu1 %v7420_v53, %s4309_s19  ;;  %3482 = vrot.lane.b32.xlu0 %v7418_v51, %s4309_s19 }
0x12e4   :  { %3520 = vrot.lane.b32.xlu1 %v7420_v53, %s4310_s20  ;;  %3518 = vrot.lane.b32.xlu0 %v7418_v51, %s4310_s20 }
0x12e8   :  { %3560 = vrot.lane.b32.xlu1 %v7420_v53, %s4311_s21  ;;  %3558 = vrot.lane.b32.xlu0 %v7418_v51, %s4311_s21 }
0x12ec   :  { %3596 = vrot.lane.b32.xlu1 %v7420_v53, %s4312_s22  ;;  %3594 = vrot.lane.b32.xlu0 %v7418_v51, %s4312_s22 }
0x12f0   :  { %3632 = vrot.lane.b32.xlu1 %v7420_v53, %s4313_s23  ;;  %3630 = vrot.lane.b32.xlu0 %v7418_v51, %s4313_s23 }
0x12f4   :  { %3416 = vrot.lane.b32.xlu1 %v7457_v38, %s4307_s28  ;;  %3414 = vrot.lane.b32.xlu0 %v7455_v25, %s4307_s28 }
0x12f8   :  { %3452 = vrot.lane.b32.xlu1 %v7457_v38, %s4308_s18  ;;  %3450 = vrot.lane.b32.xlu0 %v7455_v25, %s4308_s18 }
0x12fc   :  { %3488 = vrot.lane.b32.xlu1 %v7457_v38, %s4309_s19  ;;  %3486 = vrot.lane.b32.xlu0 %v7455_v25, %s4309_s19 }
0x1300   :  { %3524 = vrot.lane.b32.xlu1 %v7457_v38, %s4310_s20  ;;  %3522 = vrot.lane.b32.xlu0 %v7455_v25, %s4310_s20 }
0x1304   :  { %3668 = vrot.lane.b32.xlu1 %v7420_v53, %s4314_s24  ;;  %3666 = vrot.lane.b32.xlu0 %v7418_v51, %s4314_s24 }
0x1308   :  { %3564 = vrot.lane.b32.xlu1 %v7457_v38, %s4311_s21  ;;  %3562 = vrot.lane.b32.xlu0 %v7455_v25, %s4311_s21 }
0x130a   :  { %v7483_v44 = vpop.permute.xlu1 %3404  ;;  %v7485_v5 = vpop.permute.xlu0 %3402 }
0x130c   :  { %3600 = vrot.lane.b32.xlu1 %v7457_v38, %s4312_s22  ;;  %3598 = vrot.lane.b32.xlu0 %v7455_v25, %s4312_s22 }
0x130e   :  { %v7491_v50 = vpop.permute.xlu1 %3440  ;;  %v7493_v19 = vpop.permute.xlu0 %3438 }
0x1310   :  { %3636 = vrot.lane.b32.xlu1 %v7457_v38, %s4313_s23  ;;  %3634 = vrot.lane.b32.xlu0 %v7455_v25, %s4313_s23 }
0x1312   :  { %v7504_v18 = vpop.permute.xlu1 %3476  ;;  %v7506_v26 = vpop.permute.xlu0 %3474 }
0x1314   :  { %3672 = vrot.lane.b32.xlu1 %v7457_v38, %s4314_s24  ;;  %3670 = vrot.lane.b32.xlu0 %v7455_v25, %s4314_s24 }
0x1316   :  { %v7518_v63 = vpop.permute.xlu1 %3512  ;;  %v7520_v14 = vpop.permute.xlu0 %3510 }
0x1318   :  { %3707 = vperm.xlu1 %4072, %v3939_v45   ;;  %3702 = vperm.xlu0 %4071, %v3938_v37  }
0x131a   :  { %v7522_v13 = vpop.permute.xlu1 %3552  ;;  %v7524_v33 = vpop.permute.xlu0 %3550 }
0x131e   :  { %v7526_v8 = vpop.permute.xlu1 %3588  ;;  %v7528_v40 = vpop.permute.xlu0 %3586 }
0x131f   :  { %8601 = vst [vmem:[#allocation43_spill] sm:$0xff] %v7526_v8  ;;  %8602 = vst [vmem:[#allocation15_spill] sm:$0xff] %v7528_v40 }
0x1322   :  { %v7530_v15 = vpop.permute.xlu1 %3624  ;;  %v7532_v58 = vpop.permute.xlu0 %3622 }
0x1323   :  { %8603 = vst [vmem:[#allocation45_spill] sm:$0xff] %v7530_v15  ;;  %8604 = vst [vmem:[#allocation19_spill] sm:$0xff] %v7532_v58 }
0x1326   :  { %v7534_v22 = vpop.permute.xlu1 %3660  ;;  %v7536_v61 = vpop.permute.xlu0 %3658 }
0x1327   :  { %8605 = vst [vmem:[#allocation13_spill] sm:$0xff] %v7534_v22  ;;  %8606 = vst [vmem:[#allocation44_spill] sm:$0xff] %v7536_v61 }
0x132a   :  { %v7538_v2 = vpop.permute.xlu1 %3408  ;;  %v7540_v12 = vpop.permute.xlu0 %3406 }
0x132b   :  { %v3423_v39 = vsel %vm57_vm0, %v7483_v44, %v7538_v2  ;;  %v3422_v29 = vsel %vm57_vm0, %v7485_v5, %v7540_v12 }
0x132c   :  { %v3431_v30 = vmul.f32 %v4235_v7, %v3423_v39  ;;  %v3427_v48 = vmul.f32 %v4236_v54, %v3422_v29  ;;  %v4241_v39 = vld [vmem:[%s8133_s1 + $0x1e0] sm:$0xff] }
0x132d   :  { %v4242_v7 = vld [vmem:[%s8133_s1 + $0x1c0] sm:$0xff] }
0x132e   :  { %v7556_v10 = vpop.permute.xlu1 %3444  ;;  %v7558_v24 = vpop.permute.xlu0 %3442  ;;  %v3435_v59 = vpack.c.bf16 %v3431_v30, %v3427_v48 }
0x1330   :  { %3722 = vmatprep.subr.bf16.mxu0 %v3435_v59 }
0x1332   :  { %v7560_v43 = vpop.permute.xlu1 %3480  ;;  %v7562_v1 = vpop.permute.xlu0 %3478 }
0x1333   :  { %v3495_v3 = vsel %vm148_vm3, %v7504_v18, %v7560_v43  ;;  %v3494_v28 = vsel %vm148_vm3, %v7506_v26, %v7562_v1 }
0x1336   :  { %v7564_v17 = vpop.permute.xlu1 %3516  ;;  %v7566_v11 = vpop.permute.xlu0 %3514 }
0x133a   :  { %v7568_v36 = vpop.permute.xlu1 %3556  ;;  %v7570_v27 = vpop.permute.xlu0 %3554 }
0x133b   :  { %v3571_v32 = vsel %vm244_vm5, %v7522_v13, %v7568_v36  ;;  %v3570_v6 = vsel %vm244_vm5, %v7524_v33, %v7570_v27 }
0x133c   :  { %v7583_v47 = vmul.f32 %v4237_v20, %v3571_v32  ;;  %v7588_v21 = vmul.f32 %v4238_v60, %v3570_v6  ;;  %v4243_v20 = vld [vmem:[%s8133_s1 + $0x220] sm:$0xff] }
0x133e   :  { %8607 = vst [vmem:[#allocation48_spill] sm:$0xff] %v7583_v47  ;;  %8608 = vst [vmem:[#allocation50_spill] sm:$0xff] %v7588_v21  ;;  %v7592_v41 = vpop.permute.xlu1 %3592  ;;  %v7594_v0 = vpop.permute.xlu0 %3590  ;;  %v4252_v47 = vld [vmem:[%s8133_s1 + $0x10] sm:$0xff] }
0x133f   :  { %v3607_v4 = vsel %vm290_vm6, %v7526_v8, %v7592_v41  ;;  %v3606_v34 = vsel %vm290_vm6, %v7528_v40, %v7594_v0 }
0x1340   :  { %v7607_v42 = vmul.f32 %v4239_v35, %v3607_v4  ;;  %v7612_v49 = vmul.f32 %v4240_v52, %v3606_v34  ;;  %v4244_v4 = vld [vmem:[%s8133_s1 + $0x200] sm:$0xff]  ;;  %v3458_v35 = vsel %vm102_vm2, %v7493_v19, %v7558_v24 }
0x1342   :  { %8609 = vst [vmem:[#allocation47_spill] sm:$0xff] %v7607_v42  ;;  %8610 = vst [vmem:[#allocation49_spill] sm:$0xff] %v7612_v49  ;;  %v7616_v31 = vpop.permute.xlu1 %3628  ;;  %v7618_v62 = vpop.permute.xlu0 %3626  ;;  %v4248_v42 = vld [vmem:[%s8133_s1 + $0x88] sm:$0xff] }
0x1343   :  { %v3643_v45 = vsel %vm336_vm7, %v7530_v15, %v7616_v31  ;;  %v3642_v37 = vsel %vm336_vm7, %v7532_v58, %v7618_v62  ;;  %v7718_v58 = vmul.f32 %v4248_v42, %v3494_v28  ;;  %v4250_v15 = vld [vmem:[%s8133_s1 + $0xc8] sm:$0xff] }
0x1344   :  { %v7631_v29 = vmul.f32 %v4241_v39, %v3643_v45  ;;  %v7636_v30 = vmul.f32 %v4242_v7, %v3642_v37 }
0x1346   :  { %8611 = vst [vmem:[#allocation20_spill] sm:$0xff] %v7631_v29  ;;  %8612 = vst [vmem:[#allocation11_spill] sm:$0xff] %v7636_v30  ;;  %v7640_v48 = vpop.permute.xlu1 %3664  ;;  %v7642_v59 = vpop.permute.xlu0 %3662  ;;  %v4246_v29 = vld [vmem:[%s8133_s1 + $0x48] sm:$0xff] }
0x1347   :  { %v3679_v32 = vsel %vm382_vm8, %v7534_v22, %v7640_v48  ;;  %v3678_v6 = vsel %vm382_vm8, %v7536_v61, %v7642_v59  ;;  %v7708_v61 = vmul.f32 %v4246_v29, %v3458_v35  ;;  %v4247_v22 = vld [vmem:[%s8133_s1 + $0xa8] sm:$0xff]  ;;  %v3530_v29 = vsel %vm194_vm4, %v7520_v14, %v7566_v11 }
0x1348   :  { %v7655_v60 = vmul.f32 %v4243_v20, %v3679_v32  ;;  %v7660_v34 = vmul.f32 %v4244_v4, %v3678_v6  ;;  %v3459_v4 = vsel %vm102_vm2, %v7491_v50, %v7556_v10  ;;  %v7713_v49 = vmul.f32 %v4247_v22, %v3495_v3  ;;  %v4249_v35 = vld [vmem:[%s8133_s1 + $0xe8] sm:$0xff] }
0x1349   :  { %v7746_v21 = vmul.f32 %v4250_v15, %v3530_v29 }
0x134a   :  { %8613 = vst [vmem:[#allocation46_spill] sm:$0xff] %v7655_v60  ;;  %8614 = vst [vmem:[#allocation35_spill] sm:$0xff] %v7660_v34  ;;  %v3413_v52 = vpop.permute.xlu1 %3412  ;;  %v3411_v45 = vpop.permute.xlu0 %3410  ;;  %v4245_v60 = vld [vmem:[%s8133_s1 + $0x68] sm:$0xff] }
0x134b   :  { %v7703_v30 = vmul.f32 %v4245_v60, %v3459_v4  ;;  %v3531_v60 = vsel %vm194_vm4, %v7518_v63, %v7564_v17  ;;  %v3421_v22 = vsel %vm57_vm0, %v7538_v2, %v3413_v52  ;;  %v3420_v3 = vsel %vm57_vm0, %v7540_v12, %v3411_v45  ;;  %v4251_v2 = vld [vmem:[%s8133_s1 + $0x30] sm:$0xff] }
0x134c   :  { %v7741_v4 = vmul.f32 %v4249_v35, %v3531_v60  ;;  %v3432_v12 = vmul.f32 %v4251_v2, %v3421_v22  ;;  %v3428_v40 = vmul.f32 %v4252_v47, %v3420_v3 }
0x134d   :  { %v3471_v22 = vpack.c.bf16 %v7703_v30, %v7708_v61  ;;  %v4253_v61 = vld [vmem:[%s8133_s1 + $0x20] sm:$0xff] }
0x134e   :  { %v7664_v37 = vpop.permute.xlu1 %3448  ;;  %v7666_v39 = vpop.permute.xlu0 %3446  ;;  %v3543_v8 = vpack.c.bf16 %v7741_v4, %v7746_v21  ;;  %v8616_v4 = vpack.c.bf16 %v7343_v46, %v7341_v23  ;;  %v3548_v23 = vpack.c.bf16 %v7420_v53, %v7418_v51  ;;  %v4279_v51 = vld [vmem:[%s8133_s1 + $0x170] sm:$0xff] }
0x134f   :  { %v3457_v60 = vsel %vm102_vm2, %v7556_v10, %v7664_v37  ;;  %v3456_v15 = vsel %vm102_vm2, %v7558_v24, %v7666_v39 }
0x1352   :  { %v7668_v7 = vpop.permute.xlu1 %3484  ;;  %v7670_v54 = vpop.permute.xlu0 %3482 }
0x1356   :  { %v7672_v32 = vpop.permute.xlu1 %3520  ;;  %v7674_v20 = vpop.permute.xlu0 %3518 }
0x135a   :  { %v7676_v56 = vpop.permute.xlu1 %3560  ;;  %v7678_v6 = vpop.permute.xlu0 %3558 }
0x135e   :  { %v7696_v57 = vpop.permute.xlu1 %3596  ;;  %v7698_v34 = vpop.permute.xlu0 %3594 }
0x1362   :  { %v7734_v28 = vpop.permute.xlu1 %3632  ;;  %v7736_v42 = vpop.permute.xlu0 %3630 }
0x1366   :  { %v3417_v29 = vpop.permute.xlu1 %3416  ;;  %v3415_v35 = vpop.permute.xlu0 %3414 }
0x1367   :  { %v3419_v47 = vsel %vm57_vm0, %v3413_v52, %v3417_v29  ;;  %v3425_v10 = vsel %vm57_vm0, %v3417_v29, %v7483_v44  ;;  %v3418_v3 = vsel %vm57_vm0, %v3411_v45, %v3415_v35  ;;  %v3424_v24 = vsel %vm57_vm0, %v3415_v35, %v7485_v5  ;;  %v4254_v52 = vld [vmem:[%s8133_s1 + $0x38] sm:$0xff]  ;;  %v4255_v44 = vld [vmem:[%s8133_s1] sm:$0xff] }
0x1368   :  { %v3430_v30 = vmul.f32 %v4253_v61, %v3425_v10  ;;  %v3433_v2 = vmul.f32 %v4254_v52, %v3419_v47  ;;  %v3426_v29 = vmul.f32 %v4255_v44, %v3424_v24  ;;  %v4256_v45 = vld [vmem:[%s8133_s1 + $0x18] sm:$0xff]  ;;  %v3436_v35 = vpack.c.bf16 %v3432_v12, %v3428_v40  ;;  %v4257_v10 = vld [vmem:[%s8133_s1 + $0x70] sm:$0xff] }
0x1369   :  { %v3429_v5 = vmul.f32 %v4256_v45, %v3418_v3  ;;  %v3468_v61 = vmul.f32 %v4257_v10, %v3457_v60  ;;  %v4258_v47 = vld [vmem:[%s8133_s1 + $0x50] sm:$0xff]  ;;  %v3493_v24 = vsel %vm148_vm3, %v7560_v43, %v7668_v7  ;;  %v3492_v40 = vsel %vm148_vm3, %v7562_v1, %v7670_v54 }
0x136a   :  { %v3464_v52 = vmul.f32 %v4258_v47, %v3456_v15  ;;  %v3434_v12 = vpack.c.bf16 %v3430_v30, %v3426_v29  ;;  %v3453_v60 = vpop.permute.xlu1 %3452  ;;  %v3451_v3 = vpop.permute.xlu0 %3450  ;;  %v4263_v47 = vld [vmem:[%s8133_s1 + $0xb0] sm:$0xff] }
0x136b   :  { %v3437_v44 = vpack.c.bf16 %v3433_v2, %v3429_v5  ;;  %v3455_v15 = vsel %vm102_vm2, %v7664_v37, %v3453_v60  ;;  %v3461_v45 = vsel %vm102_vm2, %v3453_v60, %v7491_v50  ;;  %v3454_v43 = vsel %vm102_vm2, %v7666_v39, %v3451_v3  ;;  %v4259_v2 = vld [vmem:[%s8133_s1 + $0x60] sm:$0xff]  ;;  %v4260_v37 = vld [vmem:[%s8133_s1 + $0x78] sm:$0xff] }
0x136c   :  { %v3460_v1 = vsel %vm102_vm2, %v3451_v3, %v7493_v19  ;;  %v3466_v30 = vmul.f32 %v4259_v2, %v3461_v45  ;;  %v3469_v29 = vmul.f32 %v4260_v37, %v3455_v15  ;;  %v4261_v50 = vld [vmem:[%s8133_s1 + $0x40] sm:$0xff]  ;;  %v4262_v39 = vld [vmem:[%s8133_s1 + $0x58] sm:$0xff]  ;;  %3723 = vmatpush1.bf16.msra.mxu0 %v3434_v12  ;;  %v3472_v10 = vpack.c.bf16 %v3468_v61, %v3464_v52  ;;  %v4264_v3 = vld [vmem:[%s8133_s1 + $0x90] sm:$0xff] }
0x136d   :  { %v3462_v5 = vmul.f32 %v4261_v50, %v3460_v1  ;;  %v3465_v19 = vmul.f32 %v4262_v39, %v3454_v43  ;;  %v3504_v60 = vmul.f32 %v4263_v47, %v3493_v24  ;;  %v3500_v15 = vmul.f32 %v4264_v3, %v3492_v40  ;;  %3765 = vmatprep.subr.bf16.mxu1 %v3437_v44  ;;  %v4269_v37 = vld [vmem:[%s8133_s1 + $0xf0] sm:$0xff] }
0x136e   :  { %3724 = vmatprep.subr.bf16.mxu0 %v3471_v22  ;;  %v3529_v45 = vsel %vm194_vm4, %v7564_v17, %v7672_v32  ;;  %v3528_v61 = vsel %vm194_vm4, %v7566_v11, %v7674_v20  ;;  %3766 = vmatpush1.bf16.msra.mxu1 %v3436_v35  ;;  %v3489_v24 = vpop.permute.xlu1 %3488  ;;  %v3487_v12 = vpop.permute.xlu0 %3486  ;;  %v4265_v35 = vld [vmem:[%s8133_s1 + $0xa0] sm:$0xff]  ;;  %v4270_v50 = vld [vmem:[%s8133_s1 + $0xd0] sm:$0xff]  ;;  %v8615_v39 = vpack.c.bf16 %v7713_v49, %v7718_v58 }
0x136f   :  { %v3470_v52 = vpack.c.bf16 %v3466_v30, %v3462_v5  ;;  %v3473_v43 = vpack.c.bf16 %v3469_v29, %v3465_v19  ;;  %v3491_v40 = vsel %vm148_vm3, %v7668_v7, %v3489_v24  ;;  %v3497_v22 = vsel %vm148_vm3, %v3489_v24, %v7504_v18  ;;  %v4266_v7 = vld [vmem:[%s8133_s1 + $0xb8] sm:$0xff]  ;;  %v4267_v18 = vld [vmem:[%s8133_s1 + $0x80] sm:$0xff] }
0x1370   :  { %v3490_v17 = vsel %vm148_vm3, %v7670_v54, %v3487_v12  ;;  %v3496_v11 = vsel %vm148_vm3, %v3487_v12, %v7506_v26  ;;  %v3502_v44 = vmul.f32 %v4265_v35, %v3497_v22  ;;  %v3505_v1 = vmul.f32 %v4266_v7, %v3491_v40  ;;  %v4268_v54 = vld [vmem:[%s8133_s1 + $0x98] sm:$0xff]  ;;  %v4275_v12 = vld [vmem:[%s8133_s1 + $0x168] sm:$0xff] }
0x1371   :  { %v3498_v2 = vmul.f32 %v4267_v18, %v3496_v11  ;;  %v3501_v26 = vmul.f32 %v4268_v54, %v3490_v17  ;;  %3725 = vmatpush1.bf16.msra.mxu0 %v3470_v52  ;;  %v3508_v30 = vpack.c.bf16 %v3504_v60, %v3500_v15  ;;  %v3540_v29 = vmul.f32 %v4269_v37, %v3529_v45  ;;  %v4276_v40 = vld [vmem:[%s8133_s1 + $0x148] sm:$0xff] }
0x1372   :  { %v3536_v5 = vmul.f32 %v4270_v50, %v3528_v61  ;;  %3767 = vmatprep.subr.bf16.mxu1 %v3473_v43  ;;  %3726 = vmatprep.subr.bf16.mxu0 %v8615_v39  ;;  %v3569_v19 = vsel %vm244_vm5, %v7568_v36, %v7676_v56  ;;  %v3568_v47 = vsel %vm244_vm5, %v7570_v27, %v7678_v6  ;;  %v3525_v3 = vpop.permute.xlu1 %3524  ;;  %v3523_v15 = vpop.permute.xlu0 %3522  ;;  %v4283_v39 = vld [vmem:[%s8133_s1 + $0x1e8] sm:$0xff] }
0x1373   :  { %v3506_v60 = vpack.c.bf16 %v3502_v44, %v3498_v2  ;;  %3768 = vmatpush1.bf16.msra.mxu1 %v3472_v10  ;;  %v3509_v45 = vpack.c.bf16 %v3505_v1, %v3501_v26  ;;  %v3527_v58 = vsel %vm194_vm4, %v7672_v32, %v3525_v3  ;;  %v3533_v49 = vsel %vm194_vm4, %v3525_v3, %v7518_v63  ;;  %v4271_v10 = vld [vmem:[%s8133_s1 + $0xe0] sm:$0xff]  ;;  %v4272_v32 = vld [vmem:[%s8133_s1 + $0xf8] sm:$0xff] }
0x1374   :  { %v3526_v36 = vsel %vm194_vm4, %v7674_v20, %v3523_v15  ;;  %v3532_v27 = vsel %vm194_vm4, %v3523_v15, %v7520_v14  ;;  %v3538_v61 = vmul.f32 %v4271_v10, %v3533_v49  ;;  %v3541_v52 = vmul.f32 %v4272_v32, %v3527_v58  ;;  %v4273_v63 = vld [vmem:[%s8133_s1 + $0xc0] sm:$0xff]  ;;  %v4274_v20 = vld [vmem:[%s8133_s1 + $0xd8] sm:$0xff]  ;;  %v4285_v32 = vld [vmem:[%s8133_s1 + $0x1b0] sm:$0xff] }
0x1375   :  { %v3534_v24 = vmul.f32 %v4273_v63, %v3532_v27  ;;  %v3537_v14 = vmul.f32 %v4274_v20, %v3526_v36  ;;  %3727 = vmatpush1.bf16.msra.mxu0 %v3506_v60  ;;  %v3579_v43 = vmul.f32 %v4275_v12, %v3569_v19  ;;  %v3575_v22 = vmul.f32 %v4276_v40, %v3568_v47  ;;  %v4284_v47 = vld [vmem:[%s8133_s1 + $0x1c8] sm:$0xff]  ;;  %v8620_v12 = vld [vmem:[#allocation48_spill] sm:$0xff] }
0x1376   :  { %3769 = vmatprep.subr.bf16.mxu1 %v3509_v45  ;;  %3728 = vmatprep.subr.bf16.mxu0 %v3543_v8  ;;  %v3605_v17 = vsel %vm290_vm6, %v7592_v41, %v7696_v57  ;;  %v3604_v11 = vsel %vm290_vm6, %v7594_v0, %v7698_v34  ;;  %v7924_v44 = vpop.permute.xlu1 %3668  ;;  %v7926_v7 = vpop.permute.xlu0 %3666  ;;  %v3544_v18 = vpack.c.bf16 %v3540_v29, %v3536_v5  ;;  %v4277_v8 = vld [vmem:[%s8133_s1 + $0x1a8] sm:$0xff] }
0x1377   :  { %v3542_v35 = vpack.c.bf16 %v3538_v61, %v3534_v24  ;;  %3770 = vmatpush1.bf16.msra.mxu1 %v3508_v30  ;;  %v3545_v1 = vpack.c.bf16 %v3541_v52, %v3537_v14  ;;  %v3615_v21 = vmul.f32 %v4277_v8, %v3605_v17  ;;  %v4278_v41 = vld [vmem:[%s8133_s1 + $0x188] sm:$0xff]  ;;  %v3549_v2 = vpack.c.bf16 %v7457_v38, %v7455_v25  ;;  %v4287_v24 = vld [vmem:[%s8133_s1 + $0x190] sm:$0xff] }
0x1378   :  { %v3611_v0 = vmul.f32 %v4278_v41, %v3604_v11  ;;  %v3641_v54 = vsel %vm336_vm7, %v7616_v31, %v7734_v28  ;;  %v3640_v26 = vsel %vm336_vm7, %v7618_v62, %v7736_v42  ;;  %v3583_v29 = vpack.c.bf16 %v3579_v43, %v3575_v22  ;;  %v8618_v27 = vld [vmem:[#allocation43_spill] sm:$0xff]  ;;  %v8621_v43 = vld [vmem:[#allocation50_spill] sm:$0xff] }
0x1379   :  { %3729 = vmatpush1.bf16.msra.mxu0 %v3542_v35  ;;  %3771 = vmatprep.subr.bf16.mxu1 %v3545_v1  ;;  %v8617_v5 = vpack.c.bf16 %v7339_v55, %v7337_v16  ;;  %v3651_v19 = vmul.f32 %v4283_v39, %v3641_v54  ;;  %v3647_v60 = vmul.f32 %v4284_v47, %v3640_v26  ;;  %v8619_v61 = vld [vmem:[#allocation15_spill] sm:$0xff]  ;;  %v8629_v47 = vld [vmem:[#allocation44_spill] sm:$0xff] }
0x137a   :  { %3730 = vmatprep.subr.bf16.mxu0 %v8616_v4  ;;  %v3565_v30 = vpop.permute.xlu1 %3564  ;;  %v3563_v37 = vpop.permute.xlu0 %3562  ;;  %v3619_v3 = vpack.c.bf16 %v3615_v21, %v3611_v0  ;;  %v3677_v15 = vsel %vm382_vm8, %v7640_v48, %v7924_v44  ;;  %v3676_v16 = vsel %vm382_vm8, %v7642_v59, %v7926_v7  ;;  %v8622_v40 = vpack.c.bf16 %v8620_v12, %v8621_v43  ;;  %v4289_v17 = vld [vmem:[%s8133_s1 + $0x228] sm:$0xff]  ;;  %v8623_v4 = vld [vmem:[#allocation45_spill] sm:$0xff] }
0x137b   :  { %3772 = vmatpush1.bf16.msra.mxu1 %v3544_v18  ;;  %v3567_v46 = vsel %vm244_vm5, %v7676_v56, %v3565_v30  ;;  %v3573_v25 = vsel %vm244_vm5, %v3565_v30, %v7522_v13  ;;  %v3566_v38 = vsel %vm244_vm5, %v7678_v6, %v3563_v37  ;;  %v3572_v31 = vsel %vm244_vm5, %v3563_v37, %v7524_v33  ;;  %v4280_v56 = vld [vmem:[%s8133_s1 + $0x178] sm:$0xff]  ;;  %v4281_v13 = vld [vmem:[%s8133_s1 + $0x150] sm:$0xff]  ;;  %v4290_v35 = vld [vmem:[%s8133_s1 + $0x208] sm:$0xff] }
0x137c   :  { %3773 = vmatprep.subr.bf16.mxu1 %v3549_v2  ;;  %v3580_v53 = vmul.f32 %v4279_v51, %v3567_v46  ;;  %v3581_v62 = vmul.f32 %v4280_v56, %v3573_v25  ;;  %v3576_v50 = vmul.f32 %v4281_v13, %v3566_v38  ;;  %v4282_v6 = vld [vmem:[%s8133_s1 + $0x158] sm:$0xff]  ;;  %v3655_v22 = vpack.c.bf16 %v3651_v19, %v3647_v60  ;;  %v8624_v26 = vld [vmem:[#allocation19_spill] sm:$0xff]  ;;  %v4291_v37 = vld [vmem:[%s8133_s1 + $0x1f0] sm:$0xff] }
0x137d   :  { %v3577_v33 = vmul.f32 %v4282_v6, %v3572_v31  ;;  %3731 = vmatpush1.bf16.msra.mxu0 %v8617_v5  ;;  %v3687_v11 = vmul.f32 %v4289_v17, %v3677_v15  ;;  %v3683_v1 = vmul.f32 %v4290_v35, %v3676_v16  ;;  %v4293_v46 = vld [vmem:[%s8133_s1 + $0x1d0] sm:$0xff]  ;;  %v8625_v31 = vld [vmem:[#allocation47_spill] sm:$0xff]  ;;  %v8626_v51 = vld [vmem:[#allocation49_spill] sm:$0xff] }
0x137e   :  { %3732 = vmatprep.subr.bf16.mxu0 %v3583_v29  ;;  %v3584_v55 = vpack.c.bf16 %v3580_v53, %v3576_v50  ;;  %v3601_v45 = vpop.permute.xlu1 %3600  ;;  %v3599_v58 = vpop.permute.xlu0 %3598  ;;  %v8627_v53 = vpack.c.bf16 %v8625_v31, %v8626_v51  ;;  %v8628_v5 = vld [vmem:[#allocation13_spill] sm:$0xff]  ;;  %v4299_v17 = vld [vmem:[%s8131_s0] sm:$0xff] }
0x137f   :  { %3774 = vmatpush1.bf16.msra.mxu1 %v3548_v23  ;;  %v3585_v49 = vpack.c.bf16 %v3581_v62, %v3577_v33  ;;  %v3603_v36 = vsel %vm290_vm6, %v7696_v57, %v3601_v45  ;;  %v3609_v10 = vsel %vm290_vm6, %v3601_v45, %v8618_v27  ;;  %v3602_v48 = vsel %vm290_vm6, %v7698_v34, %v3599_v58  ;;  %v4286_v57 = vld [vmem:[%s8133_s1 + $0x1b8] sm:$0xff] }
0x1380   :  { %v3608_v59 = vsel %vm290_vm6, %v3599_v58, %v8619_v61  ;;  %v3616_v52 = vmul.f32 %v4285_v32, %v3603_v36  ;;  %v3617_v63 = vmul.f32 %v4286_v57, %v3609_v10  ;;  %v3612_v20 = vmul.f32 %v4287_v24, %v3602_v48  ;;  %v4288_v34 = vld [vmem:[%s8133_s1 + $0x198] sm:$0xff]  ;;  %v8630_v58 = vld [vmem:[#allocation20_spill] sm:$0xff]  ;;  %v4087_v48 = vld [vmem:[%s8132_s2 + $0x40] ss:$8 sps:$4 sm:$0xff]  }
0x1381   :  { %v3613_v14 = vmul.f32 %v4288_v34, %v3608_v59  ;;  %3733 = vmatpush1.bf16.msra.mxu0 %v8622_v40  ;;  %3775 = vmatprep.subr.bf16.mxu1 %v3585_v49  ;;  %v3691_v6 = vpack.c.bf16 %v3687_v11, %v3683_v1  ;;  %v8631_v49 = vld [vmem:[#allocation11_spill] sm:$0xff]  ;;  %v8633_v61 = vld [vmem:[#allocation46_spill] sm:$0xff] }
0x1382   :  { %3734 = vmatprep.subr.bf16.mxu0 %v3619_v3  ;;  %v3620_v18 = vpack.c.bf16 %v3616_v52, %v3612_v20  ;;  %v3637_v8 = vpop.permute.xlu1 %3636  ;;  %v3635_v21 = vpop.permute.xlu0 %3634  ;;  %v4295_v3 = vld [vmem:[%s8133_s1 + $0x230] sm:$0xff]  ;;  %v8632_v36 = vpack.c.bf16 %v8630_v58, %v8631_v49  ;;  %v8634_v59 = vld [vmem:[#allocation35_spill] sm:$0xff] }
0x1383   :  { %3776 = vmatpush1.bf16.msra.mxu1 %v3584_v55  ;;  %v3621_v41 = vpack.c.bf16 %v3617_v63, %v3613_v14  ;;  %v3639_v0 = vsel %vm336_vm7, %v7734_v28, %v3637_v8  ;;  %v3645_v2 = vsel %vm336_vm7, %v3637_v8, %v8623_v4  ;;  %v3638_v54 = vsel %vm336_vm7, %v7736_v42, %v3635_v21  ;;  %v4292_v28 = vld [vmem:[%s8133_s1 + $0x1f8] sm:$0xff]  ;;  %v4297_v55 = vld [vmem:[%s8133_s1 + $0x210] sm:$0xff]  ;;  %v4300_v8 = vld [vmem:[%s8131_s0 + $0x8] sm:$0xff] }
0x1384   :  { %v3644_v30 = vsel %vm336_vm7, %v3635_v21, %v8624_v26  ;;  %v3652_v29 = vmul.f32 %v4291_v37, %v3639_v0  ;;  %v3653_v23 = vmul.f32 %v4292_v28, %v3645_v2  ;;  %v3648_v25 = vmul.f32 %v4293_v46, %v3638_v54  ;;  %v4294_v42 = vld [vmem:[%s8133_s1 + $0x1d8] sm:$0xff]  ;;  %v4301_v4 = vld [vmem:[%s8131_s0 + $0x20] sm:$0xff]  ;;  %v4302_v26 = vld [vmem:[%s8131_s0 + $0x10] sm:$0xff] }
0x1385   :  { %v3649_v38 = vmul.f32 %v4294_v42, %v3644_v30  ;;  %3735 = vmatpush1.bf16.msra.mxu0 %v8627_v53  ;;  %3777 = vmatprep.subr.bf16.mxu1 %v3621_v41  ;;  %v8635_v32 = vpack.c.bf16 %v8633_v61, %v8634_v59 }
0x1386   :  { %3736 = vmatprep.subr.bf16.mxu0 %v3655_v22  ;;  %v3656_v56 = vpack.c.bf16 %v3652_v29, %v3648_v25  ;;  %v3673_v62 = vpop.permute.xlu1 %3672  ;;  %v3671_v13 = vpop.permute.xlu0 %3670  ;;  %v4303_v29 = vld [vmem:[%s8131_s0 + $0x18] sm:$0xff]  ;;  %v4305_v25 = vld [vmem:[%s8131_s0 + $0x30] sm:$0xff] }
0x1387   :  { %3778 = vmatpush1.bf16.msra.mxu1 %v3620_v18  ;;  %v3657_v50 = vpack.c.bf16 %v3653_v23, %v3649_v38  ;;  %v3675_v33 = vsel %vm382_vm8, %v7924_v44, %v3673_v62  ;;  %v3681_v39 = vsel %vm382_vm8, %v3673_v62, %v8628_v5  ;;  %v3674_v19 = vsel %vm382_vm8, %v7926_v7, %v3671_v13  ;;  %v4296_v44 = vld [vmem:[%s8133_s1 + $0x238] sm:$0xff]  ;;  %v4304_v23 = vld [vmem:[%s8131_s0 + $0x28] sm:$0xff] }
0x1388   :  { %v3680_v60 = vsel %vm382_vm8, %v3671_v13, %v8629_v47  ;;  %v3688_v15 = vmul.f32 %v4295_v3, %v3675_v33  ;;  %v3689_v16 = vmul.f32 %v4296_v44, %v3681_v39  ;;  %v3684_v45 = vmul.f32 %v4297_v55, %v3674_v19  ;;  %v4306_v38 = vld [vmem:[%s8131_s0 + $0x38] sm:$0xff] }
0x1389   :  { %v3685_v7 = vmul.f32 %v4298_v9, %v3680_v60  ;;  %3737 = vmatpush1.bf16.msra.mxu0 %v8632_v36  ;;  %3779 = vmatprep.subr.bf16.mxu1 %v3657_v50 }
0x138a   :  { %3738 = vmatprep.subr.bf16.mxu0 %v3691_v6  ;;  %v3692_v27 = vpack.c.bf16 %v3688_v15, %v3684_v45 }
0x138b   :  { %3780 = vmatpush1.bf16.msra.mxu1 %v3656_v56  ;;  %v3693_v10 = vpack.c.bf16 %v3689_v16, %v3685_v7 }
0x138d   :  { %3739 = vmatpush1.bf16.msra.mxu0 %v8635_v32  ;;  %3781 = vmatprep.subr.bf16.mxu1 %v3693_v10 }
0x138f   :  { %3782 = vmatpush1.bf16.msra.mxu1 %v3692_v27 }
0x1390   :  { %3755 = vmatmul.mubr.bf16.vlgmr.msra.gmra.mrb[32].mxu0 %v4087_v48 }
0x1392   :  { %3798 = vmatmul.mubr.bf16.vlgmr.msra.gmra.mrb[32].mxu1 %v4087_v48 }
0x1397   :  { %v3703_v52 = vpop.permute.xlu0 %3702  ;;  %v3708_v63 = vpop.permute.xlu1 %3707 }
0x1463   :  { %v3756_v57 = vpop.f32.mrb[32].mxu0 }
0x1464   :  { %v3758_v24 = vpop.f32.mrb[33].mxu0  ;;  %v3757_v20 = vadd.f32 %v3756_v57, %v3703_v52 }
0x1465   :  { %v3799_v34 = vpop.f32.mrb[32].mxu1  ;;  %v3760_v14 = vpop.f32.mrb[34].mxu0  ;;  %v3759_v12 = vadd.f32 %v3758_v24, %v3703_v52 }
0x1466   :  { %v3801_v43 = vpop.f32.mrb[33].mxu1  ;;  %v3761_v40 = vadd.f32 %v3760_v14, %v3708_v63  ;;  %v3800_v22 = vadd.f32 %v3799_v34, %v3703_v52  ;;  %v3808_v11 = vadd.f32 %v4299_v17, %v3757_v20  ;;  %v3762_v35 = vpop.f32.mrb[35].mxu0 }
0x1467   :  { %v3803_v1 = vpop.f32.mrb[34].mxu1  ;;  %v3802_v18 = vadd.f32 %v3801_v43, %v3703_v52  ;;  %v3809_v21 = vadd.f32 %v4300_v8, %v3759_v12  ;;  %v3763_v41 = vadd.f32 %v3762_v35, %v3708_v63 }
0x1468   :  { %v3804_v0 = vadd.f32 %v3803_v1, %v3708_v63  ;;  %v3812_v2 = vadd.f32 %v4301_v4, %v3761_v40  ;;  %v3805_v54 = vpop.f32.mrb[35].mxu1  ;;  %v3810_v30 = vadd.f32 %v4302_v26, %v3800_v22  ;;  %3816 = vst [vmem:[%s8138_s7] sm:$0xff] %v3808_v11 }
0x1469   :  { %v3806_v37 = vadd.f32 %v3805_v54, %v3708_v63  ;;  %v3811_v28 = vadd.f32 %v4303_v29, %v3802_v18  ;;  %3817 = vst [vmem:[%s8138_s7 + $0x8] sm:$0xff] %v3809_v21  ;;  %v3813_v46 = vadd.f32 %v4304_v23, %v3763_v41 }
0x146a   :  { %v3814_v42 = vadd.f32 %v4305_v25, %v3804_v0  ;;  %3820 = vst [vmem:[%s8138_s7 + $0x20] sm:$0xff] %v3812_v2  ;;  %3818 = vst [vmem:[%s8138_s7 + $0x10] sm:$0xff] %v3810_v30 }
0x146b   :  { %v3815_v31 = vadd.f32 %v4306_v38, %v3806_v37  ;;  %3819 = vst [vmem:[%s8138_s7 + $0x18] sm:$0xff] %v3811_v28  ;;  %3821 = vst [vmem:[%s8138_s7 + $0x28] sm:$0xff] %v3813_v46 }
0x146c   :  { %3822 = vst [vmem:[%s8138_s7 + $0x30] sm:$0xff] %v3814_v42 }
0x146d   :  { %3823 = vst [vmem:[%s8138_s7 + $0x38] sm:$0xff] %v3815_v31 }

</bundles_post_ra>
